<compile_context>
chip_gen: v7x
topology: tpu7x:2x2x1
jax: 0.10.0
libtpu: 0.0.40
codegen_flags: <defaults>
</compile_context>

<pallas_src>
import functools

import jax
import jax.numpy as jnp
from jax.experimental import pallas as pl
from jax.experimental.pallas import tpu as pltpu


# ----------------------------------------------------------------------------
# Config
# ----------------------------------------------------------------------------

C_IN, C_STEM, C_EXP, C_SE, C_HEAD, OUT_DIM = 3, 16, 64, 4, 64, 3
CP = 128                       # lane-dense padded channel width for all kernels
K_STEM = 32                    # stem im2col K: 3*3*3 = 27 padded to 32 (NOT 128)
PADL = 8                       # sublane-aligned left halo offset in dw scratch
VMEM_LIMIT = 32 * 1024 * 1024  # v7x-safe scoped VMEM budget; plenty for v5e/v6e


# ----------------------------------------------------------------------------
# Kernel 1: stem conv (as matmul) + expand 1x1 conv, fused
# ----------------------------------------------------------------------------

def _stem_expand_kernel(cols_ref, ws_ref, ss_ref, bs_ref,
                        we_ref, se_ref, be_ref,
                        stem_ref, exp_ref):
    """h_stem = silu(cols @ Ws * ss + bs); h_exp = silu(h_stem @ We * se + be).

    bf16 MXU operands, f32 accumulation + affine/SiLU epilogues; bf16 outputs
    (they only feed bf16 consumers downstream).
    """
    y = jnp.dot(cols_ref[...], ws_ref[...], preferred_element_type=jnp.float32)
    y = y * ss_ref[...] + bs_ref[...]
    # TODO(synk): on v6e/v7x the sigmoid could run on a bf16 copy (2x EUP rate).
    y = y * jax.nn.sigmoid(y)                                  # SiLU (f32)
    stem_ref[...] = y.astype(jnp.bfloat16)

    z = jnp.dot(y.astype(jnp.bfloat16), we_ref[...],
                preferred_element_type=jnp.float32)
    z = z * se_ref[...] + be_ref[...]
    z = z * jax.nn.sigmoid(z)
    exp_ref[...] = z.astype(jnp.bfloat16)


def stem_expand(cols, p, tm=256):
    """cols: (M, K_STEM) bf16 -> (h_stem (M, CP) bf16, h_exp (M, CP) bf16).

    tm=256 keeps the grid >= 2 at toy sizes so v7x's two TensorCores both get
    work; M is padded up to a tile multiple (no whole-array fallback).
    """
    M, K = cols.shape
    Mp = ((M + tm - 1) // tm) * tm
    if Mp != M:
        cols = jnp.pad(cols, ((0, Mp - M), (0, 0)))
    flops = 2 * Mp * CP * (K + CP)
    trans = 2 * Mp * CP
    bytes_acc = Mp * K * 2 + 2 * Mp * CP * 2 + (K * CP + CP * CP) * 2 + 4 * CP * 4

    h_stem, h_exp = pl.pallas_call(
        _stem_expand_kernel,
        out_shape=(jax.ShapeDtypeStruct((Mp, CP), jnp.bfloat16),
                   jax.ShapeDtypeStruct((Mp, CP), jnp.bfloat16)),
        grid=(Mp // tm,),
        in_specs=[
            pl.BlockSpec((tm, K), lambda i: (i, 0)),
            pl.BlockSpec((K, CP), lambda i: (0, 0)),
            pl.BlockSpec((1, CP), lambda i: (0, 0)),
            pl.BlockSpec((1, CP), lambda i: (0, 0)),
            pl.BlockSpec((CP, CP), lambda i: (0, 0)),
            pl.BlockSpec((1, CP), lambda i: (0, 0)),
            pl.BlockSpec((1, CP), lambda i: (0, 0)),
        ],
        out_specs=(pl.BlockSpec((tm, CP), lambda i: (i, 0)),
                   pl.BlockSpec((tm, CP), lambda i: (i, 0))),
        compiler_params=pltpu.CompilerParams(
            dimension_semantics=("parallel",),
            vmem_limit_bytes=VMEM_LIMIT),
        cost_estimate=pl.CostEstimate(flops=flops, transcendentals=trans,
                                      bytes_accessed=bytes_acc),
    )(cols, p["stem_w"], p["stem_scale"], p["stem_bias"],
      p["exp_w"], p["exp_scale"], p["exp_bias"])
    if Mp != M:
        h_stem, h_exp = h_stem[:M], h_exp[:M]
    return h_stem, h_exp


# ----------------------------------------------------------------------------
# Kernel 2: per-image fused MBConv tail + head + pool + fc
#   dwconv3x3 + affine + SiLU -> SE (squeeze, fc1, SiLU, fc2, sigmoid) ->
#   gate * dw -> projection + affine + residual -> head 1x1 + affine + SiLU ->
#   global average pool -> final fc (logits).
# ----------------------------------------------------------------------------

def _mbconv_head_fc_kernel(x_ref, res_ref, dww_ref, dsc_ref, dbi_ref,
                           w1_ref, b1_ref, w2_ref, b2_ref,
                           wp_ref, sp_ref, bp_ref,
                           wh_ref, sh_ref, bh_ref,
                           wf_ref, bf_ref,
                           out_ref, xp_ref, dw_ref, *, ho, wo, rchunk):
    hw = ho * wo

    # ---- halo-padded copy of the expand activation, built in VMEM ----------
    # Interior lives at (1, PADL): the large interior store stays (8,128)-tile
    # aligned; only the small shifted tap *reads* below are sublane-misaligned.
    # Re-zeroed every image (megacore-safe; each core has its own scratch).
    xp_ref[...] = jnp.zeros_like(xp_ref)
    xp_ref[1:1 + ho, PADL:PADL + wo, :] = x_ref[0].astype(jnp.float32)

    dww = dww_ref[...]                       # (9, CP) f32 per-channel tap weights
    dsc = dsc_ref[0]
    dbi = dbi_ref[0]

    # ---- depthwise 3x3 + BN affine + SiLU, row-chunked ---------------------
    # Per-chunk partial sums only over the leading axis (VPU adds); the single
    # cross-sublane reduce for the SE squeeze happens once at the end.
    se_part = jnp.zeros((wo, CP), jnp.float32)
    for c in range(ho // rchunk):
        r0 = c * rchunk
        acc = jnp.zeros((rchunk, wo, CP), jnp.float32)
        for t in range(9):                   # unrolled taps
            di, dj = t // 3, t % 3
            # TODO(synk): dj=0,2 reads are sublane-misaligned; a pltpu.roll +
            # iota-mask formulation would keep the shift on the XLU slot.
            tap = xp_ref[r0 + di:r0 + di + rchunk,
                         PADL - 1 + dj:PADL - 1 + dj + wo, :]
            acc = acc + tap * dww[t]
        y = acc * dsc + dbi
        y = y * jax.nn.sigmoid(y)            # SiLU
        se_part = se_part + jnp.sum(y, axis=0)
        yb = y.astype(jnp.bfloat16)
        for r in range(rchunk):              # dw output stays in VMEM (bf16)
            dw_ref[(r0 + r) * wo:(r0 + r + 1) * wo, :] = yb[r]

    # ---- squeeze-excite (tiny matmuls; intermediates never leave vregs) ----
    pooled = jnp.sum(se_part, axis=0, keepdims=True) * (1.0 / hw)     # (1, CP)
    g = jnp.dot(pooled.astype(jnp.bfloat16), w1_ref[...],
                preferred_element_type=jnp.float32) + b1_ref[...]
    g = g * jax.nn.sigmoid(g)                # SiLU
    gate = jax.nn.sigmoid(
        jnp.dot(g.astype(jnp.bfloat16), w2_ref[...],
                preferred_element_type=jnp.float32) + b2_ref[...])    # (1, CP)

    # ---- gate * dw -> projection + residual -> head + SiLU -> pool -> fc ---
    xg = (dw_ref[...].astype(jnp.float32) * gate).astype(jnp.bfloat16)
    y2 = jnp.dot(xg, wp_ref[...], preferred_element_type=jnp.float32)
    y2 = y2 * sp_ref[...] + bp_ref[...] + res_ref[0].astype(jnp.float32)

    h = jnp.dot(y2.astype(jnp.bfloat16), wh_ref[...],
                preferred_element_type=jnp.float32)
    h = h * sh_ref[...] + bh_ref[...]
    h = h * jax.nn.sigmoid(h)

    pooled_h = jnp.sum(h, axis=0, keepdims=True) * (1.0 / hw)         # (1, CP)
    logits = jnp.dot(pooled_h, wf_ref[...],                           # f32 fc
                     preferred_element_type=jnp.float32) + bf_ref[...]
    out_ref[0] = jnp.broadcast_to(logits, (8, CP))                    # lane-dense


def mbconv_head_fc(x_img, res_rows, p, ho, wo):
    """x_img: (N, ho, wo, CP) bf16, res_rows: (N, ho*wo, CP) bf16 -> (N, 8, CP)."""
    n = x_img.shape[0]
    hw = ho * wo
    rchunk = next(rc for rc in (4, 2, 1) if ho % rc == 0)
    wp_tot = PADL + wo + PADL                 # W extent of the halo scratch
    kernel = functools.partial(_mbconv_head_fc_kernel, ho=ho, wo=wo,
                               rchunk=rchunk)
    flops = n * (2 * 9 * hw * CP + 4 * hw * CP * CP + 6 * CP * CP)
    trans = n * (3 * hw * CP + 4 * CP)
    bytes_acc = (n * (2 * hw * CP * 2 + 8 * CP * 4)
                 + 4 * CP * CP * 2 + CP * CP * 4 + 9 * CP * 4 + 10 * CP * 4)

    # TODO(synk): at real L2 resolutions tile spatially (row bands with 1-row
    # halos) instead of one block per image, and re-derive against 64 MiB VMEM.
    return pl.pallas_call(
        kernel,
        out_shape=jax.ShapeDtypeStruct((n, 8, CP), jnp.float32),
        grid=(n,),
        in_specs=[
            pl.BlockSpec((1, ho, wo, CP), lambda i: (i, 0, 0, 0)),  # expand act
            pl.BlockSpec((1, hw, CP), lambda i: (i, 0, 0)),         # residual
            pl.BlockSpec((9, CP), lambda i: (0, 0)),                # dw taps
            pl.BlockSpec((1, CP), lambda i: (0, 0)),                # dw scale
            pl.BlockSpec((1, CP), lambda i: (0, 0)),                # dw bias
            pl.BlockSpec((CP, CP), lambda i: (0, 0)),               # se1 w
            pl.BlockSpec((1, CP), lambda i: (0, 0)),                # se1 b
            pl.BlockSpec((CP, CP), lambda i: (0, 0)),               # se2 w
            pl.BlockSpec((1, CP), lambda i: (0, 0)),                # se2 b
            pl.BlockSpec((CP, CP), lambda i: (0, 0)),               # proj w
            pl.BlockSpec((1, CP), lambda i: (0, 0)),                # proj scale
            pl.BlockSpec((1, CP), lambda i: (0, 0)),                # proj bias
            pl.BlockSpec((CP, CP), lambda i: (0, 0)),               # head w
            pl.BlockSpec((1, CP), lambda i: (0, 0)),                # head scale
            pl.BlockSpec((1, CP), lambda i: (0, 0)),                # head bias
            pl.BlockSpec((CP, CP), lambda i: (0, 0)),               # fc w (f32)
            pl.BlockSpec((1, CP), lambda i: (0, 0)),                # fc b
        ],
        out_specs=pl.BlockSpec((1, 8, CP), lambda i: (i, 0, 0)),
        scratch_shapes=[
            pltpu.VMEM((ho + 2, wp_tot, CP), jnp.float32),  # halo-padded input
            pltpu.VMEM((hw, CP), jnp.bfloat16),             # dw out, never in HBM
        ],
        compiler_params=pltpu.CompilerParams(
            dimension_semantics=("parallel",),
            vmem_limit_bytes=VMEM_LIMIT),
        cost_estimate=pl.CostEstimate(flops=flops, transcendentals=trans,
                                      bytes_accessed=bytes_acc),
    )(x_img, res_rows, p["dw_w"], p["dw_scale"], p["dw_bias"],
      p["se1_w"], p["se1_b"], p["se2_w"], p["se2_b"],
      p["proj_w"], p["proj_scale"], p["proj_bias"],
      p["head_w"], p["head_scale"], p["head_bias"],
      p["fc_w"], p["fc_b"])


# ----------------------------------------------------------------------------
# Glue: stem im2col (C_IN=3 -> tiny; padded only to 32, bf16)
# TODO(synk): at real L2 input sizes do the stem conv in-kernel with spatial
# tiling + halo reads instead of an explicit im2col slab.
# ----------------------------------------------------------------------------

def _extract_patches(x, kh, kw, stride, pad):
    N, H, W, C = x.shape
    xp = jnp.pad(x, ((0, 0), pad[0], pad[1], (0, 0)))
    Hp = H + pad[0][0] + pad[0][1]
    Wp = W + pad[1][0] + pad[1][1]
    Ho = (Hp - kh) // stride + 1
    Wo = (Wp - kw) // stride + 1
    taps = []
    for i in range(kh):
        for j in range(kw):
            taps.append(xp[:, i:i + (Ho - 1) * stride + 1:stride,
                           j:j + (Wo - 1) * stride + 1:stride, :])
    return jnp.stack(taps, axis=3), (N, Ho, Wo)


def stem_im2col(x, kh, kw, stride, pad):
    patches, (N, Ho, Wo) = _extract_patches(x, kh, kw, stride, pad)
    C = x.shape[-1]
    cols = patches.reshape(N * Ho * Wo, kh * kw * C)
    cols = jnp.pad(cols, ((0, 0), (0, K_STEM - kh * kw * C)))
    return cols.astype(jnp.bfloat16), (N, Ho, Wo)


# ----------------------------------------------------------------------------
# Parameters (synthetic, deterministic) + padding to lane-dense layout
# ----------------------------------------------------------------------------

def init_params_raw(key):
    ks = jax.random.split(key, 16)
    n = lambda k, shape, s=0.1: jax.random.normal(k, shape, jnp.float32) * s
    ones = lambda c: jnp.ones((c,), jnp.float32)
    return {
        "stem_w": n(ks[0], (3 * 3 * C_IN, C_STEM)),
        "stem_scale": ones(C_STEM), "stem_bias": n(ks[1], (C_STEM,)),
        "exp_w": n(ks[2], (C_STEM, C_EXP)),
        "exp_scale": ones(C_EXP), "exp_bias": n(ks[3], (C_EXP,)),
        "dw_w": n(ks[4], (9, C_EXP)),
        "dw_scale": ones(C_EXP), "dw_bias": n(ks[5], (C_EXP,)),
        "se1_w": n(ks[6], (C_EXP, C_SE)), "se1_b": n(ks[7], (C_SE,)),
        "se2_w": n(ks[8], (C_SE, C_EXP)), "se2_b": n(ks[9], (C_EXP,)),
        "proj_w": n(ks[10], (C_EXP, C_STEM)),
        "proj_scale": ones(C_STEM), "proj_bias": n(ks[11], (C_STEM,)),
        "head_w": n(ks[12], (C_STEM, C_HEAD)),
        "head_scale": ones(C_HEAD), "head_bias": n(ks[13], (C_HEAD,)),
        "fc_w": n(ks[14], (C_HEAD, OUT_DIM)), "fc_b": n(ks[15], (OUT_DIM,)),
    }


def _pad_mat(w, rows, cols, dtype):
    out = jnp.zeros((rows, cols), jnp.float32)
    out = out.at[:w.shape[0], :w.shape[1]].set(w)
    return out.astype(dtype)


def _pad_vec(v):
    out = jnp.zeros((1, CP), jnp.float32)
    return out.at[0, :v.shape[0]].set(v)


def _pad_dw(w):
    out = jnp.zeros((9, CP), jnp.float32)
    return out.at[:, :w.shape[1]].set(w)


def prepare_params(raw):
    """Zero-pad channel dims to CP=128 (lane-dense). Zero padding + zero biases
    keep padded channels identically zero through SiLU / SE / residual, so the
    math matches the unpadded reference."""
    bf = jnp.bfloat16
    return {
        "stem_w": _pad_mat(raw["stem_w"], K_STEM, CP, bf),
        "stem_scale": _pad_vec(raw["stem_scale"]),
        "stem_bias": _pad_vec(raw["stem_bias"]),
        "exp_w": _pad_mat(raw["exp_w"], CP, CP, bf),
        "exp_scale": _pad_vec(raw["exp_scale"]),
        "exp_bias": _pad_vec(raw["exp_bias"]),
        "dw_w": _pad_dw(raw["dw_w"]),
        "dw_scale": _pad_vec(raw["dw_scale"]),
        "dw_bias": _pad_vec(raw["dw_bias"]),
        "se1_w": _pad_mat(raw["se1_w"], CP, CP, bf), "se1_b": _pad_vec(raw["se1_b"]),
        "se2_w": _pad_mat(raw["se2_w"], CP, CP, bf), "se2_b": _pad_vec(raw["se2_b"]),
        "proj_w": _pad_mat(raw["proj_w"], CP, CP, bf),
        "proj_scale": _pad_vec(raw["proj_scale"]),
        "proj_bias": _pad_vec(raw["proj_bias"]),
        "head_w": _pad_mat(raw["head_w"], CP, CP, bf),
        "head_scale": _pad_vec(raw["head_scale"]),
        "head_bias": _pad_vec(raw["head_bias"]),
        "fc_w": _pad_mat(raw["fc_w"], CP, CP, jnp.float32),   # final fc kept f32
        "fc_b": _pad_vec(raw["fc_b"]),
    }


# ----------------------------------------------------------------------------
# Forward
# ----------------------------------------------------------------------------

@jax.jit
def effnet_forward(x_nchw, p):
    # NCHW -> NHWC; channels map to the 128-wide lane axis in every kernel.
    x = jnp.transpose(x_nchw, (0, 2, 3, 1)).astype(jnp.float32)

    # Stem 3x3 conv (stride 2, TF-SAME asymmetric pad) as matmul, fused w/ expand.
    cols, (n, ho, wo) = stem_im2col(x, 3, 3, 2, ((0, 1), (0, 1)))
    h_stem, h_exp = stem_expand(cols, p)                        # (M, CP) bf16 each

    # Fused MBConv tail + head + pool + fc, one kernel per image; dw/gate stay
    # in VMEM, no host-side halo pad.
    x_img = h_exp.reshape(n, ho, wo, CP)                        # free reshapes
    res = h_stem.reshape(n, ho * wo, CP)
    logits_pad = mbconv_head_fc(x_img, res, p, ho, wo)          # (n, 8, CP)
    return logits_pad[:, 0, :OUT_DIM]                           # (n, 3)


if __name__ == "__main__":
    key = jax.random.PRNGKey(0)
    k_x, k_p = jax.random.split(key)
    # Small deterministic NCHW input (the real model uses 3x800x800; scaled down).
    x = jax.random.normal(k_x, (2, 3, 32, 32), jnp.float32)
    params = prepare_params(init_params_raw(k_p))

    out = effnet_forward(x, params)
    out = jax.block_until_ready(out)

    assert out.shape == (2, 3), out.shape
    assert out.dtype == jnp.float32
    assert bool(jnp.all(jnp.isfinite(out)))
    print("KERNEL_OK")
</pallas_src>

<mosaic_0001>
module attributes {stable_mosaic.version = 11 : i64} {
  func.func @_stem_expand_kernel(%arg0: i32, %arg1: memref<256x32xbf16, #tpu.memory_space<vmem>>, %arg2: memref<32x128xbf16, #tpu.memory_space<vmem>>, %arg3: memref<1x128xf32, #tpu.memory_space<vmem>>, %arg4: memref<1x128xf32, #tpu.memory_space<vmem>>, %arg5: memref<128x128xbf16, #tpu.memory_space<vmem>>, %arg6: memref<1x128xf32, #tpu.memory_space<vmem>>, %arg7: memref<1x128xf32, #tpu.memory_space<vmem>>, %arg8: memref<256x128xbf16, #tpu.memory_space<vmem>>, %arg9: memref<256x128xbf16, #tpu.memory_space<vmem>>) attributes {dimension_semantics = [#tpu.dimension_semantics<parallel>], iteration_bounds = array<i64: 2>, scalar_prefetch = 0 : i64, scratch_operands = 0 : i64, tpu.core_type = #tpu.core_type<tc>, window_params = [{transform_indices = @transform_0, window_bounds = array<i64: 256, 32>}, {pipeline_mode = #tpu.pipeline_mode<synchronous>, transform_indices = @transform_1, window_bounds = array<i64: 32, 128>}, {pipeline_mode = #tpu.pipeline_mode<synchronous>, transform_indices = @transform_2, window_bounds = array<i64: 1, 128>}, {pipeline_mode = #tpu.pipeline_mode<synchronous>, transform_indices = @transform_3, window_bounds = array<i64: 1, 128>}, {pipeline_mode = #tpu.pipeline_mode<synchronous>, transform_indices = @transform_4, window_bounds = array<i64: 128, 128>}, {pipeline_mode = #tpu.pipeline_mode<synchronous>, transform_indices = @transform_5, window_bounds = array<i64: 1, 128>}, {pipeline_mode = #tpu.pipeline_mode<synchronous>, transform_indices = @transform_6, window_bounds = array<i64: 1, 128>}, {transform_indices = @transform_7, window_bounds = array<i64: 256, 128>}, {transform_indices = @transform_8, window_bounds = array<i64: 256, 128>}]} {
    %c0 = arith.constant 0 : index
    %c0_0 = arith.constant 0 : index
    %0 = vector.load %arg1[%c0, %c0_0] : memref<256x32xbf16, #tpu.memory_space<vmem>>, vector<256x32xbf16>
    %c0_1 = arith.constant 0 : index
    %c0_2 = arith.constant 0 : index
    %1 = vector.load %arg2[%c0_1, %c0_2] : memref<32x128xbf16, #tpu.memory_space<vmem>>, vector<32x128xbf16>
    %cst = arith.constant dense<0.000000e+00> : vector<256x128xf32>
    %2 = tpu.matmul %0, %1, %cst {dimension_numbers = #tpu.dot_dimension_numbers<[1], [0], [0], [1], [0, 0, 1, 1], [], []>} : vector<256x32xbf16>, vector<32x128xbf16>, vector<256x128xf32> -> vector<256x128xf32>
    %c0_3 = arith.constant 0 : index
    %c0_4 = arith.constant 0 : index
    %3 = vector.load %arg3[%c0_3, %c0_4] : memref<1x128xf32, #tpu.memory_space<vmem>>, vector<1x128xf32>
    %4 = vector.broadcast %3 : vector<1x128xf32> to vector<256x128xf32>
    %5 = arith.mulf %2, %4 : vector<256x128xf32>
    %c0_5 = arith.constant 0 : index
    %c0_6 = arith.constant 0 : index
    %6 = vector.load %arg4[%c0_5, %c0_6] : memref<1x128xf32, #tpu.memory_space<vmem>>, vector<1x128xf32>
    %7 = vector.broadcast %6 : vector<1x128xf32> to vector<256x128xf32>
    %8 = arith.addf %5, %7 : vector<256x128xf32>
    %9 = arith.negf %8 : vector<256x128xf32>
    %10 = math.exp %9 : vector<256x128xf32>
    %cst_7 = arith.constant 1.000000e+00 : f32
    %11 = vector.broadcast %cst_7 : f32 to vector<256x128xf32>
    %12 = arith.addf %11, %10 : vector<256x128xf32>
    %13 = arith.divf %11, %12 : vector<256x128xf32>
    %14 = arith.mulf %8, %13 : vector<256x128xf32>
    %15 = arith.truncf %14 : vector<256x128xf32> to vector<256x128xbf16>
    %c0_8 = arith.constant 0 : index
    %c0_9 = arith.constant 0 : index
    %16 = vector.load %arg8[%c0_8, %c0_9] : memref<256x128xbf16, #tpu.memory_space<vmem>>, vector<256x128xbf16>
    tpu.vector_store %arg8[%c0_8, %c0_9], %15 {strides = array<i32>} : memref<256x128xbf16, #tpu.memory_space<vmem>>, vector<256x128xbf16>,
    %17 = arith.truncf %14 : vector<256x128xf32> to vector<256x128xbf16>
    %c0_10 = arith.constant 0 : index
    %c0_11 = arith.constant 0 : index
    %18 = vector.load %arg5[%c0_10, %c0_11] : memref<128x128xbf16, #tpu.memory_space<vmem>>, vector<128x128xbf16>
    %cst_12 = arith.constant dense<0.000000e+00> : vector<256x128xf32>
    %19 = tpu.matmul %17, %18, %cst_12 {dimension_numbers = #tpu.dot_dimension_numbers<[1], [0], [0], [1], [0, 0, 1, 1], [], []>} : vector<256x128xbf16>, vector<128x128xbf16>, vector<256x128xf32> -> vector<256x128xf32>
    %c0_13 = arith.constant 0 : index
    %c0_14 = arith.constant 0 : index
    %20 = vector.load %arg6[%c0_13, %c0_14] : memref<1x128xf32, #tpu.memory_space<vmem>>, vector<1x128xf32>
    %21 = vector.broadcast %20 : vector<1x128xf32> to vector<256x128xf32>
    %22 = arith.mulf %19, %21 : vector<256x128xf32>
    %c0_15 = arith.constant 0 : index
    %c0_16 = arith.constant 0 : index
    %23 = vector.load %arg7[%c0_15, %c0_16] : memref<1x128xf32, #tpu.memory_space<vmem>>, vector<1x128xf32>
    %24 = vector.broadcast %23 : vector<1x128xf32> to vector<256x128xf32>
    %25 = arith.addf %22, %24 : vector<256x128xf32>
    %26 = arith.negf %25 : vector<256x128xf32>
    %27 = math.exp %26 : vector<256x128xf32>
    %cst_17 = arith.constant 1.000000e+00 : f32
    %28 = vector.broadcast %cst_17 : f32 to vector<256x128xf32>
    %29 = arith.addf %28, %27 : vector<256x128xf32>
    %30 = arith.divf %28, %29 : vector<256x128xf32>
    %31 = arith.mulf %25, %30 : vector<256x128xf32>
    %32 = arith.truncf %31 : vector<256x128xf32> to vector<256x128xbf16>
    %c0_18 = arith.constant 0 : index
    %c0_19 = arith.constant 0 : index
    %33 = vector.load %arg9[%c0_18, %c0_19] : memref<256x128xbf16, #tpu.memory_space<vmem>>, vector<256x128xbf16>
    tpu.vector_store %arg9[%c0_18, %c0_19], %32 {strides = array<i32>} : memref<256x128xbf16, #tpu.memory_space<vmem>>, vector<256x128xbf16>,
    return
  }
  func.func @transform_0(%arg0: i32) -> (i32, i32) {
    %c0_i32 = arith.constant 0 : i32
    %c0_i32_0 = arith.constant 0 : i32
    return %arg0, %c0_i32 : i32, i32
  }
  func.func @transform_1(%arg0: i32) -> (i32, i32) {
    %c0_i32 = arith.constant 0 : i32
    %c0_i32_0 = arith.constant 0 : i32
    %c0_i32_1 = arith.constant 0 : i32
    return %c0_i32, %c0_i32_0 : i32, i32
  }
  func.func @transform_2(%arg0: i32) -> (i32, i32) {
    %c0_i32 = arith.constant 0 : i32
    %c0_i32_0 = arith.constant 0 : i32
    %c0_i32_1 = arith.constant 0 : i32
    return %c0_i32, %c0_i32_0 : i32, i32
  }
  func.func @transform_3(%arg0: i32) -> (i32, i32) {
    %c0_i32 = arith.constant 0 : i32
    %c0_i32_0 = arith.constant 0 : i32
    %c0_i32_1 = arith.constant 0 : i32
    return %c0_i32, %c0_i32_0 : i32, i32
  }
  func.func @transform_4(%arg0: i32) -> (i32, i32) {
    %c0_i32 = arith.constant 0 : i32
    %c0_i32_0 = arith.constant 0 : i32
    %c0_i32_1 = arith.constant 0 : i32
    return %c0_i32, %c0_i32_0 : i32, i32
  }
  func.func @transform_5(%arg0: i32) -> (i32, i32) {
    %c0_i32 = arith.constant 0 : i32
    %c0_i32_0 = arith.constant 0 : i32
    %c0_i32_1 = arith.constant 0 : i32
    return %c0_i32, %c0_i32_0 : i32, i32
  }
  func.func @transform_6(%arg0: i32) -> (i32, i32) {
    %c0_i32 = arith.constant 0 : i32
    %c0_i32_0 = arith.constant 0 : i32
    %c0_i32_1 = arith.constant 0 : i32
    return %c0_i32, %c0_i32_0 : i32, i32
  }
  func.func @transform_7(%arg0: i32) -> (i32, i32) {
    %c0_i32 = arith.constant 0 : i32
    %c0_i32_0 = arith.constant 0 : i32
    return %arg0, %c0_i32 : i32, i32
  }
  func.func @transform_8(%arg0: i32) -> (i32, i32) {
    %c0_i32 = arith.constant 0 : i32
    %c0_i32_0 = arith.constant 0 : i32
    return %arg0, %c0_i32 : i32, i32
  }
}

module attributes {stable_mosaic.version = 11 : i64} {
  func.func @_mbconv_head_fc_kernel(%arg0: i32, %arg1: memref<1x16x16x128xbf16, #tpu.memory_space<vmem>>, %arg2: memref<1x256x128xbf16, #tpu.memory_space<vmem>>, %arg3: memref<9x128xf32, #tpu.memory_space<vmem>>, %arg4: memref<1x128xf32, #tpu.memory_space<vmem>>, %arg5: memref<1x128xf32, #tpu.memory_space<vmem>>, %arg6: memref<128x128xbf16, #tpu.memory_space<vmem>>, %arg7: memref<1x128xf32, #tpu.memory_space<vmem>>, %arg8: memref<128x128xbf16, #tpu.memory_space<vmem>>, %arg9: memref<1x128xf32, #tpu.memory_space<vmem>>, %arg10: memref<128x128xbf16, #tpu.memory_space<vmem>>, %arg11: memref<1x128xf32, #tpu.memory_space<vmem>>, %arg12: memref<1x128xf32, #tpu.memory_space<vmem>>, %arg13: memref<128x128xbf16, #tpu.memory_space<vmem>>, %arg14: memref<1x128xf32, #tpu.memory_space<vmem>>, %arg15: memref<1x128xf32, #tpu.memory_space<vmem>>, %arg16: memref<128x128xf32, #tpu.memory_space<vmem>>, %arg17: memref<1x128xf32, #tpu.memory_space<vmem>>, %arg18: memref<1x8x128xf32, #tpu.memory_space<vmem>>, %arg19: memref<18x32x128xf32, #tpu.memory_space<vmem>>, %arg20: memref<256x128xbf16, #tpu.memory_space<vmem>>) attributes {dimension_semantics = [#tpu.dimension_semantics<parallel>], iteration_bounds = array<i64: 2>, scalar_prefetch = 0 : i64, scratch_operands = 2 : i64, tpu.core_type = #tpu.core_type<tc>, window_params = [{transform_indices = @transform_0, window_bounds = array<i64: 1, 16, 16, 128>}, {transform_indices = @transform_1, window_bounds = array<i64: 1, 256, 128>}, {pipeline_mode = #tpu.pipeline_mode<synchronous>, transform_indices = @transform_2, window_bounds = array<i64: 9, 128>}, {pipeline_mode = #tpu.pipeline_mode<synchronous>, transform_indices = @transform_3, window_bounds = array<i64: 1, 128>}, {pipeline_mode = #tpu.pipeline_mode<synchronous>, transform_indices = @transform_4, window_bounds = array<i64: 1, 128>}, {pipeline_mode = #tpu.pipeline_mode<synchronous>, transform_indices = @transform_5, window_bounds = array<i64: 128, 128>}, {pipeline_mode = #tpu.pipeline_mode<synchronous>, transform_indices = @transform_6, window_bounds = array<i64: 1, 128>}, {pipeline_mode = #tpu.pipeline_mode<synchronous>, transform_indices = @transform_7, window_bounds = array<i64: 128, 128>}, {pipeline_mode = #tpu.pipeline_mode<synchronous>, transform_indices = @transform_8, window_bounds = array<i64: 1, 128>}, {pipeline_mode = #tpu.pipeline_mode<synchronous>, transform_indices = @transform_9, window_bounds = array<i64: 128, 128>}, {pipeline_mode = #tpu.pipeline_mode<synchronous>, transform_indices = @transform_10, window_bounds = array<i64: 1, 128>}, {pipeline_mode = #tpu.pipeline_mode<synchronous>, transform_indices = @transform_11, window_bounds = array<i64: 1, 128>}, {pipeline_mode = #tpu.pipeline_mode<synchronous>, transform_indices = @transform_12, window_bounds = array<i64: 128, 128>}, {pipeline_mode = #tpu.pipeline_mode<synchronous>, transform_indices = @transform_13, window_bounds = array<i64: 1, 128>}, {pipeline_mode = #tpu.pipeline_mode<synchronous>, transform_indices = @transform_14, window_bounds = array<i64: 1, 128>}, {pipeline_mode = #tpu.pipeline_mode<synchronous>, transform_indices = @transform_15, window_bounds = array<i64: 128, 128>}, {pipeline_mode = #tpu.pipeline_mode<synchronous>, transform_indices = @transform_16, window_bounds = array<i64: 1, 128>}, {transform_indices = @transform_17, window_bounds = array<i64: 1, 8, 128>}]} {
    %cst = arith.constant 0.000000e+00 : f32
    %0 = vector.broadcast %cst : f32 to vector<18x32x128xf32>
    %c0 = arith.constant 0 : index
    %c0_0 = arith.constant 0 : index
    %c0_1 = arith.constant 0 : index
    %1 = vector.load %arg19[%c0, %c0_0, %c0_1] : memref<18x32x128xf32, #tpu.memory_space<vmem>>, vector<18x32x128xf32>
    tpu.vector_store %arg19[%c0, %c0_0, %c0_1], %0 {strides = array<i32>} : memref<18x32x128xf32, #tpu.memory_space<vmem>>, vector<18x32x128xf32>,
    %c0_2 = arith.constant 0 : index
    %c0_3 = arith.constant 0 : index
    %c0_4 = arith.constant 0 : index
    %c0_5 = arith.constant 0 : index
    %2 = vector.load %arg1[%c0_2, %c0_3, %c0_4, %c0_5] : memref<1x16x16x128xbf16, #tpu.memory_space<vmem>>, vector<1x16x16x128xbf16>
    %3 = vector.shape_cast %2 : vector<1x16x16x128xbf16> to vector<16x16x128xbf16>
    %4 = arith.extf %3 : vector<16x16x128xbf16> to vector<16x16x128xf32>
    %c1 = arith.constant 1 : index
    %c8 = arith.constant 8 : index
    %c0_6 = arith.constant 0 : index
    %5 = vector.load %arg19[%c1, %c8, %c0_6] : memref<18x32x128xf32, #tpu.memory_space<vmem>>, vector<16x16x128xf32>
    tpu.vector_store %arg19[%c1, %c8, %c0_6], %4 {strides = array<i32>} : memref<18x32x128xf32, #tpu.memory_space<vmem>>, vector<16x16x128xf32>,
    %c0_7 = arith.constant 0 : index
    %c0_8 = arith.constant 0 : index
    %6 = vector.load %arg3[%c0_7, %c0_8] : memref<9x128xf32, #tpu.memory_space<vmem>>, vector<9x128xf32>
    %c0_9 = arith.constant 0 : index
    %c0_10 = arith.constant 0 : index
    %7 = vector.load %arg4[%c0_9, %c0_10] : memref<1x128xf32, #tpu.memory_space<vmem>>, vector<1x128xf32>
    %8 = vector.shape_cast %7 : vector<1x128xf32> to vector<128xf32>
    %c0_11 = arith.constant 0 : index
    %c0_12 = arith.constant 0 : index
    %9 = vector.load %arg5[%c0_11, %c0_12] : memref<1x128xf32, #tpu.memory_space<vmem>>, vector<1x128xf32>
    %10 = vector.shape_cast %9 : vector<1x128xf32> to vector<128xf32>
    %cst_13 = arith.constant 0.000000e+00 : f32
    %11 = vector.broadcast %cst_13 : f32 to vector<16x128xf32>
    %cst_14 = arith.constant 0.000000e+00 : f32
    %12 = vector.broadcast %cst_14 : f32 to vector<4x16x128xf32>
    %c0_15 = arith.constant 0 : index
    %c7 = arith.constant 7 : index
    %c0_16 = arith.constant 0 : index
    %13 = vector.load %arg19[%c0_15, %c7, %c0_16] : memref<18x32x128xf32, #tpu.memory_space<vmem>>, vector<4x16x128xf32>
    %14 = vector.extract_strided_slice %6 {offsets = [0, 0], sizes = [1, 128], strides = [1, 1]} : vector<9x128xf32> to vector<1x128xf32>
    %15 = vector.shape_cast %14 : vector<1x128xf32> to vector<128xf32>
    %16 = vector.shape_cast %15 : vector<128xf32> to vector<1x1x128xf32>
    %17 = vector.broadcast %16 : vector<1x1x128xf32> to vector<4x16x128xf32>
    %18 = arith.mulf %13, %17 : vector<4x16x128xf32>
    %19 = arith.addf %12, %18 : vector<4x16x128xf32>
    %c0_17 = arith.constant 0 : index
    %c8_18 = arith.constant 8 : index
    %c0_19 = arith.constant 0 : index
    %20 = vector.load %arg19[%c0_17, %c8_18, %c0_19] : memref<18x32x128xf32, #tpu.memory_space<vmem>>, vector<4x16x128xf32>
    %21 = vector.extract_strided_slice %6 {offsets = [1, 0], sizes = [1, 128], strides = [1, 1]} : vector<9x128xf32> to vector<1x128xf32>
    %22 = vector.shape_cast %21 : vector<1x128xf32> to vector<128xf32>
    %23 = vector.shape_cast %22 : vector<128xf32> to vector<1x1x128xf32>
    %24 = vector.broadcast %23 : vector<1x1x128xf32> to vector<4x16x128xf32>
    %25 = arith.mulf %20, %24 : vector<4x16x128xf32>
    %26 = arith.addf %19, %25 : vector<4x16x128xf32>
    %c0_20 = arith.constant 0 : index
    %c9 = arith.constant 9 : index
    %c0_21 = arith.constant 0 : index
    %27 = vector.load %arg19[%c0_20, %c9, %c0_21] : memref<18x32x128xf32, #tpu.memory_space<vmem>>, vector<4x16x128xf32>
    %28 = vector.extract_strided_slice %6 {offsets = [2, 0], sizes = [1, 128], strides = [1, 1]} : vector<9x128xf32> to vector<1x128xf32>
    %29 = vector.shape_cast %28 : vector<1x128xf32> to vector<128xf32>
    %30 = vector.shape_cast %29 : vector<128xf32> to vector<1x1x128xf32>
    %31 = vector.broadcast %30 : vector<1x1x128xf32> to vector<4x16x128xf32>
    %32 = arith.mulf %27, %31 : vector<4x16x128xf32>
    %33 = arith.addf %26, %32 : vector<4x16x128xf32>
    %c1_22 = arith.constant 1 : index
    %c7_23 = arith.constant 7 : index
    %c0_24 = arith.constant 0 : index
    %34 = vector.load %arg19[%c1_22, %c7_23, %c0_24] : memref<18x32x128xf32, #tpu.memory_space<vmem>>, vector<4x16x128xf32>
    %35 = vector.extract_strided_slice %6 {offsets = [3, 0], sizes = [1, 128], strides = [1, 1]} : vector<9x128xf32> to vector<1x128xf32>
    %36 = vector.shape_cast %35 : vector<1x128xf32> to vector<128xf32>
    %37 = vector.shape_cast %36 : vector<128xf32> to vector<1x1x128xf32>
    %38 = vector.broadcast %37 : vector<1x1x128xf32> to vector<4x16x128xf32>
    %39 = arith.mulf %34, %38 : vector<4x16x128xf32>
    %40 = arith.addf %33, %39 : vector<4x16x128xf32>
    %c1_25 = arith.constant 1 : index
    %c8_26 = arith.constant 8 : index
    %c0_27 = arith.constant 0 : index
    %41 = vector.load %arg19[%c1_25, %c8_26, %c0_27] : memref<18x32x128xf32, #tpu.memory_space<vmem>>, vector<4x16x128xf32>
    %42 = vector.extract_strided_slice %6 {offsets = [4, 0], sizes = [1, 128], strides = [1, 1]} : vector<9x128xf32> to vector<1x128xf32>
    %43 = vector.shape_cast %42 : vector<1x128xf32> to vector<128xf32>
    %44 = vector.shape_cast %43 : vector<128xf32> to vector<1x1x128xf32>
    %45 = vector.broadcast %44 : vector<1x1x128xf32> to vector<4x16x128xf32>
    %46 = arith.mulf %41, %45 : vector<4x16x128xf32>
    %47 = arith.addf %40, %46 : vector<4x16x128xf32>
    %c1_28 = arith.constant 1 : index
    %c9_29 = arith.constant 9 : index
    %c0_30 = arith.constant 0 : index
    %48 = vector.load %arg19[%c1_28, %c9_29, %c0_30] : memref<18x32x128xf32, #tpu.memory_space<vmem>>, vector<4x16x128xf32>
    %49 = vector.extract_strided_slice %6 {offsets = [5, 0], sizes = [1, 128], strides = [1, 1]} : vector<9x128xf32> to vector<1x128xf32>
    %50 = vector.shape_cast %49 : vector<1x128xf32> to vector<128xf32>
    %51 = vector.shape_cast %50 : vector<128xf32> to vector<1x1x128xf32>
    %52 = vector.broadcast %51 : vector<1x1x128xf32> to vector<4x16x128xf32>
    %53 = arith.mulf %48, %52 : vector<4x16x128xf32>
    %54 = arith.addf %47, %53 : vector<4x16x128xf32>
    %c2 = arith.constant 2 : index
    %c7_31 = arith.constant 7 : index
    %c0_32 = arith.constant 0 : index
    %55 = vector.load %arg19[%c2, %c7_31, %c0_32] : memref<18x32x128xf32, #tpu.memory_space<vmem>>, vector<4x16x128xf32>
    %56 = vector.extract_strided_slice %6 {offsets = [6, 0], sizes = [1, 128], strides = [1, 1]} : vector<9x128xf32> to vector<1x128xf32>
    %57 = vector.shape_cast %56 : vector<1x128xf32> to vector<128xf32>
    %58 = vector.shape_cast %57 : vector<128xf32> to vector<1x1x128xf32>
    %59 = vector.broadcast %58 : vector<1x1x128xf32> to vector<4x16x128xf32>
    %60 = arith.mulf %55, %59 : vector<4x16x128xf32>
    %61 = arith.addf %54, %60 : vector<4x16x128xf32>
    %c2_33 = arith.constant 2 : index
    %c8_34 = arith.constant 8 : index
    %c0_35 = arith.constant 0 : index
    %62 = vector.load %arg19[%c2_33, %c8_34, %c0_35] : memref<18x32x128xf32, #tpu.memory_space<vmem>>, vector<4x16x128xf32>
    %63 = vector.extract_strided_slice %6 {offsets = [7, 0], sizes = [1, 128], strides = [1, 1]} : vector<9x128xf32> to vector<1x128xf32>
    %64 = vector.shape_cast %63 : vector<1x128xf32> to vector<128xf32>
    %65 = vector.shape_cast %64 : vector<128xf32> to vector<1x1x128xf32>
    %66 = vector.broadcast %65 : vector<1x1x128xf32> to vector<4x16x128xf32>
    %67 = arith.mulf %62, %66 : vector<4x16x128xf32>
    %68 = arith.addf %61, %67 : vector<4x16x128xf32>
    %c2_36 = arith.constant 2 : index
    %c9_37 = arith.constant 9 : index
    %c0_38 = arith.constant 0 : index
    %69 = vector.load %arg19[%c2_36, %c9_37, %c0_38] : memref<18x32x128xf32, #tpu.memory_space<vmem>>, vector<4x16x128xf32>
    %70 = vector.extract_strided_slice %6 {offsets = [8, 0], sizes = [1, 128], strides = [1, 1]} : vector<9x128xf32> to vector<1x128xf32>
    %71 = vector.shape_cast %70 : vector<1x128xf32> to vector<128xf32>
    %72 = vector.shape_cast %71 : vector<128xf32> to vector<1x1x128xf32>
    %73 = vector.broadcast %72 : vector<1x1x128xf32> to vector<4x16x128xf32>
    %74 = arith.mulf %69, %73 : vector<4x16x128xf32>
    %75 = arith.addf %68, %74 : vector<4x16x128xf32>
    %76 = vector.shape_cast %8 : vector<128xf32> to vector<1x1x128xf32>
    %77 = vector.broadcast %76 : vector<1x1x128xf32> to vector<4x16x128xf32>
    %78 = arith.mulf %75, %77 : vector<4x16x128xf32>
    %79 = vector.shape_cast %10 : vector<128xf32> to vector<1x1x128xf32>
    %80 = vector.broadcast %79 : vector<1x1x128xf32> to vector<4x16x128xf32>
    %81 = arith.addf %78, %80 : vector<4x16x128xf32>
    %82 = arith.negf %81 : vector<4x16x128xf32>
    %83 = math.exp %82 : vector<4x16x128xf32>
    %cst_39 = arith.constant 1.000000e+00 : f32
    %84 = vector.broadcast %cst_39 : f32 to vector<4x16x128xf32>
    %85 = arith.addf %84, %83 : vector<4x16x128xf32>
    %86 = arith.divf %84, %85 : vector<4x16x128xf32>
    %87 = arith.mulf %81, %86 : vector<4x16x128xf32>
    %cst_40 = arith.constant dense<0.000000e+00> : vector<16x128xf32>
    %88 = vector.multi_reduction <add>, %87, %cst_40 [0] : vector<4x16x128xf32> to vector<16x128xf32>
    %89 = arith.addf %11, %88 : vector<16x128xf32>
    %90 = arith.truncf %87 : vector<4x16x128xf32> to vector<4x16x128xbf16>
    %91 = vector.extract_strided_slice %90 {offsets = [0, 0, 0], sizes = [1, 16, 128], strides = [1, 1, 1]} : vector<4x16x128xbf16> to vector<1x16x128xbf16>
    %92 = vector.shape_cast %91 : vector<1x16x128xbf16> to vector<16x128xbf16>
    %c0_41 = arith.constant 0 : index
    %c0_42 = arith.constant 0 : index
    %93 = vector.load %arg20[%c0_41, %c0_42] : memref<256x128xbf16, #tpu.memory_space<vmem>>, vector<16x128xbf16>
    tpu.vector_store %arg20[%c0_41, %c0_42], %92 {strides = array<i32>} : memref<256x128xbf16, #tpu.memory_space<vmem>>, vector<16x128xbf16>,
    %94 = vector.extract_strided_slice %90 {offsets = [1, 0, 0], sizes = [1, 16, 128], strides = [1, 1, 1]} : vector<4x16x128xbf16> to vector<1x16x128xbf16>
    %95 = vector.shape_cast %94 : vector<1x16x128xbf16> to vector<16x128xbf16>
    %c16 = arith.constant 16 : index
    %c0_43 = arith.constant 0 : index
    %96 = vector.load %arg20[%c16, %c0_43] : memref<256x128xbf16, #tpu.memory_space<vmem>>, vector<16x128xbf16>
    tpu.vector_store %arg20[%c16, %c0_43], %95 {strides = array<i32>} : memref<256x128xbf16, #tpu.memory_space<vmem>>, vector<16x128xbf16>,
    %97 = vector.extract_strided_slice %90 {offsets = [2, 0, 0], sizes = [1, 16, 128], strides = [1, 1, 1]} : vector<4x16x128xbf16> to vector<1x16x128xbf16>
    %98 = vector.shape_cast %97 : vector<1x16x128xbf16> to vector<16x128xbf16>
    %c32 = arith.constant 32 : index
    %c0_44 = arith.constant 0 : index
    %99 = vector.load %arg20[%c32, %c0_44] : memref<256x128xbf16, #tpu.memory_space<vmem>>, vector<16x128xbf16>
    tpu.vector_store %arg20[%c32, %c0_44], %98 {strides = array<i32>} : memref<256x128xbf16, #tpu.memory_space<vmem>>, vector<16x128xbf16>,
    %100 = vector.extract_strided_slice %90 {offsets = [3, 0, 0], sizes = [1, 16, 128], strides = [1, 1, 1]} : vector<4x16x128xbf16> to vector<1x16x128xbf16>
    %101 = vector.shape_cast %100 : vector<1x16x128xbf16> to vector<16x128xbf16>
    %c48 = arith.constant 48 : index
    %c0_45 = arith.constant 0 : index
    %102 = vector.load %arg20[%c48, %c0_45] : memref<256x128xbf16, #tpu.memory_space<vmem>>, vector<16x128xbf16>
    tpu.vector_store %arg20[%c48, %c0_45], %101 {strides = array<i32>} : memref<256x128xbf16, #tpu.memory_space<vmem>>, vector<16x128xbf16>,
    %cst_46 = arith.constant 0.000000e+00 : f32
    %103 = vector.broadcast %cst_46 : f32 to vector<4x16x128xf32>
    %c4 = arith.constant 4 : index
    %c7_47 = arith.constant 7 : index
    %c0_48 = arith.constant 0 : index
    %104 = vector.load %arg19[%c4, %c7_47, %c0_48] : memref<18x32x128xf32, #tpu.memory_space<vmem>>, vector<4x16x128xf32>
    %105 = vector.extract_strided_slice %6 {offsets = [0, 0], sizes = [1, 128], strides = [1, 1]} : vector<9x128xf32> to vector<1x128xf32>
    %106 = vector.shape_cast %105 : vector<1x128xf32> to vector<128xf32>
    %107 = vector.shape_cast %106 : vector<128xf32> to vector<1x1x128xf32>
    %108 = vector.broadcast %107 : vector<1x1x128xf32> to vector<4x16x128xf32>
    %109 = arith.mulf %104, %108 : vector<4x16x128xf32>
    %110 = arith.addf %103, %109 : vector<4x16x128xf32>
    %c4_49 = arith.constant 4 : index
    %c8_50 = arith.constant 8 : index
    %c0_51 = arith.constant 0 : index
    %111 = vector.load %arg19[%c4_49, %c8_50, %c0_51] : memref<18x32x128xf32, #tpu.memory_space<vmem>>, vector<4x16x128xf32>
    %112 = vector.extract_strided_slice %6 {offsets = [1, 0], sizes = [1, 128], strides = [1, 1]} : vector<9x128xf32> to vector<1x128xf32>
    %113 = vector.shape_cast %112 : vector<1x128xf32> to vector<128xf32>
    %114 = vector.shape_cast %113 : vector<128xf32> to vector<1x1x128xf32>
    %115 = vector.broadcast %114 : vector<1x1x128xf32> to vector<4x16x128xf32>
    %116 = arith.mulf %111, %115 : vector<4x16x128xf32>
    %117 = arith.addf %110, %116 : vector<4x16x128xf32>
    %c4_52 = arith.constant 4 : index
    %c9_53 = arith.constant 9 : index
    %c0_54 = arith.constant 0 : index
    %118 = vector.load %arg19[%c4_52, %c9_53, %c0_54] : memref<18x32x128xf32, #tpu.memory_space<vmem>>, vector<4x16x128xf32>
    %119 = vector.extract_strided_slice %6 {offsets = [2, 0], sizes = [1, 128], strides = [1, 1]} : vector<9x128xf32> to vector<1x128xf32>
    %120 = vector.shape_cast %119 : vector<1x128xf32> to vector<128xf32>
    %121 = vector.shape_cast %120 : vector<128xf32> to vector<1x1x128xf32>
    %122 = vector.broadcast %121 : vector<1x1x128xf32> to vector<4x16x128xf32>
    %123 = arith.mulf %118, %122 : vector<4x16x128xf32>
    %124 = arith.addf %117, %123 : vector<4x16x128xf32>
    %c5 = arith.constant 5 : index
    %c7_55 = arith.constant 7 : index
    %c0_56 = arith.constant 0 : index
    %125 = vector.load %arg19[%c5, %c7_55, %c0_56] : memref<18x32x128xf32, #tpu.memory_space<vmem>>, vector<4x16x128xf32>
    %126 = vector.extract_strided_slice %6 {offsets = [3, 0], sizes = [1, 128], strides = [1, 1]} : vector<9x128xf32> to vector<1x128xf32>
    %127 = vector.shape_cast %126 : vector<1x128xf32> to vector<128xf32>
    %128 = vector.shape_cast %127 : vector<128xf32> to vector<1x1x128xf32>
    %129 = vector.broadcast %128 : vector<1x1x128xf32> to vector<4x16x128xf32>
    %130 = arith.mulf %125, %129 : vector<4x16x128xf32>
    %131 = arith.addf %124, %130 : vector<4x16x128xf32>
    %c5_57 = arith.constant 5 : index
    %c8_58 = arith.constant 8 : index
    %c0_59 = arith.constant 0 : index
    %132 = vector.load %arg19[%c5_57, %c8_58, %c0_59] : memref<18x32x128xf32, #tpu.memory_space<vmem>>, vector<4x16x128xf32>
    %133 = vector.extract_strided_slice %6 {offsets = [4, 0], sizes = [1, 128], strides = [1, 1]} : vector<9x128xf32> to vector<1x128xf32>
    %134 = vector.shape_cast %133 : vector<1x128xf32> to vector<128xf32>
    %135 = vector.shape_cast %134 : vector<128xf32> to vector<1x1x128xf32>
    %136 = vector.broadcast %135 : vector<1x1x128xf32> to vector<4x16x128xf32>
    %137 = arith.mulf %132, %136 : vector<4x16x128xf32>
    %138 = arith.addf %131, %137 : vector<4x16x128xf32>
    %c5_60 = arith.constant 5 : index
    %c9_61 = arith.constant 9 : index
    %c0_62 = arith.constant 0 : index
    %139 = vector.load %arg19[%c5_60, %c9_61, %c0_62] : memref<18x32x128xf32, #tpu.memory_space<vmem>>, vector<4x16x128xf32>
    %140 = vector.extract_strided_slice %6 {offsets = [5, 0], sizes = [1, 128], strides = [1, 1]} : vector<9x128xf32> to vector<1x128xf32>
    %141 = vector.shape_cast %140 : vector<1x128xf32> to vector<128xf32>
    %142 = vector.shape_cast %141 : vector<128xf32> to vector<1x1x128xf32>
    %143 = vector.broadcast %142 : vector<1x1x128xf32> to vector<4x16x128xf32>
    %144 = arith.mulf %139, %143 : vector<4x16x128xf32>
    %145 = arith.addf %138, %144 : vector<4x16x128xf32>
    %c6 = arith.constant 6 : index
    %c7_63 = arith.constant 7 : index
    %c0_64 = arith.constant 0 : index
    %146 = vector.load %arg19[%c6, %c7_63, %c0_64] : memref<18x32x128xf32, #tpu.memory_space<vmem>>, vector<4x16x128xf32>
    %147 = vector.extract_strided_slice %6 {offsets = [6, 0], sizes = [1, 128], strides = [1, 1]} : vector<9x128xf32> to vector<1x128xf32>
    %148 = vector.shape_cast %147 : vector<1x128xf32> to vector<128xf32>
    %149 = vector.shape_cast %148 : vector<128xf32> to vector<1x1x128xf32>
    %150 = vector.broadcast %149 : vector<1x1x128xf32> to vector<4x16x128xf32>
    %151 = arith.mulf %146, %150 : vector<4x16x128xf32>
    %152 = arith.addf %145, %151 : vector<4x16x128xf32>
    %c6_65 = arith.constant 6 : index
    %c8_66 = arith.constant 8 : index
    %c0_67 = arith.constant 0 : index
    %153 = vector.load %arg19[%c6_65, %c8_66, %c0_67] : memref<18x32x128xf32, #tpu.memory_space<vmem>>, vector<4x16x128xf32>
    %154 = vector.extract_strided_slice %6 {offsets = [7, 0], sizes = [1, 128], strides = [1, 1]} : vector<9x128xf32> to vector<1x128xf32>
    %155 = vector.shape_cast %154 : vector<1x128xf32> to vector<128xf32>
    %156 = vector.shape_cast %155 : vector<128xf32> to vector<1x1x128xf32>
    %157 = vector.broadcast %156 : vector<1x1x128xf32> to vector<4x16x128xf32>
    %158 = arith.mulf %153, %157 : vector<4x16x128xf32>
    %159 = arith.addf %152, %158 : vector<4x16x128xf32>
    %c6_68 = arith.constant 6 : index
    %c9_69 = arith.constant 9 : index
    %c0_70 = arith.constant 0 : index
    %160 = vector.load %arg19[%c6_68, %c9_69, %c0_70] : memref<18x32x128xf32, #tpu.memory_space<vmem>>, vector<4x16x128xf32>
    %161 = vector.extract_strided_slice %6 {offsets = [8, 0], sizes = [1, 128], strides = [1, 1]} : vector<9x128xf32> to vector<1x128xf32>
    %162 = vector.shape_cast %161 : vector<1x128xf32> to vector<128xf32>
    %163 = vector.shape_cast %162 : vector<128xf32> to vector<1x1x128xf32>
    %164 = vector.broadcast %163 : vector<1x1x128xf32> to vector<4x16x128xf32>
    %165 = arith.mulf %160, %164 : vector<4x16x128xf32>
    %166 = arith.addf %159, %165 : vector<4x16x128xf32>
    %167 = vector.shape_cast %8 : vector<128xf32> to vector<1x1x128xf32>
    %168 = vector.broadcast %167 : vector<1x1x128xf32> to vector<4x16x128xf32>
    %169 = arith.mulf %166, %168 : vector<4x16x128xf32>
    %170 = vector.shape_cast %10 : vector<128xf32> to vector<1x1x128xf32>
    %171 = vector.broadcast %170 : vector<1x1x128xf32> to vector<4x16x128xf32>
    %172 = arith.addf %169, %171 : vector<4x16x128xf32>
    %173 = arith.negf %172 : vector<4x16x128xf32>
    %174 = math.exp %173 : vector<4x16x128xf32>
    %cst_71 = arith.constant 1.000000e+00 : f32
    %175 = vector.broadcast %cst_71 : f32 to vector<4x16x128xf32>
    %176 = arith.addf %175, %174 : vector<4x16x128xf32>
    %177 = arith.divf %175, %176 : vector<4x16x128xf32>
    %178 = arith.mulf %172, %177 : vector<4x16x128xf32>
    %cst_72 = arith.constant dense<0.000000e+00> : vector<16x128xf32>
    %179 = vector.multi_reduction <add>, %178, %cst_72 [0] : vector<4x16x128xf32> to vector<16x128xf32>
    %180 = arith.addf %89, %179 : vector<16x128xf32>
    %181 = arith.truncf %178 : vector<4x16x128xf32> to vector<4x16x128xbf16>
    %182 = vector.extract_strided_slice %181 {offsets = [0, 0, 0], sizes = [1, 16, 128], strides = [1, 1, 1]} : vector<4x16x128xbf16> to vector<1x16x128xbf16>
    %183 = vector.shape_cast %182 : vector<1x16x128xbf16> to vector<16x128xbf16>
    %c64 = arith.constant 64 : index
    %c0_73 = arith.constant 0 : index
    %184 = vector.load %arg20[%c64, %c0_73] : memref<256x128xbf16, #tpu.memory_space<vmem>>, vector<16x128xbf16>
    tpu.vector_store %arg20[%c64, %c0_73], %183 {strides = array<i32>} : memref<256x128xbf16, #tpu.memory_space<vmem>>, vector<16x128xbf16>,
    %185 = vector.extract_strided_slice %181 {offsets = [1, 0, 0], sizes = [1, 16, 128], strides = [1, 1, 1]} : vector<4x16x128xbf16> to vector<1x16x128xbf16>
    %186 = vector.shape_cast %185 : vector<1x16x128xbf16> to vector<16x128xbf16>
    %c80 = arith.constant 80 : index
    %c0_74 = arith.constant 0 : index
    %187 = vector.load %arg20[%c80, %c0_74] : memref<256x128xbf16, #tpu.memory_space<vmem>>, vector<16x128xbf16>
    tpu.vector_store %arg20[%c80, %c0_74], %186 {strides = array<i32>} : memref<256x128xbf16, #tpu.memory_space<vmem>>, vector<16x128xbf16>,
    %188 = vector.extract_strided_slice %181 {offsets = [2, 0, 0], sizes = [1, 16, 128], strides = [1, 1, 1]} : vector<4x16x128xbf16> to vector<1x16x128xbf16>
    %189 = vector.shape_cast %188 : vector<1x16x128xbf16> to vector<16x128xbf16>
    %c96 = arith.constant 96 : index
    %c0_75 = arith.constant 0 : index
    %190 = vector.load %arg20[%c96, %c0_75] : memref<256x128xbf16, #tpu.memory_space<vmem>>, vector<16x128xbf16>
    tpu.vector_store %arg20[%c96, %c0_75], %189 {strides = array<i32>} : memref<256x128xbf16, #tpu.memory_space<vmem>>, vector<16x128xbf16>,
    %191 = vector.extract_strided_slice %181 {offsets = [3, 0, 0], sizes = [1, 16, 128], strides = [1, 1, 1]} : vector<4x16x128xbf16> to vector<1x16x128xbf16>
    %192 = vector.shape_cast %191 : vector<1x16x128xbf16> to vector<16x128xbf16>
    %c112 = arith.constant 112 : index
    %c0_76 = arith.constant 0 : index
    %193 = vector.load %arg20[%c112, %c0_76] : memref<256x128xbf16, #tpu.memory_space<vmem>>, vector<16x128xbf16>
    tpu.vector_store %arg20[%c112, %c0_76], %192 {strides = array<i32>} : memref<256x128xbf16, #tpu.memory_space<vmem>>, vector<16x128xbf16>,
    %cst_77 = arith.constant 0.000000e+00 : f32
    %194 = vector.broadcast %cst_77 : f32 to vector<4x16x128xf32>
    %c8_78 = arith.constant 8 : index
    %c7_79 = arith.constant 7 : index
    %c0_80 = arith.constant 0 : index
    %195 = vector.load %arg19[%c8_78, %c7_79, %c0_80] : memref<18x32x128xf32, #tpu.memory_space<vmem>>, vector<4x16x128xf32>
    %196 = vector.extract_strided_slice %6 {offsets = [0, 0], sizes = [1, 128], strides = [1, 1]} : vector<9x128xf32> to vector<1x128xf32>
    %197 = vector.shape_cast %196 : vector<1x128xf32> to vector<128xf32>
    %198 = vector.shape_cast %197 : vector<128xf32> to vector<1x1x128xf32>
    %199 = vector.broadcast %198 : vector<1x1x128xf32> to vector<4x16x128xf32>
    %200 = arith.mulf %195, %199 : vector<4x16x128xf32>
    %201 = arith.addf %194, %200 : vector<4x16x128xf32>
    %c8_81 = arith.constant 8 : index
    %c8_82 = arith.constant 8 : index
    %c0_83 = arith.constant 0 : index
    %202 = vector.load %arg19[%c8_81, %c8_82, %c0_83] : memref<18x32x128xf32, #tpu.memory_space<vmem>>, vector<4x16x128xf32>
    %203 = vector.extract_strided_slice %6 {offsets = [1, 0], sizes = [1, 128], strides = [1, 1]} : vector<9x128xf32> to vector<1x128xf32>
    %204 = vector.shape_cast %203 : vector<1x128xf32> to vector<128xf32>
    %205 = vector.shape_cast %204 : vector<128xf32> to vector<1x1x128xf32>
    %206 = vector.broadcast %205 : vector<1x1x128xf32> to vector<4x16x128xf32>
    %207 = arith.mulf %202, %206 : vector<4x16x128xf32>
    %208 = arith.addf %201, %207 : vector<4x16x128xf32>
    %c8_84 = arith.constant 8 : index
    %c9_85 = arith.constant 9 : index
    %c0_86 = arith.constant 0 : index
    %209 = vector.load %arg19[%c8_84, %c9_85, %c0_86] : memref<18x32x128xf32, #tpu.memory_space<vmem>>, vector<4x16x128xf32>
    %210 = vector.extract_strided_slice %6 {offsets = [2, 0], sizes = [1, 128], strides = [1, 1]} : vector<9x128xf32> to vector<1x128xf32>
    %211 = vector.shape_cast %210 : vector<1x128xf32> to vector<128xf32>
    %212 = vector.shape_cast %211 : vector<128xf32> to vector<1x1x128xf32>
    %213 = vector.broadcast %212 : vector<1x1x128xf32> to vector<4x16x128xf32>
    %214 = arith.mulf %209, %213 : vector<4x16x128xf32>
    %215 = arith.addf %208, %214 : vector<4x16x128xf32>
    %c9_87 = arith.constant 9 : index
    %c7_88 = arith.constant 7 : index
    %c0_89 = arith.constant 0 : index
    %216 = vector.load %arg19[%c9_87, %c7_88, %c0_89] : memref<18x32x128xf32, #tpu.memory_space<vmem>>, vector<4x16x128xf32>
    %217 = vector.extract_strided_slice %6 {offsets = [3, 0], sizes = [1, 128], strides = [1, 1]} : vector<9x128xf32> to vector<1x128xf32>
    %218 = vector.shape_cast %217 : vector<1x128xf32> to vector<128xf32>
    %219 = vector.shape_cast %218 : vector<128xf32> to vector<1x1x128xf32>
    %220 = vector.broadcast %219 : vector<1x1x128xf32> to vector<4x16x128xf32>
    %221 = arith.mulf %216, %220 : vector<4x16x128xf32>
    %222 = arith.addf %215, %221 : vector<4x16x128xf32>
    %c9_90 = arith.constant 9 : index
    %c8_91 = arith.constant 8 : index
    %c0_92 = arith.constant 0 : index
    %223 = vector.load %arg19[%c9_90, %c8_91, %c0_92] : memref<18x32x128xf32, #tpu.memory_space<vmem>>, vector<4x16x128xf32>
    %224 = vector.extract_strided_slice %6 {offsets = [4, 0], sizes = [1, 128], strides = [1, 1]} : vector<9x128xf32> to vector<1x128xf32>
    %225 = vector.shape_cast %224 : vector<1x128xf32> to vector<128xf32>
    %226 = vector.shape_cast %225 : vector<128xf32> to vector<1x1x128xf32>
    %227 = vector.broadcast %226 : vector<1x1x128xf32> to vector<4x16x128xf32>
    %228 = arith.mulf %223, %227 : vector<4x16x128xf32>
    %229 = arith.addf %222, %228 : vector<4x16x128xf32>
    %c9_93 = arith.constant 9 : index
    %c9_94 = arith.constant 9 : index
    %c0_95 = arith.constant 0 : index
    %230 = vector.load %arg19[%c9_93, %c9_94, %c0_95] : memref<18x32x128xf32, #tpu.memory_space<vmem>>, vector<4x16x128xf32>
    %231 = vector.extract_strided_slice %6 {offsets = [5, 0], sizes = [1, 128], strides = [1, 1]} : vector<9x128xf32> to vector<1x128xf32>
    %232 = vector.shape_cast %231 : vector<1x128xf32> to vector<128xf32>
    %233 = vector.shape_cast %232 : vector<128xf32> to vector<1x1x128xf32>
    %234 = vector.broadcast %233 : vector<1x1x128xf32> to vector<4x16x128xf32>
    %235 = arith.mulf %230, %234 : vector<4x16x128xf32>
    %236 = arith.addf %229, %235 : vector<4x16x128xf32>
    %c10 = arith.constant 10 : index
    %c7_96 = arith.constant 7 : index
    %c0_97 = arith.constant 0 : index
    %237 = vector.load %arg19[%c10, %c7_96, %c0_97] : memref<18x32x128xf32, #tpu.memory_space<vmem>>, vector<4x16x128xf32>
    %238 = vector.extract_strided_slice %6 {offsets = [6, 0], sizes = [1, 128], strides = [1, 1]} : vector<9x128xf32> to vector<1x128xf32>
    %239 = vector.shape_cast %238 : vector<1x128xf32> to vector<128xf32>
    %240 = vector.shape_cast %239 : vector<128xf32> to vector<1x1x128xf32>
    %241 = vector.broadcast %240 : vector<1x1x128xf32> to vector<4x16x128xf32>
    %242 = arith.mulf %237, %241 : vector<4x16x128xf32>
    %243 = arith.addf %236, %242 : vector<4x16x128xf32>
    %c10_98 = arith.constant 10 : index
    %c8_99 = arith.constant 8 : index
    %c0_100 = arith.constant 0 : index
    %244 = vector.load %arg19[%c10_98, %c8_99, %c0_100] : memref<18x32x128xf32, #tpu.memory_space<vmem>>, vector<4x16x128xf32>
    %245 = vector.extract_strided_slice %6 {offsets = [7, 0], sizes = [1, 128], strides = [1, 1]} : vector<9x128xf32> to vector<1x128xf32>
    %246 = vector.shape_cast %245 : vector<1x128xf32> to vector<128xf32>
    %247 = vector.shape_cast %246 : vector<128xf32> to vector<1x1x128xf32>
    %248 = vector.broadcast %247 : vector<1x1x128xf32> to vector<4x16x128xf32>
    %249 = arith.mulf %244, %248 : vector<4x16x128xf32>
    %250 = arith.addf %243, %249 : vector<4x16x128xf32>
    %c10_101 = arith.constant 10 : index
    %c9_102 = arith.constant 9 : index
    %c0_103 = arith.constant 0 : index
    %251 = vector.load %arg19[%c10_101, %c9_102, %c0_103] : memref<18x32x128xf32, #tpu.memory_space<vmem>>, vector<4x16x128xf32>
    %252 = vector.extract_strided_slice %6 {offsets = [8, 0], sizes = [1, 128], strides = [1, 1]} : vector<9x128xf32> to vector<1x128xf32>
    %253 = vector.shape_cast %252 : vector<1x128xf32> to vector<128xf32>
    %254 = vector.shape_cast %253 : vector<128xf32> to vector<1x1x128xf32>
    %255 = vector.broadcast %254 : vector<1x1x128xf32> to vector<4x16x128xf32>
    %256 = arith.mulf %251, %255 : vector<4x16x128xf32>
    %257 = arith.addf %250, %256 : vector<4x16x128xf32>
    %258 = vector.shape_cast %8 : vector<128xf32> to vector<1x1x128xf32>
    %259 = vector.broadcast %258 : vector<1x1x128xf32> to vector<4x16x128xf32>
    %260 = arith.mulf %257, %259 : vector<4x16x128xf32>
    %261 = vector.shape_cast %10 : vector<128xf32> to vector<1x1x128xf32>
    %262 = vector.broadcast %261 : vector<1x1x128xf32> to vector<4x16x128xf32>
    %263 = arith.addf %260, %262 : vector<4x16x128xf32>
    %264 = arith.negf %263 : vector<4x16x128xf32>
    %265 = math.exp %264 : vector<4x16x128xf32>
    %cst_104 = arith.constant 1.000000e+00 : f32
    %266 = vector.broadcast %cst_104 : f32 to vector<4x16x128xf32>
    %267 = arith.addf %266, %265 : vector<4x16x128xf32>
    %268 = arith.divf %266, %267 : vector<4x16x128xf32>
    %269 = arith.mulf %263, %268 : vector<4x16x128xf32>
    %cst_105 = arith.constant dense<0.000000e+00> : vector<16x128xf32>
    %270 = vector.multi_reduction <add>, %269, %cst_105 [0] : vector<4x16x128xf32> to vector<16x128xf32>
    %271 = arith.addf %180, %270 : vector<16x128xf32>
    %272 = arith.truncf %269 : vector<4x16x128xf32> to vector<4x16x128xbf16>
    %273 = vector.extract_strided_slice %272 {offsets = [0, 0, 0], sizes = [1, 16, 128], strides = [1, 1, 1]} : vector<4x16x128xbf16> to vector<1x16x128xbf16>
    %274 = vector.shape_cast %273 : vector<1x16x128xbf16> to vector<16x128xbf16>
    %c128 = arith.constant 128 : index
    %c0_106 = arith.constant 0 : index
    %275 = vector.load %arg20[%c128, %c0_106] : memref<256x128xbf16, #tpu.memory_space<vmem>>, vector<16x128xbf16>
    tpu.vector_store %arg20[%c128, %c0_106], %274 {strides = array<i32>} : memref<256x128xbf16, #tpu.memory_space<vmem>>, vector<16x128xbf16>,
    %276 = vector.extract_strided_slice %272 {offsets = [1, 0, 0], sizes = [1, 16, 128], strides = [1, 1, 1]} : vector<4x16x128xbf16> to vector<1x16x128xbf16>
    %277 = vector.shape_cast %276 : vector<1x16x128xbf16> to vector<16x128xbf16>
    %c144 = arith.constant 144 : index
    %c0_107 = arith.constant 0 : index
    %278 = vector.load %arg20[%c144, %c0_107] : memref<256x128xbf16, #tpu.memory_space<vmem>>, vector<16x128xbf16>
    tpu.vector_store %arg20[%c144, %c0_107], %277 {strides = array<i32>} : memref<256x128xbf16, #tpu.memory_space<vmem>>, vector<16x128xbf16>,
    %279 = vector.extract_strided_slice %272 {offsets = [2, 0, 0], sizes = [1, 16, 128], strides = [1, 1, 1]} : vector<4x16x128xbf16> to vector<1x16x128xbf16>
    %280 = vector.shape_cast %279 : vector<1x16x128xbf16> to vector<16x128xbf16>
    %c160 = arith.constant 160 : index
    %c0_108 = arith.constant 0 : index
    %281 = vector.load %arg20[%c160, %c0_108] : memref<256x128xbf16, #tpu.memory_space<vmem>>, vector<16x128xbf16>
    tpu.vector_store %arg20[%c160, %c0_108], %280 {strides = array<i32>} : memref<256x128xbf16, #tpu.memory_space<vmem>>, vector<16x128xbf16>,
    %282 = vector.extract_strided_slice %272 {offsets = [3, 0, 0], sizes = [1, 16, 128], strides = [1, 1, 1]} : vector<4x16x128xbf16> to vector<1x16x128xbf16>
    %283 = vector.shape_cast %282 : vector<1x16x128xbf16> to vector<16x128xbf16>
    %c176 = arith.constant 176 : index
    %c0_109 = arith.constant 0 : index
    %284 = vector.load %arg20[%c176, %c0_109] : memref<256x128xbf16, #tpu.memory_space<vmem>>, vector<16x128xbf16>
    tpu.vector_store %arg20[%c176, %c0_109], %283 {strides = array<i32>} : memref<256x128xbf16, #tpu.memory_space<vmem>>, vector<16x128xbf16>,
    %cst_110 = arith.constant 0.000000e+00 : f32
    %285 = vector.broadcast %cst_110 : f32 to vector<4x16x128xf32>
    %c12 = arith.constant 12 : index
    %c7_111 = arith.constant 7 : index
    %c0_112 = arith.constant 0 : index
    %286 = vector.load %arg19[%c12, %c7_111, %c0_112] : memref<18x32x128xf32, #tpu.memory_space<vmem>>, vector<4x16x128xf32>
    %287 = vector.extract_strided_slice %6 {offsets = [0, 0], sizes = [1, 128], strides = [1, 1]} : vector<9x128xf32> to vector<1x128xf32>
    %288 = vector.shape_cast %287 : vector<1x128xf32> to vector<128xf32>
    %289 = vector.shape_cast %288 : vector<128xf32> to vector<1x1x128xf32>
    %290 = vector.broadcast %289 : vector<1x1x128xf32> to vector<4x16x128xf32>
    %291 = arith.mulf %286, %290 : vector<4x16x128xf32>
    %292 = arith.addf %285, %291 : vector<4x16x128xf32>
    %c12_113 = arith.constant 12 : index
    %c8_114 = arith.constant 8 : index
    %c0_115 = arith.constant 0 : index
    %293 = vector.load %arg19[%c12_113, %c8_114, %c0_115] : memref<18x32x128xf32, #tpu.memory_space<vmem>>, vector<4x16x128xf32>
    %294 = vector.extract_strided_slice %6 {offsets = [1, 0], sizes = [1, 128], strides = [1, 1]} : vector<9x128xf32> to vector<1x128xf32>
    %295 = vector.shape_cast %294 : vector<1x128xf32> to vector<128xf32>
    %296 = vector.shape_cast %295 : vector<128xf32> to vector<1x1x128xf32>
    %297 = vector.broadcast %296 : vector<1x1x128xf32> to vector<4x16x128xf32>
    %298 = arith.mulf %293, %297 : vector<4x16x128xf32>
    %299 = arith.addf %292, %298 : vector<4x16x128xf32>
    %c12_116 = arith.constant 12 : index
    %c9_117 = arith.constant 9 : index
    %c0_118 = arith.constant 0 : index
    %300 = vector.load %arg19[%c12_116, %c9_117, %c0_118] : memref<18x32x128xf32, #tpu.memory_space<vmem>>, vector<4x16x128xf32>
    %301 = vector.extract_strided_slice %6 {offsets = [2, 0], sizes = [1, 128], strides = [1, 1]} : vector<9x128xf32> to vector<1x128xf32>
    %302 = vector.shape_cast %301 : vector<1x128xf32> to vector<128xf32>
    %303 = vector.shape_cast %302 : vector<128xf32> to vector<1x1x128xf32>
    %304 = vector.broadcast %303 : vector<1x1x128xf32> to vector<4x16x128xf32>
    %305 = arith.mulf %300, %304 : vector<4x16x128xf32>
    %306 = arith.addf %299, %305 : vector<4x16x128xf32>
    %c13 = arith.constant 13 : index
    %c7_119 = arith.constant 7 : index
    %c0_120 = arith.constant 0 : index
    %307 = vector.load %arg19[%c13, %c7_119, %c0_120] : memref<18x32x128xf32, #tpu.memory_space<vmem>>, vector<4x16x128xf32>
    %308 = vector.extract_strided_slice %6 {offsets = [3, 0], sizes = [1, 128], strides = [1, 1]} : vector<9x128xf32> to vector<1x128xf32>
    %309 = vector.shape_cast %308 : vector<1x128xf32> to vector<128xf32>
    %310 = vector.shape_cast %309 : vector<128xf32> to vector<1x1x128xf32>
    %311 = vector.broadcast %310 : vector<1x1x128xf32> to vector<4x16x128xf32>
    %312 = arith.mulf %307, %311 : vector<4x16x128xf32>
    %313 = arith.addf %306, %312 : vector<4x16x128xf32>
    %c13_121 = arith.constant 13 : index
    %c8_122 = arith.constant 8 : index
    %c0_123 = arith.constant 0 : index
    %314 = vector.load %arg19[%c13_121, %c8_122, %c0_123] : memref<18x32x128xf32, #tpu.memory_space<vmem>>, vector<4x16x128xf32>
    %315 = vector.extract_strided_slice %6 {offsets = [4, 0], sizes = [1, 128], strides = [1, 1]} : vector<9x128xf32> to vector<1x128xf32>
    %316 = vector.shape_cast %315 : vector<1x128xf32> to vector<128xf32>
    %317 = vector.shape_cast %316 : vector<128xf32> to vector<1x1x128xf32>
    %318 = vector.broadcast %317 : vector<1x1x128xf32> to vector<4x16x128xf32>
    %319 = arith.mulf %314, %318 : vector<4x16x128xf32>
    %320 = arith.addf %313, %319 : vector<4x16x128xf32>
    %c13_124 = arith.constant 13 : index
    %c9_125 = arith.constant 9 : index
    %c0_126 = arith.constant 0 : index
    %321 = vector.load %arg19[%c13_124, %c9_125, %c0_126] : memref<18x32x128xf32, #tpu.memory_space<vmem>>, vector<4x16x128xf32>
    %322 = vector.extract_strided_slice %6 {offsets = [5, 0], sizes = [1, 128], strides = [1, 1]} : vector<9x128xf32> to vector<1x128xf32>
    %323 = vector.shape_cast %322 : vector<1x128xf32> to vector<128xf32>
    %324 = vector.shape_cast %323 : vector<128xf32> to vector<1x1x128xf32>
    %325 = vector.broadcast %324 : vector<1x1x128xf32> to vector<4x16x128xf32>
    %326 = arith.mulf %321, %325 : vector<4x16x128xf32>
    %327 = arith.addf %320, %326 : vector<4x16x128xf32>
    %c14 = arith.constant 14 : index
    %c7_127 = arith.constant 7 : index
    %c0_128 = arith.constant 0 : index
    %328 = vector.load %arg19[%c14, %c7_127, %c0_128] : memref<18x32x128xf32, #tpu.memory_space<vmem>>, vector<4x16x128xf32>
    %329 = vector.extract_strided_slice %6 {offsets = [6, 0], sizes = [1, 128], strides = [1, 1]} : vector<9x128xf32> to vector<1x128xf32>
    %330 = vector.shape_cast %329 : vector<1x128xf32> to vector<128xf32>
    %331 = vector.shape_cast %330 : vector<128xf32> to vector<1x1x128xf32>
    %332 = vector.broadcast %331 : vector<1x1x128xf32> to vector<4x16x128xf32>
    %333 = arith.mulf %328, %332 : vector<4x16x128xf32>
    %334 = arith.addf %327, %333 : vector<4x16x128xf32>
    %c14_129 = arith.constant 14 : index
    %c8_130 = arith.constant 8 : index
    %c0_131 = arith.constant 0 : index
    %335 = vector.load %arg19[%c14_129, %c8_130, %c0_131] : memref<18x32x128xf32, #tpu.memory_space<vmem>>, vector<4x16x128xf32>
    %336 = vector.extract_strided_slice %6 {offsets = [7, 0], sizes = [1, 128], strides = [1, 1]} : vector<9x128xf32> to vector<1x128xf32>
    %337 = vector.shape_cast %336 : vector<1x128xf32> to vector<128xf32>
    %338 = vector.shape_cast %337 : vector<128xf32> to vector<1x1x128xf32>
    %339 = vector.broadcast %338 : vector<1x1x128xf32> to vector<4x16x128xf32>
    %340 = arith.mulf %335, %339 : vector<4x16x128xf32>
    %341 = arith.addf %334, %340 : vector<4x16x128xf32>
    %c14_132 = arith.constant 14 : index
    %c9_133 = arith.constant 9 : index
    %c0_134 = arith.constant 0 : index
    %342 = vector.load %arg19[%c14_132, %c9_133, %c0_134] : memref<18x32x128xf32, #tpu.memory_space<vmem>>, vector<4x16x128xf32>
    %343 = vector.extract_strided_slice %6 {offsets = [8, 0], sizes = [1, 128], strides = [1, 1]} : vector<9x128xf32> to vector<1x128xf32>
    %344 = vector.shape_cast %343 : vector<1x128xf32> to vector<128xf32>
    %345 = vector.shape_cast %344 : vector<128xf32> to vector<1x1x128xf32>
    %346 = vector.broadcast %345 : vector<1x1x128xf32> to vector<4x16x128xf32>
    %347 = arith.mulf %342, %346 : vector<4x16x128xf32>
    %348 = arith.addf %341, %347 : vector<4x16x128xf32>
    %349 = vector.shape_cast %8 : vector<128xf32> to vector<1x1x128xf32>
    %350 = vector.broadcast %349 : vector<1x1x128xf32> to vector<4x16x128xf32>
    %351 = arith.mulf %348, %350 : vector<4x16x128xf32>
    %352 = vector.shape_cast %10 : vector<128xf32> to vector<1x1x128xf32>
    %353 = vector.broadcast %352 : vector<1x1x128xf32> to vector<4x16x128xf32>
    %354 = arith.addf %351, %353 : vector<4x16x128xf32>
    %355 = arith.negf %354 : vector<4x16x128xf32>
    %356 = math.exp %355 : vector<4x16x128xf32>
    %cst_135 = arith.constant 1.000000e+00 : f32
    %357 = vector.broadcast %cst_135 : f32 to vector<4x16x128xf32>
    %358 = arith.addf %357, %356 : vector<4x16x128xf32>
    %359 = arith.divf %357, %358 : vector<4x16x128xf32>
    %360 = arith.mulf %354, %359 : vector<4x16x128xf32>
    %cst_136 = arith.constant dense<0.000000e+00> : vector<16x128xf32>
    %361 = vector.multi_reduction <add>, %360, %cst_136 [0] : vector<4x16x128xf32> to vector<16x128xf32>
    %362 = arith.addf %271, %361 : vector<16x128xf32>
    %363 = arith.truncf %360 : vector<4x16x128xf32> to vector<4x16x128xbf16>
    %364 = vector.extract_strided_slice %363 {offsets = [0, 0, 0], sizes = [1, 16, 128], strides = [1, 1, 1]} : vector<4x16x128xbf16> to vector<1x16x128xbf16>
    %365 = vector.shape_cast %364 : vector<1x16x128xbf16> to vector<16x128xbf16>
    %c192 = arith.constant 192 : index
    %c0_137 = arith.constant 0 : index
    %366 = vector.load %arg20[%c192, %c0_137] : memref<256x128xbf16, #tpu.memory_space<vmem>>, vector<16x128xbf16>
    tpu.vector_store %arg20[%c192, %c0_137], %365 {strides = array<i32>} : memref<256x128xbf16, #tpu.memory_space<vmem>>, vector<16x128xbf16>,
    %367 = vector.extract_strided_slice %363 {offsets = [1, 0, 0], sizes = [1, 16, 128], strides = [1, 1, 1]} : vector<4x16x128xbf16> to vector<1x16x128xbf16>
    %368 = vector.shape_cast %367 : vector<1x16x128xbf16> to vector<16x128xbf16>
    %c208 = arith.constant 208 : index
    %c0_138 = arith.constant 0 : index
    %369 = vector.load %arg20[%c208, %c0_138] : memref<256x128xbf16, #tpu.memory_space<vmem>>, vector<16x128xbf16>
    tpu.vector_store %arg20[%c208, %c0_138], %368 {strides = array<i32>} : memref<256x128xbf16, #tpu.memory_space<vmem>>, vector<16x128xbf16>,
    %370 = vector.extract_strided_slice %363 {offsets = [2, 0, 0], sizes = [1, 16, 128], strides = [1, 1, 1]} : vector<4x16x128xbf16> to vector<1x16x128xbf16>
    %371 = vector.shape_cast %370 : vector<1x16x128xbf16> to vector<16x128xbf16>
    %c224 = arith.constant 224 : index
    %c0_139 = arith.constant 0 : index
    %372 = vector.load %arg20[%c224, %c0_139] : memref<256x128xbf16, #tpu.memory_space<vmem>>, vector<16x128xbf16>
    tpu.vector_store %arg20[%c224, %c0_139], %371 {strides = array<i32>} : memref<256x128xbf16, #tpu.memory_space<vmem>>, vector<16x128xbf16>,
    %373 = vector.extract_strided_slice %363 {offsets = [3, 0, 0], sizes = [1, 16, 128], strides = [1, 1, 1]} : vector<4x16x128xbf16> to vector<1x16x128xbf16>
    %374 = vector.shape_cast %373 : vector<1x16x128xbf16> to vector<16x128xbf16>
    %c240 = arith.constant 240 : index
    %c0_140 = arith.constant 0 : index
    %375 = vector.load %arg20[%c240, %c0_140] : memref<256x128xbf16, #tpu.memory_space<vmem>>, vector<16x128xbf16>
    tpu.vector_store %arg20[%c240, %c0_140], %374 {strides = array<i32>} : memref<256x128xbf16, #tpu.memory_space<vmem>>, vector<16x128xbf16>,
    %cst_141 = arith.constant dense<0.000000e+00> : vector<128xf32>
    %376 = vector.multi_reduction <add>, %362, %cst_141 [0] : vector<16x128xf32> to vector<128xf32>
    %377 = vector.shape_cast %376 : vector<128xf32> to vector<1x128xf32>
    %cst_142 = arith.constant 3.906250e-03 : f32
    %378 = vector.broadcast %cst_142 : f32 to vector<1x128xf32>
    %379 = arith.mulf %377, %378 : vector<1x128xf32>
    %380 = arith.truncf %379 : vector<1x128xf32> to vector<1x128xbf16>
    %c0_143 = arith.constant 0 : index
    %c0_144 = arith.constant 0 : index
    %381 = vector.load %arg6[%c0_143, %c0_144] : memref<128x128xbf16, #tpu.memory_space<vmem>>, vector<128x128xbf16>
    %cst_145 = arith.constant dense<0.000000e+00> : vector<1x128xf32>
    %382 = tpu.matmul %380, %381, %cst_145 {dimension_numbers = #tpu.dot_dimension_numbers<[1], [0], [0], [1], [0, 0, 1, 1], [], []>} : vector<1x128xbf16>, vector<128x128xbf16>, vector<1x128xf32> -> vector<1x128xf32>
    %c0_146 = arith.constant 0 : index
    %c0_147 = arith.constant 0 : index
    %383 = vector.load %arg7[%c0_146, %c0_147] : memref<1x128xf32, #tpu.memory_space<vmem>>, vector<1x128xf32>
    %384 = arith.addf %382, %383 : vector<1x128xf32>
    %385 = arith.negf %384 : vector<1x128xf32>
    %386 = math.exp %385 : vector<1x128xf32>
    %cst_148 = arith.constant 1.000000e+00 : f32
    %387 = vector.broadcast %cst_148 : f32 to vector<1x128xf32>
    %388 = arith.addf %387, %386 : vector<1x128xf32>
    %389 = arith.divf %387, %388 : vector<1x128xf32>
    %390 = arith.mulf %384, %389 : vector<1x128xf32>
    %391 = arith.truncf %390 : vector<1x128xf32> to vector<1x128xbf16>
    %c0_149 = arith.constant 0 : index
    %c0_150 = arith.constant 0 : index
    %392 = vector.load %arg8[%c0_149, %c0_150] : memref<128x128xbf16, #tpu.memory_space<vmem>>, vector<128x128xbf16>
    %cst_151 = arith.constant dense<0.000000e+00> : vector<1x128xf32>
    %393 = tpu.matmul %391, %392, %cst_151 {dimension_numbers = #tpu.dot_dimension_numbers<[1], [0], [0], [1], [0, 0, 1, 1], [], []>} : vector<1x128xbf16>, vector<128x128xbf16>, vector<1x128xf32> -> vector<1x128xf32>
    %c0_152 = arith.constant 0 : index
    %c0_153 = arith.constant 0 : index
    %394 = vector.load %arg9[%c0_152, %c0_153] : memref<1x128xf32, #tpu.memory_space<vmem>>, vector<1x128xf32>
    %395 = arith.addf %393, %394 : vector<1x128xf32>
    %396 = arith.negf %395 : vector<1x128xf32>
    %397 = math.exp %396 : vector<1x128xf32>
    %cst_154 = arith.constant 1.000000e+00 : f32
    %398 = vector.broadcast %cst_154 : f32 to vector<1x128xf32>
    %399 = arith.addf %398, %397 : vector<1x128xf32>
    %400 = arith.divf %398, %399 : vector<1x128xf32>
    %c0_155 = arith.constant 0 : index
    %c0_156 = arith.constant 0 : index
    %401 = vector.load %arg20[%c0_155, %c0_156] : memref<256x128xbf16, #tpu.memory_space<vmem>>, vector<256x128xbf16>
    %402 = arith.extf %401 : vector<256x128xbf16> to vector<256x128xf32>
    %403 = vector.broadcast %400 : vector<1x128xf32> to vector<256x128xf32>
    %404 = arith.mulf %402, %403 : vector<256x128xf32>
    %405 = arith.truncf %404 : vector<256x128xf32> to vector<256x128xbf16>
    %c0_157 = arith.constant 0 : index
    %c0_158 = arith.constant 0 : index
    %406 = vector.load %arg10[%c0_157, %c0_158] : memref<128x128xbf16, #tpu.memory_space<vmem>>, vector<128x128xbf16>
    %cst_159 = arith.constant dense<0.000000e+00> : vector<256x128xf32>
    %407 = tpu.matmul %405, %406, %cst_159 {dimension_numbers = #tpu.dot_dimension_numbers<[1], [0], [0], [1], [0, 0, 1, 1], [], []>} : vector<256x128xbf16>, vector<128x128xbf16>, vector<256x128xf32> -> vector<256x128xf32>
    %c0_160 = arith.constant 0 : index
    %c0_161 = arith.constant 0 : index
    %408 = vector.load %arg11[%c0_160, %c0_161] : memref<1x128xf32, #tpu.memory_space<vmem>>, vector<1x128xf32>
    %409 = vector.broadcast %408 : vector<1x128xf32> to vector<256x128xf32>
    %410 = arith.mulf %407, %409 : vector<256x128xf32>
    %c0_162 = arith.constant 0 : index
    %c0_163 = arith.constant 0 : index
    %411 = vector.load %arg12[%c0_162, %c0_163] : memref<1x128xf32, #tpu.memory_space<vmem>>, vector<1x128xf32>
    %412 = vector.broadcast %411 : vector<1x128xf32> to vector<256x128xf32>
    %413 = arith.addf %410, %412 : vector<256x128xf32>
    %c0_164 = arith.constant 0 : index
    %c0_165 = arith.constant 0 : index
    %c0_166 = arith.constant 0 : index
    %414 = vector.load %arg2[%c0_164, %c0_165, %c0_166] : memref<1x256x128xbf16, #tpu.memory_space<vmem>>, vector<1x256x128xbf16>
    %415 = vector.shape_cast %414 : vector<1x256x128xbf16> to vector<256x128xbf16>
    %416 = arith.extf %415 : vector<256x128xbf16> to vector<256x128xf32>
    %417 = arith.addf %413, %416 : vector<256x128xf32>
    %418 = arith.truncf %417 : vector<256x128xf32> to vector<256x128xbf16>
    %c0_167 = arith.constant 0 : index
    %c0_168 = arith.constant 0 : index
    %419 = vector.load %arg13[%c0_167, %c0_168] : memref<128x128xbf16, #tpu.memory_space<vmem>>, vector<128x128xbf16>
    %cst_169 = arith.constant dense<0.000000e+00> : vector<256x128xf32>
    %420 = tpu.matmul %418, %419, %cst_169 {dimension_numbers = #tpu.dot_dimension_numbers<[1], [0], [0], [1], [0, 0, 1, 1], [], []>} : vector<256x128xbf16>, vector<128x128xbf16>, vector<256x128xf32> -> vector<256x128xf32>
    %c0_170 = arith.constant 0 : index
    %c0_171 = arith.constant 0 : index
    %421 = vector.load %arg14[%c0_170, %c0_171] : memref<1x128xf32, #tpu.memory_space<vmem>>, vector<1x128xf32>
    %422 = vector.broadcast %421 : vector<1x128xf32> to vector<256x128xf32>
    %423 = arith.mulf %420, %422 : vector<256x128xf32>
    %c0_172 = arith.constant 0 : index
    %c0_173 = arith.constant 0 : index
    %424 = vector.load %arg15[%c0_172, %c0_173] : memref<1x128xf32, #tpu.memory_space<vmem>>, vector<1x128xf32>
    %425 = vector.broadcast %424 : vector<1x128xf32> to vector<256x128xf32>
    %426 = arith.addf %423, %425 : vector<256x128xf32>
    %427 = arith.negf %426 : vector<256x128xf32>
    %428 = math.exp %427 : vector<256x128xf32>
    %cst_174 = arith.constant 1.000000e+00 : f32
    %429 = vector.broadcast %cst_174 : f32 to vector<256x128xf32>
    %430 = arith.addf %429, %428 : vector<256x128xf32>
    %431 = arith.divf %429, %430 : vector<256x128xf32>
    %432 = arith.mulf %426, %431 : vector<256x128xf32>
    %cst_175 = arith.constant dense<0.000000e+00> : vector<128xf32>
    %433 = vector.multi_reduction <add>, %432, %cst_175 [0] : vector<256x128xf32> to vector<128xf32>
    %434 = vector.shape_cast %433 : vector<128xf32> to vector<1x128xf32>
    %cst_176 = arith.constant 3.906250e-03 : f32
    %435 = vector.broadcast %cst_176 : f32 to vector<1x128xf32>
    %436 = arith.mulf %434, %435 : vector<1x128xf32>
    %c0_177 = arith.constant 0 : index
    %c0_178 = arith.constant 0 : index
    %437 = vector.load %arg16[%c0_177, %c0_178] : memref<128x128xf32, #tpu.memory_space<vmem>>, vector<128x128xf32>
    %cst_179 = arith.constant dense<0.000000e+00> : vector<1x128xf32>
    %438 = tpu.matmul %436, %437, %cst_179 {dimension_numbers = #tpu.dot_dimension_numbers<[1], [0], [0], [1], [0, 0, 1, 1], [], []>} : vector<1x128xf32>, vector<128x128xf32>, vector<1x128xf32> -> vector<1x128xf32>
    %c0_180 = arith.constant 0 : index
    %c0_181 = arith.constant 0 : index
    %439 = vector.load %arg17[%c0_180, %c0_181] : memref<1x128xf32, #tpu.memory_space<vmem>>, vector<1x128xf32>
    %440 = arith.addf %438, %439 : vector<1x128xf32>
    %441 = vector.shape_cast %440 : vector<1x128xf32> to vector<1x128xf32>
    %442 = vector.broadcast %441 : vector<1x128xf32> to vector<8x128xf32>
    %c0_182 = arith.constant 0 : index
    %c0_183 = arith.constant 0 : index
    %c0_184 = arith.constant 0 : index
    %443 = vector.load %arg18[%c0_182, %c0_183, %c0_184] : memref<1x8x128xf32, #tpu.memory_space<vmem>>, vector<1x8x128xf32>
    %444 = vector.shape_cast %443 : vector<1x8x128xf32> to vector<8x128xf32>
    %445 = vector.shape_cast %442 : vector<8x128xf32> to vector<1x8x128xf32>
    tpu.vector_store %arg18[%c0_182, %c0_183, %c0_184], %445 {strides = array<i32>} : memref<1x8x128xf32, #tpu.memory_space<vmem>>, vector<1x8x128xf32>,
    return
  }
  func.func @transform_0(%arg0: i32) -> (i32, i32, i32, i32) {
    %c0_i32 = arith.constant 0 : i32
    %c0_i32_0 = arith.constant 0 : i32
    %c0_i32_1 = arith.constant 0 : i32
    %c0_i32_2 = arith.constant 0 : i32
    return %arg0, %c0_i32, %c0_i32_0, %c0_i32_1 : i32, i32, i32, i32
  }
  func.func @transform_1(%arg0: i32) -> (i32, i32, i32) {
    %c0_i32 = arith.constant 0 : i32
    %c0_i32_0 = arith.constant 0 : i32
    %c0_i32_1 = arith.constant 0 : i32
    return %arg0, %c0_i32, %c0_i32_0 : i32, i32, i32
  }
  func.func @transform_2(%arg0: i32) -> (i32, i32) {
    %c0_i32 = arith.constant 0 : i32
    %c0_i32_0 = arith.constant 0 : i32
    %c0_i32_1 = arith.constant 0 : i32
    return %c0_i32, %c0_i32_0 : i32, i32
  }
  func.func @transform_3(%arg0: i32) -> (i32, i32) {
    %c0_i32 = arith.constant 0 : i32
    %c0_i32_0 = arith.constant 0 : i32
    %c0_i32_1 = arith.constant 0 : i32
    return %c0_i32, %c0_i32_0 : i32, i32
  }
  func.func @transform_4(%arg0: i32) -> (i32, i32) {
    %c0_i32 = arith.constant 0 : i32
    %c0_i32_0 = arith.constant 0 : i32
    %c0_i32_1 = arith.constant 0 : i32
    return %c0_i32, %c0_i32_0 : i32, i32
  }
  func.func @transform_5(%arg0: i32) -> (i32, i32) {
    %c0_i32 = arith.constant 0 : i32
    %c0_i32_0 = arith.constant 0 : i32
    %c0_i32_1 = arith.constant 0 : i32
    return %c0_i32, %c0_i32_0 : i32, i32
  }
  func.func @transform_6(%arg0: i32) -> (i32, i32) {
    %c0_i32 = arith.constant 0 : i32
    %c0_i32_0 = arith.constant 0 : i32
    %c0_i32_1 = arith.constant 0 : i32
    return %c0_i32, %c0_i32_0 : i32, i32
  }
  func.func @transform_7(%arg0: i32) -> (i32, i32) {
    %c0_i32 = arith.constant 0 : i32
    %c0_i32_0 = arith.constant 0 : i32
    %c0_i32_1 = arith.constant 0 : i32
    return %c0_i32, %c0_i32_0 : i32, i32
  }
  func.func @transform_8(%arg0: i32) -> (i32, i32) {
    %c0_i32 = arith.constant 0 : i32
    %c0_i32_0 = arith.constant 0 : i32
    %c0_i32_1 = arith.constant 0 : i32
    return %c0_i32, %c0_i32_0 : i32, i32
  }
  func.func @transform_9(%arg0: i32) -> (i32, i32) {
    %c0_i32 = arith.constant 0 : i32
    %c0_i32_0 = arith.constant 0 : i32
    %c0_i32_1 = arith.constant 0 : i32
    return %c0_i32, %c0_i32_0 : i32, i32
  }
  func.func @transform_10(%arg0: i32) -> (i32, i32) {
    %c0_i32 = arith.constant 0 : i32
    %c0_i32_0 = arith.constant 0 : i32
    %c0_i32_1 = arith.constant 0 : i32
    return %c0_i32, %c0_i32_0 : i32, i32
  }
  func.func @transform_11(%arg0: i32) -> (i32, i32) {
    %c0_i32 = arith.constant 0 : i32
    %c0_i32_0 = arith.constant 0 : i32
    %c0_i32_1 = arith.constant 0 : i32
    return %c0_i32, %c0_i32_0 : i32, i32
  }
  func.func @transform_12(%arg0: i32) -> (i32, i32) {
    %c0_i32 = arith.constant 0 : i32
    %c0_i32_0 = arith.constant 0 : i32
    %c0_i32_1 = arith.constant 0 : i32
    return %c0_i32, %c0_i32_0 : i32, i32
  }
  func.func @transform_13(%arg0: i32) -> (i32, i32) {
    %c0_i32 = arith.constant 0 : i32
    %c0_i32_0 = arith.constant 0 : i32
    %c0_i32_1 = arith.constant 0 : i32
    return %c0_i32, %c0_i32_0 : i32, i32
  }
  func.func @transform_14(%arg0: i32) -> (i32, i32) {
    %c0_i32 = arith.constant 0 : i32
    %c0_i32_0 = arith.constant 0 : i32
    %c0_i32_1 = arith.constant 0 : i32
    return %c0_i32, %c0_i32_0 : i32, i32
  }
  func.func @transform_15(%arg0: i32) -> (i32, i32) {
    %c0_i32 = arith.constant 0 : i32
    %c0_i32_0 = arith.constant 0 : i32
    %c0_i32_1 = arith.constant 0 : i32
    return %c0_i32, %c0_i32_0 : i32, i32
  }
  func.func @transform_16(%arg0: i32) -> (i32, i32) {
    %c0_i32 = arith.constant 0 : i32
    %c0_i32_0 = arith.constant 0 : i32
    %c0_i32_1 = arith.constant 0 : i32
    return %c0_i32, %c0_i32_0 : i32, i32
  }
  func.func @transform_17(%arg0: i32) -> (i32, i32, i32) {
    %c0_i32 = arith.constant 0 : i32
    %c0_i32_0 = arith.constant 0 : i32
    %c0_i32_1 = arith.constant 0 : i32
    return %arg0, %c0_i32, %c0_i32_0 : i32, i32, i32
  }
}

</mosaic_0001>

<bundles_post_ra>
// kernel: effnet_forward.2
= control target key start
LH: loop header
LB: loop body
LE: loop exit
PB: predicated region body
PF: predicated region fallthrough
CT: control target
= control target key end

     0   :  { %s2827_s27 = smov 0   ;;  %s3356_s0 = inlined_call_operand.vmem [shape: bf16[512,32], index: 0, kind: input, shape index: {}]   ;;  %s3357_s1 = inlined_call_operand.vmem [shape: bf16[32,128], index: 1, kind: input, shape index: {}]   ;;  %s3358_s2 = inlined_call_operand.vmem [shape: f32[1,128], index: 2, kind: input, shape index: {}]   ;;  %s3359_s3 = inlined_call_operand.vmem [shape: f32[1,128], index: 3, kind: input, shape index: {}]   ;;  %s3360_s4 = inlined_call_operand.vmem [shape: bf16[128,128], index: 4, kind: input, shape index: {}]   ;;  %s3361_s5 = inlined_call_operand.vmem [shape: f32[1,128], index: 5, kind: input, shape index: {}]   ;;  %s3362_s6 = inlined_call_operand.vmem [shape: f32[1,128], index: 6, kind: input, shape index: {}]   ;;  %s3363_s7 = inlined_call_operand.vmem [shape: bf16[512,128], index: 7, kind: output, shape index: {0}]   ;;  %s3364_s8 = inlined_call_operand.vmem [shape: bf16[512,128], index: 8, kind: output, shape index: {1}]  }
   0x1 LB: > { %s1901_s28 = sadd.s32 4294967295, %s2780_s27   ;;  %p1905_p0 = scmp.ge.s32.totalorder %s2780_s27, 1  ;;  %s2780_s27 = sphi %s2827_s27, %s19_s27  }
   0x2   : > { %p266_p1 = scmp.lt.s32.totalorder %s2780_s27, 3 }
   0x4   : > { %p267_p2 = pnand %p1905_p0, %p266_p1 }
   0x5   : > { %v2492_v0 = vld [vmem:[%s3357_s1] sm:$0xff] (!%p267_p2)   ;;  %s1906_s9 = sshll.u32 (!%p267_p2), %s1901_s28, 5  ;;  %v2493_v1 = vld [vmem:[%s3357_s1 + $0x8] sm:$0xff] (!%p267_p2)   ;;  %vm452_vm0 = vcmask (!%p267_p2), 261120   ;;  %v2512_v20 = vld [vmem:[%s3360_s4 + $0x10] sm:$0xff] (!%p267_p2)  }
   0x6   : > { %270 = sbr.rel (%p267_p2) target bundleno = 579 (0x243), region = 48  ;;  %p306_p3 = scmp.lt.s32.totalorder (!%p267_p2), %s1906_s9, 63  ;;  %2384 = vmatprep.subr.bf16.mxu0 (!%p267_p2), %v2492_v0  ;;  %v2510_v18 = vld [vmem:[%s3360_s4] sm:$0xff] (!%p267_p2)   ;;  %v2511_v19 = vld [vmem:[%s3360_s4 + $0x8] sm:$0xff] (!%p267_p2)   ;;  %v2513_v21 = vld [vmem:[%s3360_s4 + $0x18] sm:$0xff] (!%p267_p2)  }
   0x7   : > { %2385 = vmatpush3.bf16.msra.mxu0 (!%p267_p2), %v2492_v0  ;;  %2468 = vmatprep.subr.bf16.mxu1 (!%p267_p2), %v2510_v18  ;;  %v2514_v22 = vld [vmem:[%s3360_s4 + $0x20] sm:$0xff] (!%p267_p2)   ;;  %v2515_v23 = vld [vmem:[%s3360_s4 + $0x28] sm:$0xff] (!%p267_p2)   ;;  %v2516_v24 = vld [vmem:[%s3360_s4 + $0x30] sm:$0xff] (!%p267_p2)  }
   0x8   : > { %2386 = vmatprep.subr.bf16.mxu0 (!%p267_p2), %v2493_v1  ;;  %2476 = vmatpush3.bf16.msra.mxu1 (!%p267_p2), %v2510_v18  ;;  %v2517_v25 = vld [vmem:[%s3360_s4 + $0x38] sm:$0xff] (!%p267_p2)   ;;  %v2908_v26 = vld [vmem:[%s3358_s2] ss:$0 sm:$0xff] (!%p267_p2) }
   0x9   : > { %2469 = vmatprep.subr.bf16.mxu1 (!%p267_p2), %v2511_v19  ;;  %v2913_v28 = vld [vmem:[%s3359_s3] ss:$0 sm:$0xff] (!%p267_p2) }
   0xb   : > { %2387 = vmatpush3.bf16.msra.mxu0 (!%p267_p2), %v2493_v1 }
   0xc   : > { %2420 = vmatprep.subr.bf16.mxu0 (!%p267_p2), %v2510_v18  ;;  %2477 = vmatpush3.bf16.msra.mxu1 (!%p267_p2), %v2511_v19 }
   0xd   : > { %s3366_s9 = smov (!%p306_p3, %s1906_s9), 63  ;;  %2470 = vmatprep.subr.bf16.mxu1 %v2512_v20 }
   0xe   : > { %s2841_s12 = sshll.u32 %s3366_s9, 2 }
   0xf   : > { %s2847_s15 = scalar_lea.vmem %s3356_s0, %s2841_s12  ;;  %s3003_s18 = scalar_lea.vmem %s3363_s7, %s2841_s12 }
  0x10   : > { %v2494_v2 = vld [vmem:[%s2847_s15] sm:$0xff]   ;;  %v2495_v3 = vld [vmem:[%s2847_s15 + $0x8] sm:$0xff]   ;;  %v2496_v4 = vld [vmem:[%s2847_s15 + $0x10] sm:$0xff]   ;;  %2478 = vmatpush3.bf16.msra.mxu1 %v2512_v20  ;;  %s3225_s25 = scalar_lea.vmem %s3364_s8, %s2841_s12 }
  0x11   : > { %2388 = vmatprep.mubr.msk.bf16.mxu0 %vm452_vm0, %v2494_v2  ;;  %v2497_v5 = vld [vmem:[%s2847_s15 + $0x18] sm:$0xff]   ;;  %v2498_v6 = vld [vmem:[%s2847_s15 + $0x20] sm:$0xff]   ;;  %v2499_v7 = vld [vmem:[%s2847_s15 + $0x28] sm:$0xff]   ;;  %2471 = vmatprep.subr.bf16.mxu1 %v2513_v21 }
  0x12   : > { %2389 = vmatmul.mubr.msk.bf16.vlgmr.msra.gmra.mrb[0].mxu0 %vm452_vm0, %v2495_v3  ;;  %v2500_v8 = vld [vmem:[%s2847_s15 + $0x30] sm:$0xff]   ;;  %v2501_v9 = vld [vmem:[%s2847_s15 + $0x38] sm:$0xff]   ;;  %v2502_v10 = vld [vmem:[%s2847_s15 + $0x40] sm:$0xff]  }
  0x13   : > { %2392 = vmatprep.mubr.msk.bf16.mxu0 %vm452_vm0, %v2496_v4  ;;  %v2503_v11 = vld [vmem:[%s2847_s15 + $0x48] sm:$0xff]   ;;  %v2504_v12 = vld [vmem:[%s2847_s15 + $0x50] sm:$0xff]   ;;  %v2505_v13 = vld [vmem:[%s2847_s15 + $0x58] sm:$0xff]   ;;  %2421 = vmatpush3.bf16.msra.mxu0 %v2510_v18 }
  0x14   : > { %v2506_v14 = vld [vmem:[%s2847_s15 + $0x60] sm:$0xff]   ;;  %v2507_v15 = vld [vmem:[%s2847_s15 + $0x68] sm:$0xff]   ;;  %v2508_v16 = vld [vmem:[%s2847_s15 + $0x70] sm:$0xff]   ;;  %2422 = vmatprep.subr.bf16.mxu0 %v2511_v19  ;;  %2479 = vmatpush3.bf16.msra.mxu1 %v2513_v21 }
  0x15   : > { %v2509_v17 = vld [vmem:[%s2847_s15 + $0x78] sm:$0xff]   ;;  %2472 = vmatprep.subr.bf16.mxu1 %v2514_v22 }
  0x17   : > { %2423 = vmatpush3.bf16.msra.mxu0 %v2511_v19 }
  0x18   : > { %2424 = vmatprep.subr.bf16.mxu0 %v2512_v20  ;;  %2480 = vmatpush3.bf16.msra.mxu1 %v2514_v22 }
  0x19   : > { %2473 = vmatprep.subr.bf16.mxu1 %v2515_v23 }
  0x1a   : > { %2393 = vmatmul.mubr.msk.bf16.gmra.mrb[4].mxu0 %vm452_vm0, %v2497_v5 }
  0x1b   : > { %2396 = vmatprep.mubr.msk.bf16.mxu0 %vm452_vm0, %v2498_v6  ;;  %2425 = vmatpush3.bf16.msra.mxu0 %v2512_v20 }
  0x1c   : > { %2426 = vmatprep.subr.bf16.mxu0 %v2513_v21  ;;  %2481 = vmatpush3.bf16.msra.mxu1 %v2515_v23 }
  0x1d   : > { %2474 = vmatprep.subr.bf16.mxu1 %v2516_v24 }
  0x1f   : > { %2427 = vmatpush3.bf16.msra.mxu0 %v2513_v21 }
  0x20   : > { %2428 = vmatprep.subr.bf16.mxu0 %v2514_v22  ;;  %2482 = vmatpush3.bf16.msra.mxu1 %v2516_v24 }
  0x21   : > { %2475 = vmatprep.subr.bf16.mxu1 %v2517_v25 }
  0x22   : > { %2397 = vmatmul.mubr.msk.bf16.gmra.mrb[8].mxu0 %vm452_vm0, %v2499_v7 }
  0x23   : > { %2400 = vmatprep.mubr.msk.bf16.mxu0 %vm452_vm0, %v2500_v8  ;;  %2429 = vmatpush3.bf16.msra.mxu0 %v2514_v22 }
  0x24   : > { %2430 = vmatprep.subr.bf16.mxu0 %v2515_v23  ;;  %2483 = vmatpush3.bf16.msra.mxu1 %v2517_v25 }
  0x27   : > { %2431 = vmatpush3.bf16.msra.mxu0 %v2515_v23 }
  0x28   : > { %2432 = vmatprep.subr.bf16.mxu0 %v2516_v24 }
  0x2a   : > { %2401 = vmatmul.mubr.msk.bf16.gmra.mrb[12].mxu0 %vm452_vm0, %v2501_v9 }
  0x2b   : > { %2404 = vmatprep.mubr.msk.bf16.mxu0 %vm452_vm0, %v2502_v10  ;;  %2433 = vmatpush3.bf16.msra.mxu0 %v2516_v24 }
  0x2c   : > { %2434 = vmatprep.subr.bf16.mxu0 %v2517_v25 }
  0x2f   : > { %2435 = vmatpush3.bf16.msra.mxu0 %v2517_v25 }
  0x32   : > { %2405 = vmatmul.mubr.msk.bf16.gmra.mrb[16].mxu0 %vm452_vm0, %v2503_v11 }
  0x33   : > { %2408 = vmatprep.mubr.msk.bf16.mxu0 %vm452_vm0, %v2504_v12 }
  0x3a   : > { %2409 = vmatmul.mubr.msk.bf16.gmra.mrb[20].mxu0 %vm452_vm0, %v2505_v13 }
  0x3b   : > { %2412 = vmatprep.mubr.msk.bf16.mxu0 %vm452_vm0, %v2506_v14 }
  0x42   : > { %2413 = vmatmul.mubr.msk.bf16.gmra.mrb[24].mxu0 %vm452_vm0, %v2507_v15 }
  0x43   : > { %2416 = vmatprep.mubr.msk.bf16.mxu0 %vm452_vm0, %v2508_v16 }
  0x4a   : > { %2417 = vmatmul.mubr.msk.bf16.gmra.mrb[28].mxu0 %vm452_vm0, %v2509_v17 }
  0xe5   : > { %v2390_v27 = vpop.f32.mrb[0].mxu0 }
  0xe6   : > { %v671_v29 = vmul.f32 %v2390_v27, %v2908_v26  ;;  %v535_v30 = vpop.f32.mrb[1].mxu0 }
  0xe7   : > { %v669_v31 = vmul.f32 %v2908_v26, %v535_v30  ;;  %v2391_v32 = vpop.f32.mrb[2].mxu0 }
  0xe8   : > { %v2918_v33 = vadd.f32 %v2913_v28, %v671_v29  ;;  %v672_v34 = vmul.f32 %v2391_v32, %v2908_v26  ;;  %v538_v35 = vpop.f32.mrb[3].mxu0 }
  0xe9   : > { %v2922_v36 = vadd.f32 %v2913_v28, %v669_v31  ;;  %v670_v37 = vmul.f32 %v2908_v26, %v538_v35 }
  0xea   : > { %v1950_v38 = vmul.f32 -1.442695, %v2918_v33  ;;  %v2927_v39 = vadd.f32 %v2913_v28, %v672_v34 }
  0xeb   : > { %v1948_v40 = vmul.f32 -1.442695, %v2922_v36  ;;  %v2931_v41 = vadd.f32 %v2913_v28, %v670_v37 }
  0xec   : > { %2518 = vpow2.f32 %v1950_v38  ;;  %v1951_v42 = vmul.f32 -1.442695, %v2927_v39 }
  0xed   : > { %2520 = vpow2.f32 %v1948_v40  ;;  %v1949_v43 = vmul.f32 -1.442695, %v2931_v41  ;;  %v2394_v44 = vpop.f32.mrb[4].mxu0 }
  0xee   : > { %2522 = vpow2.f32 %v1951_v42  ;;  %v675_v45 = vmul.f32 %v2394_v44, %v2908_v26  ;;  %v551_v46 = vpop.f32.mrb[5].mxu0 }
  0xef   : > { %2524 = vpow2.f32 %v1949_v43  ;;  %v673_v47 = vmul.f32 %v2908_v26, %v551_v46  ;;  %v2395_v48 = vpop.f32.mrb[6].mxu0 }
  0xf0   : > { %v2938_v49 = vadd.f32 %v2913_v28, %v675_v45  ;;  %v676_v50 = vmul.f32 %v2395_v48, %v2908_v26  ;;  %v554_v51 = vpop.f32.mrb[7].mxu0 }
  0xf1   : > { %v2942_v52 = vadd.f32 %v2913_v28, %v673_v47  ;;  %v674_v53 = vmul.f32 %v2908_v26, %v554_v51 }
  0xf2   : > { %v1954_v54 = vmul.f32 -1.442695, %v2938_v49  ;;  %v2947_v55 = vadd.f32 %v2913_v28, %v676_v50 }
  0xf3   : > { %v1952_v56 = vmul.f32 -1.442695, %v2942_v52  ;;  %v2951_v57 = vadd.f32 %v2913_v28, %v674_v53 }
  0xf4   : > { %2526 = vpow2.f32 %v1954_v54  ;;  %v1955_v58 = vmul.f32 -1.442695, %v2947_v55 }
  0xf5   : > { %2528 = vpow2.f32 %v1952_v56  ;;  %v1953_v59 = vmul.f32 -1.442695, %v2951_v57  ;;  %v2398_v60 = vpop.f32.mrb[8].mxu0 }
  0xf6   : > { %v2519_v61 = vpop.eup %2518  ;;  %2530 = vpow2.f32 %v1955_v58  ;;  %v679_v62 = vmul.f32 %v2398_v60, %v2908_v26  ;;  %v567_v63 = vpop.f32.mrb[9].mxu0 }
  0xf7   : > { %v2521_v0 = vpop.eup %2520  ;;  %v838_v1 = vadd.f32 1.0, %v2519_v61  ;;  %2532 = vpow2.f32 %v1953_v59  ;;  %v677_v2 = vmul.f32 %v2908_v26, %v567_v63  ;;  %v2399_v3 = vpop.f32.mrb[10].mxu0 }
  0xf8   : > { %v2523_v4 = vpop.eup %2522  ;;  %v836_v5 = vadd.f32 1.0, %v2521_v0  ;;  %v2958_v6 = vadd.f32 %v2913_v28, %v679_v62  ;;  %v680_v7 = vmul.f32 %v2399_v3, %v2908_v26  ;;  %v570_v8 = vpop.f32.mrb[11].mxu0 }
  0xf9   : > { %v2525_v9 = vpop.eup %2524  ;;  %2534 = vrcp.f32 %v838_v1  ;;  %v839_v10 = vadd.f32 1.0, %v2523_v4  ;;  %v2962_v11 = vadd.f32 %v2913_v28, %v677_v2  ;;  %v678_v12 = vmul.f32 %v2908_v26, %v570_v8 }
  0xfa   : > { %2536 = vrcp.f32 %v836_v5  ;;  %v837_v13 = vadd.f32 1.0, %v2525_v9  ;;  %v1958_v14 = vmul.f32 -1.442695, %v2958_v6  ;;  %v2967_v15 = vadd.f32 %v2913_v28, %v680_v7 }
  0xfb   : > { %2538 = vrcp.f32 %v839_v10  ;;  %v1956_v16 = vmul.f32 -1.442695, %v2962_v11  ;;  %v2971_v17 = vadd.f32 %v2913_v28, %v678_v12 }
  0xfc   : > { %2540 = vrcp.f32 %v837_v13  ;;  %v1959_v18 = vmul.f32 -1.442695, %v2967_v15 }
  0xfd   : > { %2542 = vpow2.f32 %v1958_v14  ;;  %v1957_v19 = vmul.f32 -1.442695, %v2971_v17  ;;  %v2402_v20 = vpop.f32.mrb[12].mxu0 }
  0xfe   : > { %v2527_v21 = vpop.eup %2526  ;;  %2544 = vpow2.f32 %v1956_v16  ;;  %v683_v22 = vmul.f32 %v2402_v20, %v2908_v26  ;;  %v583_v23 = vpop.f32.mrb[13].mxu0 }
  0xff   : > { %v2529_v24 = vpop.eup %2528  ;;  %v842_v25 = vadd.f32 1.0, %v2527_v21  ;;  %2546 = vpow2.f32 %v1959_v18  ;;  %v681_v27 = vmul.f32 %v2908_v26, %v583_v23  ;;  %v2403_v29 = vpop.f32.mrb[14].mxu0 }
 0x100   : > { %v2531_v30 = vpop.eup %2530  ;;  %v840_v31 = vadd.f32 1.0, %v2529_v24  ;;  %2548 = vpow2.f32 %v1957_v19  ;;  %v2978_v32 = vadd.f32 %v2913_v28, %v683_v22  ;;  %v684_v34 = vmul.f32 %v2403_v29, %v2908_v26  ;;  %v586_v35 = vpop.f32.mrb[15].mxu0 }
 0x101   : > { %v2533_v37 = vpop.eup %2532  ;;  %2550 = vrcp.f32 %v842_v25  ;;  %v843_v38 = vadd.f32 1.0, %v2531_v30  ;;  %v2982_v40 = vadd.f32 %v2913_v28, %v681_v27  ;;  %v682_v42 = vmul.f32 %v2908_v26, %v586_v35 }
 0x102   : > { %2552 = vrcp.f32 %v840_v31  ;;  %v841_v43 = vadd.f32 1.0, %v2533_v37  ;;  %v1962_v44 = vmul.f32 -1.442695, %v2978_v32  ;;  %v2987_v45 = vadd.f32 %v2913_v28, %v684_v34 }
 0x103   : > { %v2535_v46 = vpop.eup %2534  ;;  %2554 = vrcp.f32 %v843_v38  ;;  %v1960_v47 = vmul.f32 -1.442695, %v2982_v40  ;;  %v2991_v48 = vadd.f32 %v2913_v28, %v682_v42 }
 0x104   : > { %v2537_v50 = vpop.eup %2536  ;;  %2556 = vrcp.f32 %v841_v43  ;;  %v1963_v51 = vmul.f32 -1.442695, %v2987_v45  ;;  %v934_v59 = vmul.f32 %v2535_v46, %v2918_v33 }
 0x105   : > { %v2539_v53 = vpop.eup %2538  ;;  %2558 = vpow2.f32 %v1962_v44  ;;  %v1961_v54 = vmul.f32 -1.442695, %v2991_v48  ;;  %v2406_v56 = vpop.f32.mrb[16].mxu0  ;;  %v932_v0 = vmul.f32 %v2537_v50, %v2922_v36 }
 0x106   : > { %v2541_v58 = vpop.eup %2540  ;;  %v935_v60 = vmul.f32 %v2539_v53, %v2927_v39  ;;  %2560 = vpow2.f32 %v1960_v47  ;;  %v687_v61 = vmul.f32 %v2406_v56, %v2908_v26  ;;  %v599_v62 = vpop.f32.mrb[17].mxu0 }
 0x107   : > { %v2543_v63 = vpop.eup %2542  ;;  %v933_v1 = vmul.f32 %v2541_v58, %v2931_v41  ;;  %2562 = vpow2.f32 %v1963_v51  ;;  %v685_v33 = vmul.f32 %v2908_v26, %v599_v62  ;;  %v2407_v2 = vpop.f32.mrb[18].mxu0 }
 0x108   : > { %v2545_v39 = vpop.eup %2544  ;;  %v965_v3 = vpack.c.bf16 %v935_v60, %v934_v59  ;;  %v846_v4 = vadd.f32 1.0, %v2543_v63  ;;  %2564 = vpow2.f32 %v1961_v54  ;;  %v3008_v5 = vadd.f32 %v2913_v28, %v687_v61  ;;  %v602_v36 = vpop.f32.mrb[19].mxu0 }
 0x109   : > { %v2547_v7 = vpop.eup %2546  ;;  %v844_v8 = vadd.f32 1.0, %v2545_v39  ;;  %v3011_v9 = vadd.f32 %v2913_v28, %v685_v33  ;;  %v688_v41 = vmul.f32 %v2407_v2, %v2908_v26  ;;  %v686_v10 = vmul.f32 %v2908_v26, %v602_v36 }
 0x10a   : > { %v2549_v12 = vpop.eup %2548  ;;  %2312 = vst [vmem:[%s3003_s18 + $0x8] sm:$0xff] %v965_v3   ;;  %2566 = vrcp.f32 %v846_v4  ;;  %v847_v13 = vadd.f32 1.0, %v2547_v7  ;;  %v1966_v14 = vmul.f32 -1.442695, %v3008_v5  ;;  %v964_v16 = vpack.c.bf16 %v933_v1, %v932_v0 }
 0x10b   : > { %v2551_v18 = vpop.eup %2550  ;;  %2568 = vrcp.f32 %v844_v8  ;;  %v845_v19 = vadd.f32 1.0, %v2549_v12  ;;  %v1964_v20 = vmul.f32 -1.442695, %v3011_v9  ;;  %v3019_v21 = vadd.f32 %v2913_v28, %v688_v41 }
 0x10c   : > { %v2553_v22 = vpop.eup %2552  ;;  %2570 = vrcp.f32 %v847_v13  ;;  %v3022_v23 = vadd.f32 %v2913_v28, %v686_v10  ;;  %2156 = vst [vmem:[%s3003_s18] sm:$0xff] %v964_v16   ;;  %2436 = vmatprep.mubr.bf16.mxu0 %v964_v16  ;;  %v938_v25 = vmul.f32 %v2551_v18, %v2938_v49 }
 0x10d   : > { %v2555_v24 = vpop.eup %2554  ;;  %2572 = vrcp.f32 %v845_v19  ;;  %v1967_v27 = vmul.f32 -1.442695, %v3019_v21  ;;  %2437 = vmatmul.mubr.bf16.vlgmr.msra.gmra.mrb[32].mxu0 %v965_v3  ;;  %v2410_v29 = vpop.f32.mrb[20].mxu0  ;;  %v936_v37 = vmul.f32 %v2553_v22, %v2942_v52 }
 0x10e   : > { %v2557_v30 = vpop.eup %2556  ;;  %2574 = vpow2.f32 %v1966_v14  ;;  %v1965_v31 = vmul.f32 -1.442695, %v3022_v23  ;;  %v691_v34 = vmul.f32 %v2410_v29, %v2908_v26  ;;  %v615_v35 = vpop.f32.mrb[21].mxu0  ;;  %v939_v42 = vmul.f32 %v2555_v24, %v2947_v55 }
 0x10f   : > { %v2559_v38 = vpop.eup %2558  ;;  %2576 = vpow2.f32 %v1964_v20  ;;  %v689_v49 = vmul.f32 %v2908_v26, %v615_v35  ;;  %v2411_v43 = vpop.f32.mrb[22].mxu0  ;;  %v937_v44 = vmul.f32 %v2557_v30, %v2951_v57 }
 0x110   : > { %v2561_v46 = vpop.eup %2560  ;;  %v850_v47 = vadd.f32 1.0, %v2559_v38  ;;  %2578 = vpow2.f32 %v1967_v27  ;;  %v3034_v50 = vadd.f32 %v2913_v28, %v691_v34  ;;  %v692_v51 = vmul.f32 %v2411_v43, %v2908_v26  ;;  %v618_v53 = vpop.f32.mrb[23].mxu0 }
 0x111   : > { %v2563_v54 = vpop.eup %2562  ;;  %v848_v52 = vadd.f32 1.0, %v2561_v46  ;;  %2580 = vpow2.f32 %v1965_v31  ;;  %v3038_v55 = vadd.f32 %v2913_v28, %v689_v49  ;;  %v690_v56 = vmul.f32 %v2908_v26, %v618_v53 }
 0x112   : > { %v2565_v58 = vpop.eup %2564  ;;  %2582 = vrcp.f32 %v850_v47  ;;  %v851_v57 = vadd.f32 1.0, %v2563_v54  ;;  %v1970_v59 = vmul.f32 -1.442695, %v3034_v50  ;;  %v3043_v60 = vadd.f32 %v2913_v28, %v692_v51 }
 0x113   : > { %2584 = vrcp.f32 %v848_v52  ;;  %v849_v61 = vadd.f32 1.0, %v2565_v58  ;;  %v1968_v62 = vmul.f32 -1.442695, %v3038_v55  ;;  %v3047_v63 = vadd.f32 %v2913_v28, %v690_v56 }
 0x114   : > { %v2567_v0 = vpop.eup %2566  ;;  %2586 = vrcp.f32 %v851_v57  ;;  %v1971_v1 = vmul.f32 -1.442695, %v3043_v60  ;;  %v966_v33 = vpack.c.bf16 %v937_v44, %v936_v37  ;;  %v967_v2 = vpack.c.bf16 %v939_v42, %v938_v25 }
 0x115   : > { %v2569_v39 = vpop.eup %2568  ;;  %2588 = vrcp.f32 %v849_v61  ;;  %v1969_v3 = vmul.f32 -1.442695, %v3047_v63  ;;  %v2414_v4 = vpop.f32.mrb[24].mxu0  ;;  %v942_v29 = vmul.f32 %v2567_v0, %v2958_v6 }
 0x116   : > { %v2571_v36 = vpop.eup %2570  ;;  %2590 = vpow2.f32 %v1970_v59  ;;  %2313 = vst [vmem:[%s3003_s18 + $0x10] sm:$0xff] %v966_v33   ;;  %2440 = vmatprep.mubr.bf16.mxu1 %v966_v33  ;;  %2314 = vst [vmem:[%s3003_s18 + $0x18] sm:$0xff] %v967_v2   ;;  %v695_v7 = vmul.f32 %v2414_v4, %v2908_v26  ;;  %v631_v8 = vpop.f32.mrb[25].mxu0  ;;  %v940_v10 = vmul.f32 %v2569_v39, %v2962_v11 }
 0x117   : > { %v2573_v41 = vpop.eup %2572  ;;  %v943_v12 = vmul.f32 %v2571_v36, %v2967_v15  ;;  %2592 = vpow2.f32 %v1968_v62  ;;  %2441 = vmatmul.mubr.bf16.vlgmr.msra.gmra.mrb[0].mxu1 %v967_v2  ;;  %v693_v13 = vmul.f32 %v2908_v26, %v631_v8  ;;  %v2415_v14 = vpop.f32.mrb[26].mxu0 }
 0x118   : > { %v2575_v16 = vpop.eup %2574  ;;  %v941_v18 = vmul.f32 %v2573_v41, %v2971_v17  ;;  %2594 = vpow2.f32 %v1971_v1  ;;  %v3059_v19 = vadd.f32 %v2913_v28, %v695_v7  ;;  %v696_v20 = vmul.f32 %v2415_v14, %v2908_v26  ;;  %v634_v22 = vpop.f32.mrb[27].mxu0 }
 0x119   : > { %v2577_v24 = vpop.eup %2576  ;;  %v854_v25 = vadd.f32 1.0, %v2575_v16  ;;  %2596 = vpow2.f32 %v1969_v3  ;;  %v3063_v11 = vadd.f32 %v2913_v28, %v693_v13  ;;  %v694_v15 = vmul.f32 %v2908_v26, %v634_v22 }
 0x11a   : > { %v2579_v27 = vpop.eup %2578  ;;  %v852_v17 = vadd.f32 1.0, %v2577_v24  ;;  %v3068_v30 = vadd.f32 %v2913_v28, %v696_v20  ;;  %v968_v31 = vpack.c.bf16 %v941_v18, %v940_v10  ;;  %v1974_v37 = vmul.f32 -1.442695, %v3059_v19 }
 0x11b   : > { %v2581_v34 = vpop.eup %2580  ;;  %2598 = vrcp.f32 %v854_v25  ;;  %v855_v35 = vadd.f32 1.0, %v2579_v27  ;;  %v3072_v38 = vadd.f32 %v2913_v28, %v694_v15  ;;  %v1972_v43 = vmul.f32 -1.442695, %v3063_v11 }
 0x11c   : > { %v2583_v42 = vpop.eup %2582  ;;  %2600 = vrcp.f32 %v852_v17  ;;  %v853_v49 = vadd.f32 1.0, %v2581_v34  ;;  %2315 = vst [vmem:[%s3003_s18 + $0x20] sm:$0xff] %v968_v31   ;;  %2444 = vmatprep.mubr.bf16.mxu1 %v968_v31  ;;  %v969_v6 = vpack.c.bf16 %v943_v12, %v942_v29  ;;  %v1975_v46 = vmul.f32 -1.442695, %v3068_v30 }
 0x11d   : > { %v2585_v44 = vpop.eup %2584  ;;  %2602 = vrcp.f32 %v855_v35  ;;  %v2418_v47 = vpop.f32.mrb[28].mxu0  ;;  %v1973_v53 = vmul.f32 -1.442695, %v3072_v38  ;;  %v946_v58 = vmul.f32 %v2583_v42, %v2978_v32 }
 0x11e   : > { %v2587_v51 = vpop.eup %2586  ;;  %2604 = vrcp.f32 %v853_v49  ;;  %2316 = vst [vmem:[%s3003_s18 + $0x28] sm:$0xff] %v969_v6   ;;  %v699_v54 = vmul.f32 %v2418_v47, %v2908_v26  ;;  %v647_v52 = vpop.f32.mrb[29].mxu0  ;;  %v944_v36 = vmul.f32 %v2585_v44, %v2982_v40 }
 0x11f   : > { %v2589_v56 = vpop.eup %2588  ;;  %v947_v57 = vmul.f32 %v2587_v51, %v2987_v45  ;;  %2606 = vpow2.f32 %v1974_v37  ;;  %2445 = vmatmul.mubr.bf16.gmra.mrb[4].mxu1 %v969_v6  ;;  %v697_v59 = vmul.f32 %v2908_v26, %v647_v52  ;;  %v2419_v61 = vpop.f32.mrb[30].mxu0 }
 0x120   : > { %v2591_v62 = vpop.eup %2590  ;;  %v945_v0 = vmul.f32 %v2589_v56, %v2991_v48  ;;  %2608 = vpow2.f32 %v1972_v43  ;;  %v3085_v1 = vadd.f32 %v2913_v28, %v699_v54  ;;  %v700_v33 = vmul.f32 %v2419_v61, %v2908_v26  ;;  %v650_v2 = vpop.f32.mrb[31].mxu0 }
 0x121   : > { %v2593_v39 = vpop.eup %2592  ;;  %v858_v3 = vadd.f32 1.0, %v2591_v62  ;;  %2610 = vpow2.f32 %v1975_v46  ;;  %v3089_v32 = vadd.f32 %v2913_v28, %v697_v59  ;;  %v698_v45 = vmul.f32 %v2908_v26, %v650_v2 }
 0x122   : > { %v2595_v4 = vpop.eup %2594  ;;  %v856_v7 = vadd.f32 1.0, %v2593_v39  ;;  %2612 = vpow2.f32 %v1973_v53  ;;  %v3094_v48 = vadd.f32 %v2913_v28, %v700_v33  ;;  %v1978_v10 = vmul.f32 -1.442695, %v3085_v1 }
 0x123   : > { %v2597_v8 = vpop.eup %2596  ;;  %2614 = vrcp.f32 %v858_v3  ;;  %v859_v41 = vadd.f32 1.0, %v2595_v4  ;;  %v3098_v12 = vadd.f32 %v2913_v28, %v698_v45  ;;  %v1976_v13 = vmul.f32 -1.442695, %v3089_v32 }
 0x124   : > { %2616 = vrcp.f32 %v856_v7  ;;  %v857_v26 = vadd.f32 1.0, %v2597_v8  ;;  %v970_v40 = vpack.c.bf16 %v945_v0, %v944_v36  ;;  %v1979_v16 = vmul.f32 -1.442695, %v3094_v48 }
 0x125   : > { %v2599_v14 = vpop.eup %2598  ;;  %2618 = vrcp.f32 %v859_v41  ;;  %v971_v18 = vpack.c.bf16 %v947_v57, %v946_v58  ;;  %v1977_v22 = vmul.f32 -1.442695, %v3098_v12 }
 0x126   : > { %v2601_v20 = vpop.eup %2600  ;;  %2620 = vrcp.f32 %v857_v26  ;;  %2317 = vst [vmem:[%s3003_s18 + $0x30] sm:$0xff] %v970_v40   ;;  %2448 = vmatprep.mubr.bf16.mxu1 %v970_v40  ;;  %v950_v25 = vmul.f32 %v2599_v14, %v3008_v5  ;;  %v3132_v40 = vld [vmem:[%s3361_s5] ss:$0 sm:$0xff] }
 0x127   : > { %v2603_v24 = vpop.eup %2602  ;;  %2622 = vpow2.f32 %v1978_v10  ;;  %2318 = vst [vmem:[%s3003_s18 + $0x38] sm:$0xff] %v971_v18   ;;  %2449 = vmatmul.mubr.bf16.gmra.mrb[8].mxu1 %v971_v18  ;;  %v948_v29 = vmul.f32 %v2601_v20, %v3011_v9 }
 0x128   : > { %v2605_v28 = vpop.eup %2604  ;;  %v951_v15 = vmul.f32 %v2603_v24, %v3019_v21  ;;  %2624 = vpow2.f32 %v1976_v13 }
 0x129   : > { %v2607_v27 = vpop.eup %2606  ;;  %v949_v17 = vmul.f32 %v2605_v28, %v3022_v23  ;;  %2626 = vpow2.f32 %v1979_v16 }
 0x12a   : > { %v2609_v31 = vpop.eup %2608  ;;  %v862_v34 = vadd.f32 1.0, %v2607_v27  ;;  %2628 = vpow2.f32 %v1977_v22  ;;  %v973_v35 = vpack.c.bf16 %v951_v15, %v950_v25 }
 0x12b   : > { %v2611_v37 = vpop.eup %2610  ;;  %v860_v42 = vadd.f32 1.0, %v2609_v31  ;;  %v972_v49 = vpack.c.bf16 %v949_v17, %v948_v29 }
 0x12c   : > { %v2613_v43 = vpop.eup %2612  ;;  %2630 = vrcp.f32 %v862_v34  ;;  %v863_v5 = vadd.f32 1.0, %v2611_v37  ;;  %2320 = vst [vmem:[%s3003_s18 + $0x48] sm:$0xff] %v973_v35  }
 0x12d   : > { %v2615_v21 = vpop.eup %2614  ;;  %2632 = vrcp.f32 %v860_v42  ;;  %v861_v6 = vadd.f32 1.0, %v2613_v43  ;;  %2319 = vst [vmem:[%s3003_s18 + $0x40] sm:$0xff] %v972_v49   ;;  %2452 = vmatprep.mubr.bf16.mxu1 %v972_v49 }
 0x12e   : > { %v2617_v9 = vpop.eup %2616  ;;  %2634 = vrcp.f32 %v863_v5  ;;  %v954_v46 = vmul.f32 %v2615_v21, %v3034_v50 }
 0x12f   : > { %v2619_v23 = vpop.eup %2618  ;;  %2636 = vrcp.f32 %v861_v6  ;;  %2453 = vmatmul.mubr.bf16.gmra.mrb[12].mxu1 %v973_v35  ;;  %v952_v53 = vmul.f32 %v2617_v9, %v3038_v55 }
 0x130   : > { %v2621_v44 = vpop.eup %2620  ;;  %v955_v47 = vmul.f32 %v2619_v23, %v3043_v60 }
 0x131   : > { %v2623_v51 = vpop.eup %2622  ;;  %v953_v54 = vmul.f32 %v2621_v44, %v3047_v63 }
 0x132   : > { %v2625_v52 = vpop.eup %2624  ;;  %v866_v56 = vadd.f32 1.0, %v2623_v51  ;;  %v975_v58 = vpack.c.bf16 %v955_v47, %v954_v46 }
 0x133   : > { %v2627_v57 = vpop.eup %2626  ;;  %v864_v59 = vadd.f32 1.0, %v2625_v52  ;;  %v974_v61 = vpack.c.bf16 %v953_v54, %v952_v53 }
 0x134   : > { %v2629_v62 = vpop.eup %2628  ;;  %2638 = vrcp.f32 %v866_v56  ;;  %v867_v0 = vadd.f32 1.0, %v2627_v57  ;;  %2322 = vst [vmem:[%s3003_s18 + $0x58] sm:$0xff] %v975_v58  }
 0x135   : > { %2640 = vrcp.f32 %v864_v59  ;;  %v865_v50 = vadd.f32 1.0, %v2629_v62  ;;  %2321 = vst [vmem:[%s3003_s18 + $0x50] sm:$0xff] %v974_v61   ;;  %2456 = vmatprep.mubr.bf16.mxu1 %v974_v61 }
 0x136   : > { %v2631_v60 = vpop.eup %2630  ;;  %2642 = vrcp.f32 %v867_v0 }
 0x137   : > { %v2633_v55 = vpop.eup %2632  ;;  %2644 = vrcp.f32 %v865_v50  ;;  %2457 = vmatmul.mubr.bf16.gmra.mrb[16].mxu1 %v975_v58  ;;  %v958_v2 = vmul.f32 %v2631_v60, %v3059_v19 }
 0x138   : > { %v2635_v63 = vpop.eup %2634  ;;  %v956_v3 = vmul.f32 %v2633_v55, %v3063_v11 }
 0x139   : > { %v2637_v33 = vpop.eup %2636  ;;  %v959_v39 = vmul.f32 %v2635_v63, %v3068_v30 }
 0x13a   : > { %v957_v45 = vmul.f32 %v2637_v33, %v3072_v38 }
 0x13b   : > { %v977_v4 = vpack.c.bf16 %v959_v39, %v958_v2 }
 0x13c   : > { %v976_v36 = vpack.c.bf16 %v957_v45, %v956_v3 }
 0x13d   : > { %2324 = vst [vmem:[%s3003_s18 + $0x68] sm:$0xff] %v977_v4  }
 0x13e   : > { %v2639_v7 = vpop.eup %2638  ;;  %2323 = vst [vmem:[%s3003_s18 + $0x60] sm:$0xff] %v976_v36   ;;  %2460 = vmatprep.mubr.bf16.mxu1 %v976_v36 }
 0x13f   : > { %v2641_v8 = vpop.eup %2640  ;;  %2461 = vmatmul.mubr.bf16.gmra.mrb[20].mxu1 %v977_v4  ;;  %v962_v19 = vmul.f32 %v2639_v7, %v3085_v1  ;;  %v3137_v1 = vld [vmem:[%s3362_s6] ss:$0 sm:$0xff] }
 0x140   : > { %v2643_v41 = vpop.eup %2642  ;;  %v960_v11 = vmul.f32 %v2641_v8, %v3089_v32 }
 0x141   : > { %v2645_v10 = vpop.eup %2644  ;;  %v963_v30 = vmul.f32 %v2643_v41, %v3094_v48 }
 0x142   : > { %v961_v38 = vmul.f32 %v2645_v10, %v3098_v12 }
 0x143   : > { %v979_v26 = vpack.c.bf16 %v963_v30, %v962_v19 }
 0x144   : > { %v978_v13 = vpack.c.bf16 %v961_v38, %v960_v11 }
 0x145   : > { %2326 = vst [vmem:[%s3003_s18 + $0x78] sm:$0xff] %v979_v26  }
 0x146   : > { %2325 = vst [vmem:[%s3003_s18 + $0x70] sm:$0xff] %v978_v13   ;;  %2464 = vmatprep.mubr.bf16.mxu1 %v978_v13 }
 0x147   : > { %2465 = vmatmul.mubr.bf16.gmra.mrb[24].mxu1 %v979_v26 }
 0x1e0   : > { %v2438_v14 = vpop.f32.mrb[32].mxu0 }
 0x1e1   : > { %v1358_v32 = vmul.f32 %v2438_v14, %v3132_v40  ;;  %v1222_v48 = vpop.f32.mrb[33].mxu0 }
 0x1e2   : > { %v1356_v12 = vmul.f32 %v3132_v40, %v1222_v48  ;;  %v2439_v16 = vpop.f32.mrb[34].mxu0 }
 0x1e3   : > { %v3142_v18 = vadd.f32 %v3137_v1, %v1358_v32  ;;  %v1359_v20 = vmul.f32 %v2439_v16, %v3132_v40  ;;  %v1225_v22 = vpop.f32.mrb[35].mxu0 }
 0x1e4   : > { %v3146_v24 = vadd.f32 %v3137_v1, %v1356_v12  ;;  %v1357_v28 = vmul.f32 %v3132_v40, %v1225_v22 }
 0x1e5   : > { %v2024_v25 = vmul.f32 -1.442695, %v3142_v18  ;;  %v3151_v15 = vadd.f32 %v3137_v1, %v1359_v20 }
 0x1e6   : > { %v2022_v27 = vmul.f32 -1.442695, %v3146_v24  ;;  %v3155_v29 = vadd.f32 %v3137_v1, %v1357_v28 }
 0x1e7   : > { %2646 = vpow2.f32 %v2024_v25  ;;  %v2025_v17 = vmul.f32 -1.442695, %v3151_v15 }
 0x1e8   : > { %2648 = vpow2.f32 %v2022_v27  ;;  %v2023_v31 = vmul.f32 -1.442695, %v3155_v29 }
 0x1e9   : > { %2650 = vpow2.f32 %v2025_v17 }
 0x1ea   : > { %2652 = vpow2.f32 %v2023_v31  ;;  %v2442_v34 = vpop.f32.mrb[0].mxu1 }
 0x1eb   : > { %v1362_v35 = vmul.f32 %v2442_v34, %v3132_v40  ;;  %v1238_v37 = vpop.f32.mrb[1].mxu1 }
 0x1ec   : > { %v1360_v42 = vmul.f32 %v3132_v40, %v1238_v37  ;;  %v2443_v49 = vpop.f32.mrb[2].mxu1 }
 0x1ed   : > { %v3162_v43 = vadd.f32 %v3137_v1, %v1362_v35  ;;  %v1363_v5 = vmul.f32 %v2443_v49, %v3132_v40  ;;  %v1241_v21 = vpop.f32.mrb[3].mxu1 }
 0x1ee   : > { %v3166_v6 = vadd.f32 %v3137_v1, %v1360_v42  ;;  %v1361_v9 = vmul.f32 %v3132_v40, %v1241_v21 }
 0x1ef   : > { %v2028_v23 = vmul.f32 -1.442695, %v3162_v43  ;;  %v3171_v44 = vadd.f32 %v3137_v1, %v1363_v5 }
 0x1f0   : > { %v2026_v46 = vmul.f32 -1.442695, %v3166_v6  ;;  %v3175_v47 = vadd.f32 %v3137_v1, %v1361_v9 }
 0x1f1   : > { %v2647_v51 = vpop.eup %2646  ;;  %2654 = vpow2.f32 %v2028_v23  ;;  %v2029_v53 = vmul.f32 -1.442695, %v3171_v44 }
 0x1f2   : > { %v2649_v54 = vpop.eup %2648  ;;  %v1525_v52 = vadd.f32 1.0, %v2647_v51  ;;  %2656 = vpow2.f32 %v2026_v46  ;;  %v2446_v56 = vpop.f32.mrb[4].mxu1  ;;  %v2027_v50 = vmul.f32 -1.442695, %v3175_v47 }
 0x1f3   : > { %v2651_v58 = vpop.eup %2650  ;;  %v1523_v57 = vadd.f32 1.0, %v2649_v54  ;;  %2658 = vpow2.f32 %v2029_v53  ;;  %v1366_v59 = vmul.f32 %v2446_v56, %v3132_v40  ;;  %v1254_v61 = vpop.f32.mrb[5].mxu1 }
 0x1f4   : > { %v2653_v62 = vpop.eup %2652  ;;  %2660 = vrcp.f32 %v1525_v52  ;;  %v1526_v0 = vadd.f32 1.0, %v2651_v58  ;;  %v1364_v60 = vmul.f32 %v3132_v40, %v1254_v61  ;;  %v2447_v55 = vpop.f32.mrb[6].mxu1 }
 0x1f5   : > { %2662 = vrcp.f32 %v1523_v57  ;;  %v1524_v63 = vadd.f32 1.0, %v2653_v62  ;;  %v3182_v33 = vadd.f32 %v3137_v1, %v1366_v59  ;;  %v1367_v2 = vmul.f32 %v2447_v55, %v3132_v40  ;;  %v1257_v39 = vpop.f32.mrb[7].mxu1 }
 0x1f6   : > { %2664 = vrcp.f32 %v1526_v0  ;;  %v3186_v3 = vadd.f32 %v3137_v1, %v1364_v60  ;;  %v1365_v45 = vmul.f32 %v3132_v40, %v1257_v39 }
 0x1f7   : > { %2666 = vrcp.f32 %v1524_v63  ;;  %v2032_v4 = vmul.f32 -1.442695, %v3182_v33  ;;  %v3191_v36 = vadd.f32 %v3137_v1, %v1367_v2 }
 0x1f8   : > { %2668 = vpow2.f32 %v2027_v50  ;;  %v2030_v7 = vmul.f32 -1.442695, %v3186_v3  ;;  %v3195_v8 = vadd.f32 %v3137_v1, %v1365_v45 }
 0x1f9   : > { %2670 = vpow2.f32 %v2032_v4  ;;  %v2033_v41 = vmul.f32 -1.442695, %v3191_v36 }
 0x1fa   : > { %2672 = vpow2.f32 %v2030_v7  ;;  %v2031_v10 = vmul.f32 -1.442695, %v3195_v8  ;;  %v2450_v19 = vpop.f32.mrb[8].mxu1 }
 0x1fb   : > { %v2655_v30 = vpop.eup %2654  ;;  %2674 = vpow2.f32 %v2033_v41  ;;  %v1370_v11 = vmul.f32 %v2450_v19, %v3132_v40  ;;  %v1270_v38 = vpop.f32.mrb[9].mxu1 }
 0x1fc   : > { %v2657_v26 = vpop.eup %2656  ;;  %v1529_v13 = vadd.f32 1.0, %v2655_v30  ;;  %2676 = vpow2.f32 %v2031_v10  ;;  %v1368_v14 = vmul.f32 %v3132_v40, %v1270_v38  ;;  %v2451_v32 = vpop.f32.mrb[10].mxu1 }
 0x1fd   : > { %v2659_v48 = vpop.eup %2658  ;;  %v1527_v12 = vadd.f32 1.0, %v2657_v26  ;;  %v3202_v16 = vadd.f32 %v3137_v1, %v1370_v11  ;;  %v1371_v20 = vmul.f32 %v2451_v32, %v3132_v40  ;;  %v1273_v22 = vpop.f32.mrb[11].mxu1 }
 0x1fe   : > { %v2661_v28 = vpop.eup %2660  ;;  %2678 = vrcp.f32 %v1529_v13  ;;  %v1530_v25 = vadd.f32 1.0, %v2659_v48  ;;  %v3206_v27 = vadd.f32 %v3137_v1, %v1368_v14  ;;  %v1369_v17 = vmul.f32 %v3132_v40, %v1273_v22 }
 0x1ff   : > { %v2663_v31 = vpop.eup %2662  ;;  %2680 = vrcp.f32 %v1527_v12  ;;  %v2036_v34 = vmul.f32 -1.442695, %v3202_v16  ;;  %v3211_v35 = vadd.f32 %v3137_v1, %v1371_v20  ;;  %v1621_v21 = vmul.f32 %v2661_v28, %v3142_v18 }
 0x200   : > { %v2665_v37 = vpop.eup %2664  ;;  %2682 = vrcp.f32 %v1530_v25  ;;  %v2034_v42 = vmul.f32 -1.442695, %v3206_v27  ;;  %v3215_v49 = vadd.f32 %v3137_v1, %v1369_v17  ;;  %v1619_v51 = vmul.f32 %v2663_v31, %v3146_v24 }
 0x201   : > { %v2667_v5 = vpop.eup %2666  ;;  %v1622_v9 = vmul.f32 %v2665_v37, %v3151_v15  ;;  %2684 = vpow2.f32 %v2036_v34  ;;  %v2037_v23 = vmul.f32 -1.442695, %v3211_v35 }
 0x202   : > { %v2669_v46 = vpop.eup %2668  ;;  %v1620_v53 = vmul.f32 %v2667_v5, %v3155_v29  ;;  %2686 = vpow2.f32 %v2034_v42  ;;  %v2035_v54 = vmul.f32 -1.442695, %v3215_v49  ;;  %v2454_v18 = vpop.f32.mrb[12].mxu1 }
 0x203   : > { %v2671_v52 = vpop.eup %2670  ;;  %v2240_v15 = vpack.c.bf16 %v1622_v9, %v1621_v21  ;;  %v1528_v56 = vadd.f32 1.0, %v2669_v46  ;;  %2688 = vpow2.f32 %v2037_v23  ;;  %v1374_v58 = vmul.f32 %v2454_v18, %v3132_v40  ;;  %v1286_v24 = vpop.f32.mrb[13].mxu1 }
 0x204   : > { %v2673_v57 = vpop.eup %2672  ;;  %v2235_v59 = vpack.c.bf16 %v1620_v53, %v1619_v51  ;;  %v1533_v61 = vadd.f32 1.0, %v2671_v52  ;;  %2690 = vpow2.f32 %v2035_v54  ;;  %v1372_v62 = vmul.f32 %v3132_v40, %v1286_v24  ;;  %v2455_v29 = vpop.f32.mrb[14].mxu1 }
 0x205   : > { %v2675_v0 = vpop.eup %2674  ;;  %2327 = vst [vmem:[%s3225_s25 + $0x8] sm:$0xff] %v2240_v15   ;;  %2692 = vrcp.f32 %v1528_v56  ;;  %v1531_v50 = vadd.f32 1.0, %v2673_v57  ;;  %v3233_v60 = vadd.f32 %v3137_v1, %v1374_v58  ;;  %v1375_v55 = vmul.f32 %v2455_v29, %v3132_v40  ;;  %v1289_v63 = vpop.f32.mrb[15].mxu1 }
 0x206   : > { %v2677_v2 = vpop.eup %2676  ;;  %2236 = vst [vmem:[%s3225_s25] sm:$0xff] %v2235_v59   ;;  %2694 = vrcp.f32 %v1533_v61  ;;  %v1534_v39 = vadd.f32 1.0, %v2675_v0  ;;  %v3238_v45 = vadd.f32 %v3137_v1, %v1372_v62  ;;  %v1373_v4 = vmul.f32 %v3132_v40, %v1289_v63 }
 0x207   : > { %2696 = vrcp.f32 %v1531_v50  ;;  %v1532_v7 = vadd.f32 1.0, %v2677_v2  ;;  %v2040_v41 = vmul.f32 -1.442695, %v3233_v60  ;;  %v3243_v10 = vadd.f32 %v3137_v1, %v1375_v55 }
 0x208   : > { %v2679_v19 = vpop.eup %2678  ;;  %2698 = vrcp.f32 %v1534_v39  ;;  %v2038_v30 = vmul.f32 -1.442695, %v3238_v45  ;;  %v3247_v11 = vadd.f32 %v3137_v1, %v1373_v4 }
 0x209   : > { %v2681_v38 = vpop.eup %2680  ;;  %2700 = vrcp.f32 %v1532_v7  ;;  %v2041_v26 = vmul.f32 -1.442695, %v3243_v10  ;;  %v1625_v12 = vmul.f32 %v2679_v19, %v3162_v43 }
 0x20a   : > { %v2683_v13 = vpop.eup %2682  ;;  %2702 = vpow2.f32 %v2040_v41  ;;  %v2039_v14 = vmul.f32 -1.442695, %v3247_v11  ;;  %v2458_v32 = vpop.f32.mrb[16].mxu1  ;;  %v1623_v17 = vmul.f32 %v2681_v38, %v3166_v6 }
 0x20b   : > { %v2685_v48 = vpop.eup %2684  ;;  %v1626_v20 = vmul.f32 %v2683_v13, %v3171_v44  ;;  %2704 = vpow2.f32 %v2038_v30  ;;  %v1378_v22 = vmul.f32 %v2458_v32, %v3132_v40  ;;  %v1302_v28 = vpop.f32.mrb[17].mxu1 }
 0x20c   : > { %v2687_v25 = vpop.eup %2686  ;;  %v1537_v31 = vadd.f32 1.0, %v2685_v48  ;;  %2706 = vpow2.f32 %v2041_v26  ;;  %v1376_v34 = vmul.f32 %v3132_v40, %v1302_v28  ;;  %v2459_v37 = vpop.f32.mrb[18].mxu1 }
 0x20d   : > { %v2689_v42 = vpop.eup %2688  ;;  %v2250_v5 = vpack.c.bf16 %v1626_v20, %v1625_v12  ;;  %v1535_v21 = vadd.f32 1.0, %v2687_v25  ;;  %2708 = vpow2.f32 %v2039_v14  ;;  %v3257_v43 = vadd.f32 %v3137_v1, %v1378_v22  ;;  %v1305_v44 = vpop.f32.mrb[19].mxu1 }
 0x20e   : > { %v2691_v9 = vpop.eup %2690  ;;  %2710 = vrcp.f32 %v1537_v31  ;;  %v1538_v23 = vadd.f32 1.0, %v2689_v42  ;;  %v3260_v46 = vadd.f32 %v3137_v1, %v1376_v34  ;;  %v1379_v6 = vmul.f32 %v2459_v37, %v3132_v40 }
 0x20f   : > { %v2693_v51 = vpop.eup %2692  ;;  %2329 = vst [vmem:[%s3225_s25 + $0x18] sm:$0xff] %v2250_v5   ;;  %2712 = vrcp.f32 %v1535_v21  ;;  %v1536_v53 = vadd.f32 1.0, %v2691_v9  ;;  %v2044_v54 = vmul.f32 -1.442695, %v3257_v43  ;;  %v1377_v18 = vmul.f32 %v3132_v40, %v1305_v44 }
 0x210   : > { %v2695_v52 = vpop.eup %2694  ;;  %v1624_v15 = vmul.f32 %v2693_v51, %v3175_v47  ;;  %2714 = vrcp.f32 %v1538_v23  ;;  %v2042_v56 = vmul.f32 -1.442695, %v3260_v46  ;;  %v3269_v58 = vadd.f32 %v3137_v1, %v1379_v6 }
 0x211   : > { %v2697_v24 = vpop.eup %2696  ;;  %2716 = vrcp.f32 %v1536_v53  ;;  %v3272_v57 = vadd.f32 %v3137_v1, %v1377_v18  ;;  %v1629_v62 = vmul.f32 %v2695_v52, %v3182_v33 }
 0x212   : > { %v2699_v59 = vpop.eup %2698  ;;  %v2245_v61 = vpack.c.bf16 %v1624_v15, %v1623_v17  ;;  %2718 = vpow2.f32 %v2044_v54  ;;  %v2045_v29 = vmul.f32 -1.442695, %v3269_v58  ;;  %v2462_v47 = vpop.f32.mrb[20].mxu1  ;;  %v1627_v4 = vmul.f32 %v2697_v24, %v3186_v3 }
 0x213   : > { %v2701_v0 = vpop.eup %2700  ;;  %v1630_v50 = vmul.f32 %v2699_v59, %v3191_v36  ;;  %2720 = vpow2.f32 %v2042_v56  ;;  %v2043_v55 = vmul.f32 -1.442695, %v3272_v57  ;;  %v1382_v63 = vmul.f32 %v2462_v47, %v3132_v40  ;;  %v1318_v2 = vpop.f32.mrb[21].mxu1 }
 0x214   : > { %v2703_v39 = vpop.eup %2702  ;;  %2328 = vst [vmem:[%s3225_s25 + $0x10] sm:$0xff] %v2245_v61   ;;  %v1628_v7 = vmul.f32 %v2701_v0, %v3195_v8  ;;  %2722 = vpow2.f32 %v2045_v29  ;;  %v1380_v33 = vmul.f32 %v3132_v40, %v1318_v2  ;;  %v2463_v41 = vpop.f32.mrb[22].mxu1 }
 0x215   : > { %v2705_v19 = vpop.eup %2704  ;;  %v2260_v30 = vpack.c.bf16 %v1630_v50, %v1629_v62  ;;  %v1541_v36 = vadd.f32 1.0, %v2703_v39  ;;  %2724 = vpow2.f32 %v2043_v55  ;;  %v3284_v38 = vadd.f32 %v3137_v1, %v1382_v63  ;;  %v1321_v26 = vpop.f32.mrb[23].mxu1 }
 0x216   : > { %v2707_v13 = vpop.eup %2706  ;;  %v2255_v14 = vpack.c.bf16 %v1628_v7, %v1627_v4  ;;  %v1539_v32 = vadd.f32 1.0, %v2705_v19  ;;  %v3287_v3 = vadd.f32 %v3137_v1, %v1380_v33  ;;  %v1383_v8 = vmul.f32 %v2463_v41, %v3132_v40 }
 0x217   : > { %v2709_v48 = vpop.eup %2708  ;;  %2331 = vst [vmem:[%s3225_s25 + $0x28] sm:$0xff] %v2260_v30   ;;  %2726 = vrcp.f32 %v1541_v36  ;;  %v1542_v12 = vadd.f32 1.0, %v2707_v13  ;;  %v2048_v20 = vmul.f32 -1.442695, %v3284_v38  ;;  %v1381_v22 = vmul.f32 %v3132_v40, %v1321_v26 }
 0x218   : > { %v2711_v28 = vpop.eup %2710  ;;  %2330 = vst [vmem:[%s3225_s25 + $0x20] sm:$0xff] %v2255_v14   ;;  %2728 = vrcp.f32 %v1539_v32  ;;  %v1540_v25 = vadd.f32 1.0, %v2709_v48  ;;  %v2046_v17 = vmul.f32 -1.442695, %v3287_v3  ;;  %v3296_v31 = vadd.f32 %v3137_v1, %v1383_v8 }
 0x219   : > { %v2713_v34 = vpop.eup %2712  ;;  %2730 = vrcp.f32 %v1542_v12  ;;  %v3299_v37 = vadd.f32 %v3137_v1, %v1381_v22  ;;  %v1633_v5 = vmul.f32 %v2711_v28, %v3202_v16 }
 0x21a   : > { %v2715_v42 = vpop.eup %2714  ;;  %2732 = vrcp.f32 %v1540_v25  ;;  %v2049_v21 = vmul.f32 -1.442695, %v3296_v31  ;;  %v2466_v44 = vpop.f32.mrb[24].mxu1  ;;  %v1631_v18 = vmul.f32 %v2713_v34, %v3206_v27 }
 0x21b   : > { %v2717_v9 = vpop.eup %2716  ;;  %v1634_v23 = vmul.f32 %v2715_v42, %v3211_v35  ;;  %2734 = vpow2.f32 %v2048_v20  ;;  %v2047_v6 = vmul.f32 -1.442695, %v3299_v37  ;;  %v1386_v51 = vmul.f32 %v2466_v44, %v3132_v40  ;;  %v1334_v53 = vpop.f32.mrb[25].mxu1 }
 0x21c   : > { %v2719_v54 = vpop.eup %2718  ;;  %v1632_v52 = vmul.f32 %v2717_v9, %v3215_v49  ;;  %2736 = vpow2.f32 %v2046_v17  ;;  %v1384_v16 = vmul.f32 %v3132_v40, %v1334_v53  ;;  %v2467_v15 = vpop.f32.mrb[26].mxu1 }
 0x21d   : > { %v2721_v56 = vpop.eup %2720  ;;  %v2270_v24 = vpack.c.bf16 %v1634_v23, %v1633_v5  ;;  %v1545_v35 = vadd.f32 1.0, %v2719_v54  ;;  %2738 = vpow2.f32 %v2049_v21  ;;  %v3310_v59 = vadd.f32 %v3137_v1, %v1386_v51  ;;  %v1337_v61 = vpop.f32.mrb[27].mxu1 }
 0x21e   : > { %v2723_v62 = vpop.eup %2722  ;;  %v2265_v29 = vpack.c.bf16 %v1632_v52, %v1631_v18  ;;  %v1543_v47 = vadd.f32 1.0, %v2721_v56  ;;  %2740 = vpow2.f32 %v2047_v6  ;;  %v3313_v27 = vadd.f32 %v3137_v1, %v1384_v16 }
 0x21f   : > { %v2725_v49 = vpop.eup %2724  ;;  %2333 = vst [vmem:[%s3225_s25 + $0x38] sm:$0xff] %v2270_v24   ;;  %2742 = vrcp.f32 %v1545_v35  ;;  %v1546_v0 = vadd.f32 1.0, %v2723_v62  ;;  %v2052_v50 = vmul.f32 -1.442695, %v3310_v59  ;;  %v1387_v55 = vmul.f32 %v2467_v15, %v3132_v40 }
 0x220   : > { %2332 = vst [vmem:[%s3225_s25 + $0x30] sm:$0xff] %v2265_v29   ;;  %2744 = vrcp.f32 %v1543_v47  ;;  %v1544_v63 = vadd.f32 1.0, %v2725_v49  ;;  %v2050_v2 = vmul.f32 -1.442695, %v3313_v27  ;;  %v1385_v39 = vmul.f32 %v3132_v40, %v1337_v61 }
 0x221   : > { %v2727_v4 = vpop.eup %2726  ;;  %2746 = vrcp.f32 %v1546_v0  ;;  %v3322_v7 = vadd.f32 %v3137_v1, %v1387_v55 }
 0x222   : > { %v2729_v33 = vpop.eup %2728  ;;  %2748 = vrcp.f32 %v1544_v63  ;;  %v3325_v41 = vadd.f32 %v3137_v1, %v1385_v39  ;;  %v1637_v26 = vmul.f32 %v2727_v4, %v3233_v60 }
 0x223   : > { %v2731_v19 = vpop.eup %2730  ;;  %2750 = vpow2.f32 %v2052_v50  ;;  %v2053_v30 = vmul.f32 -1.442695, %v3322_v7  ;;  %v1635_v32 = vmul.f32 %v2729_v33, %v3238_v45 }
 0x224   : > { %v2733_v36 = vpop.eup %2732  ;;  %v1638_v40 = vmul.f32 %v2731_v19, %v3243_v10  ;;  %2752 = vpow2.f32 %v2050_v2  ;;  %v2051_v13 = vmul.f32 -1.442695, %v3325_v41 }
 0x225   : > { %v2735_v14 = vpop.eup %2734  ;;  %v1636_v1 = vmul.f32 %v2733_v36, %v3247_v11  ;;  %2754 = vpow2.f32 %v2053_v30 }
 0x226   : > { %v2737_v8 = vpop.eup %2736  ;;  %v2280_v48 = vpack.c.bf16 %v1638_v40, %v1637_v26  ;;  %v1549_v12 = vadd.f32 1.0, %v2735_v14  ;;  %2756 = vpow2.f32 %v2051_v13 }
 0x227   : > { %v2739_v20 = vpop.eup %2738  ;;  %v2275_v22 = vpack.c.bf16 %v1636_v1, %v1635_v32  ;;  %v1547_v60 = vadd.f32 1.0, %v2737_v8 }
 0x228   : > { %v2741_v28 = vpop.eup %2740  ;;  %2335 = vst [vmem:[%s3225_s25 + $0x48] sm:$0xff] %v2280_v48   ;;  %2758 = vrcp.f32 %v1549_v12  ;;  %v1550_v10 = vadd.f32 1.0, %v2739_v20 }
 0x229   : > { %v2743_v25 = vpop.eup %2742  ;;  %2334 = vst [vmem:[%s3225_s25 + $0x40] sm:$0xff] %v2275_v22   ;;  %2760 = vrcp.f32 %v1547_v60  ;;  %v1548_v17 = vadd.f32 1.0, %v2741_v28 }
 0x22a   : > { %v2745_v34 = vpop.eup %2744  ;;  %2762 = vrcp.f32 %v1550_v10  ;;  %v1641_v42 = vmul.f32 %v2743_v25, %v3257_v43 }
 0x22b   : > { %v2747_v45 = vpop.eup %2746  ;;  %2764 = vrcp.f32 %v1548_v17  ;;  %v1639_v44 = vmul.f32 %v2745_v34, %v3260_v46 }
 0x22c   : > { %v2749_v11 = vpop.eup %2748  ;;  %v1642_v5 = vmul.f32 %v2747_v45, %v3269_v58 }
 0x22d   : > { %v2751_v21 = vpop.eup %2750  ;;  %v1640_v9 = vmul.f32 %v2749_v11, %v3272_v57 }
 0x22e   : > { %v2753_v23 = vpop.eup %2752  ;;  %v2290_v6 = vpack.c.bf16 %v1642_v5, %v1641_v42  ;;  %v1553_v51 = vadd.f32 1.0, %v2751_v21 }
 0x22f   : > { %v2755_v53 = vpop.eup %2754  ;;  %v2285_v54 = vpack.c.bf16 %v1640_v9, %v1639_v44  ;;  %v1551_v18 = vadd.f32 1.0, %v2753_v23 }
 0x230   : > { %v2757_v52 = vpop.eup %2756  ;;  %2337 = vst [vmem:[%s3225_s25 + $0x58] sm:$0xff] %v2290_v6   ;;  %2766 = vrcp.f32 %v1553_v51  ;;  %v1554_v16 = vadd.f32 1.0, %v2755_v53 }
 0x231   : > { %2336 = vst [vmem:[%s3225_s25 + $0x50] sm:$0xff] %v2285_v54   ;;  %2768 = vrcp.f32 %v1551_v18  ;;  %v1552_v43 = vadd.f32 1.0, %v2757_v52 }
 0x232   : > { %v2759_v58 = vpop.eup %2758  ;;  %2770 = vrcp.f32 %v1554_v16 }
 0x233   : > { %v2761_v46 = vpop.eup %2760  ;;  %2772 = vrcp.f32 %v1552_v43  ;;  %v1645_v56 = vmul.f32 %v2759_v58, %v3284_v38 }
 0x234   : > { %v2763_v57 = vpop.eup %2762  ;;  %v1643_v35 = vmul.f32 %v2761_v46, %v3287_v3 }
 0x235   : > { %v2765_v15 = vpop.eup %2764  ;;  %v1646_v24 = vmul.f32 %v2763_v57, %v3296_v31 }
 0x236   : > { %v1644_v61 = vmul.f32 %v2765_v15, %v3299_v37 }
 0x237   : > { %v2300_v62 = vpack.c.bf16 %v1646_v24, %v1645_v56 }
 0x238   : > { %v2295_v29 = vpack.c.bf16 %v1644_v61, %v1643_v35 }
 0x239   : > { %2339 = vst [vmem:[%s3225_s25 + $0x68] sm:$0xff] %v2300_v62  }
 0x23a   : > { %v2767_v47 = vpop.eup %2766  ;;  %2338 = vst [vmem:[%s3225_s25 + $0x60] sm:$0xff] %v2295_v29  }
 0x23b   : > { %v2769_v49 = vpop.eup %2768  ;;  %v1649_v55 = vmul.f32 %v2767_v47, %v3310_v59 }
 0x23c   : > { %v2771_v0 = vpop.eup %2770  ;;  %v1647_v31 = vmul.f32 %v2769_v49, %v3313_v27 }
 0x23d   : > { %v2773_v50 = vpop.eup %2772  ;;  %v1650_v38 = vmul.f32 %v2771_v0, %v3322_v7 }
 0x23e   : > { %v1648_v3 = vmul.f32 %v2773_v50, %v3325_v41 }
 0x23f   : > { %v2310_v63 = vpack.c.bf16 %v1650_v38, %v1649_v55 }
 0x240   : > { %v2305_v2 = vpack.c.bf16 %v1648_v3, %v1647_v31 }
 0x241   : > { %2341 = vst [vmem:[%s3225_s25 + $0x78] sm:$0xff] %v2310_v63  }
 0x242   : > { %2340 = vst [vmem:[%s3225_s25 + $0x70] sm:$0xff] %v2305_v2  }
 0x243 PF: > { %s19_s27 = sadd.s32 1, %s2780_s27  }
 0x244   : > { %p16_p4 = scmp.ge.s32.totalorder %s19_s27, 4  }
 0x246   :  { %18 = sbr.rel (!%p16_p4) target bundleno = 1 (0x1), region = 90 }

// kernel: effnet_forward.3
= control target key start
LH: loop header
LB: loop body
LE: loop exit
PB: predicated region body
PF: predicated region fallthrough
CT: control target
= control target key end

     0   :  { %s4452_s24 = smov 0   ;;  %s6317_s0 = inlined_call_operand.vmem [shape: bf16[2,16,16,128], index: 0, kind: input, shape index: {}]   ;;  %s6318_s1 = inlined_call_operand.vmem [shape: bf16[2,256,128], index: 1, kind: input, shape index: {}]   ;;  %s6319_s2 = inlined_call_operand.vmem [shape: f32[9,128], index: 2, kind: input, shape index: {}]   ;;  %s6320_s3 = inlined_call_operand.vmem [shape: f32[1,128], index: 3, kind: input, shape index: {}]   ;;  %s6321_s4 = inlined_call_operand.vmem [shape: f32[1,128], index: 4, kind: input, shape index: {}]   ;;  %s6322_s5 = inlined_call_operand.vmem [shape: bf16[128,128], index: 5, kind: input, shape index: {}]   ;;  %s6323_s6 = inlined_call_operand.vmem [shape: f32[1,128], index: 6, kind: input, shape index: {}]   ;;  %s6324_s7 = inlined_call_operand.vmem [shape: bf16[128,128], index: 7, kind: input, shape index: {}]   ;;  %s6325_s8 = inlined_call_operand.vmem [shape: f32[1,128], index: 8, kind: input, shape index: {}]   ;;  %s6326_s9 = inlined_call_operand.vmem [shape: bf16[128,128], index: 9, kind: input, shape index: {}]   ;;  %s6327_s10 = inlined_call_operand.vmem [shape: f32[1,128], index: 10, kind: input, shape index: {}]   ;;  %s6328_s11 = inlined_call_operand.vmem [shape: f32[1,128], index: 11, kind: input, shape index: {}]   ;;  %s6329_s12 = inlined_call_operand.vmem [shape: bf16[128,128], index: 12, kind: input, shape index: {}]   ;;  %s6330_s13 = inlined_call_operand.vmem [shape: f32[1,128], index: 13, kind: input, shape index: {}]   ;;  %s6331_s14 = inlined_call_operand.vmem [shape: f32[1,128], index: 14, kind: input, shape index: {}]   ;;  %s6332_s15 = inlined_call_operand.vmem [shape: f32[128,128], index: 15, kind: input, shape index: {}]   ;;  %s6333_s16 = inlined_call_operand.vmem [shape: f32[1,128], index: 16, kind: input, shape index: {}]   ;;  %s6334_s17 = inlined_call_operand.vmem [shape: f32[2,8,128], index: 17, kind: output, shape index: {}]  }
   0x1   :  { %6367 = sst [smem:[#allocation40_spill]] %s6317_s0 }
   0x2   :  { %6368 = sst [smem:[#allocation41_spill]] %s6318_s1 }
   0x3 LB: > { %s3485_s25 = sadd.s32 4294967295, %s4357_s24   ;;  %p3489_p0 = scmp.ge.s32.totalorder %s4357_s24, 1  ;;  %s4357_s24 = sphi %s4452_s24, %s27_s24  }
   0x4   : > { %p497_p1 = scmp.lt.s32.totalorder %s4357_s24, 3 }
   0x6   : > { %p498_p2 = pnand %p3489_p0, %p497_p1 }
   0x8   : > { %501 = sbr.rel (%p498_p2) target bundleno = 1539 (0x603), region = 88 }
   0xf   : > { %v4051_v0 = vld [vmem:[%s6322_s5] sm:$0xff]   ;;  %v749_v1 = vlaneseq  ;;  %v4359_v2 = vmov 0.0   ;;  %v4052_v3 = vld [vmem:[%s6322_s5 + $0x8] sm:$0xff]   ;;  %vm4360_vm0 = vmmov 0   ;;  %p553_p3 = scmp.lt.s32.totalorder %s3485_s25, 1  ;;  %v4053_v5 = vld [vmem:[%s6322_s5 + $0x10] sm:$0xff]  }
  0x10   : > { %3845 = vmatprep.subr.bf16.mxu0 %v4359_v2  ;;  %568 = vst [vmem:[#allocation2] sm:$0xff] %v4359_v2  ;;  %569 = vst [vmem:[#allocation2 + $0x8] sm:$0xff] %v4359_v2  ;;  %3865 = vmatprep.subr.bf16.mxu1 %v4359_v2  ;;  %s6369_s20 = sld [smem:[#allocation40_spill]]  ;;  %v4054_v8 = vld [vmem:[%s6322_s5 + $0x18] sm:$0xff]   ;;  %v4055_v48 = vld [vmem:[%s6322_s5 + $0x20] sm:$0xff]   ;;  %s6450_s0 = sld [smem:[#allocation41_spill]] }
  0x11   : > { %570 = vst [vmem:[#allocation2 + $0x10] sm:$0xff] %v4359_v2  ;;  %571 = vst [vmem:[#allocation2 + $0x18] sm:$0xff] %v4359_v2  ;;  %3846 = vmatpush3.bf16.msra.mxu0 %v4051_v0  ;;  %3861 = vmatprep.mubr.msk.bf16.mxu0 %vm4360_vm0, %v4359_v2  ;;  %v4513_v4 = vshrl.u32 %v749_v1, 7  ;;  %s6452_s25 = smov (!%p553_p3, %s3485_s25), 1  ;;  %v4618_v53 = vld [vmem:[%s6319_s2] sm:$0xff]  ;;  %v4056_v60 = vld [vmem:[%s6322_s5 + $0x28] sm:$0xff]  }
  0x12   : > { %572 = vst [vmem:[#allocation2 + $0x20] sm:$0xff] %v4359_v2  ;;  %575 = vst [vmem:[#allocation2 + $0x38] sm:$0xff] %v4359_v2  ;;  %3847 = vmatprep.subr.bf16.mxu0 %v4359_v2  ;;  %3881 = vmatprep.mubr.msk.bf16.mxu1 %vm4360_vm0, %v4359_v2  ;;  %s3602_s18 = sshll.u32 %s6452_s25, 7 }
  0x13   : > { %576 = vst [vmem:[#allocation2 + $0x40] sm:$0xff] %v4359_v2  ;;  %579 = vst [vmem:[#allocation2 + $0x58] sm:$0xff] %v4359_v2  ;;  %v4534_v6 = vsub.s32 0, %v4513_v4  ;;  %v779_v7 = vsub.s32 1, %v4513_v4  ;;  %v807_v12 = vsub.s32 2, %v4513_v4  ;;  %v835_v13 = vsub.s32 3, %v4513_v4 }
  0x14   : > { %580 = vst [vmem:[#allocation2 + $0x60] sm:$0xff] %v4359_v2  ;;  %583 = vst [vmem:[#allocation2 + $0x78] sm:$0xff] %v4359_v2  ;;  %v863_v14 = vsub.s32 4, %v4513_v4 }
  0x15   : > { %584 = vst [vmem:[#allocation2 + $0x80] sm:$0xff] %v4359_v2  ;;  %587 = vst [vmem:[#allocation2 + $0x98] sm:$0xff] %v4359_v2  ;;  %3848 = vmatpush3.bf16.msra.mxu0 %v4052_v3  ;;  %v4630_v1 = vrot.slane %v4618_v53, %v4534_v6  ;;  %v4635_v3 = vrot.slane %v4618_v53, %v779_v7  ;;  %v4651_v7 = vrot.slane %v4618_v53, %v835_v13 }
  0x16   : > { %588 = vst [vmem:[#allocation2 + $0xa0] sm:$0xff] %v4359_v2  ;;  %591 = vst [vmem:[#allocation2 + $0xb8] sm:$0xff] %v4359_v2  ;;  %3849 = vmatprep.subr.bf16.mxu0 %v4359_v2  ;;  %s4531_s21 = scalar_lea.vmem %s6369_s20, %s3602_s18  ;;  %s5964_s30 = scalar_lea.vmem %s6450_s0, %s3602_s18 }
  0x17   : > { %592 = vst [vmem:[#allocation2 + $0xc0] sm:$0xff] %v4359_v2  ;;  %595 = vst [vmem:[#allocation2 + $0xd8] sm:$0xff] %v4359_v2  ;;  %v3605_v9 = vld [vmem:[%s4531_s21] sm:$0xff]   ;;  %v3732_v10 = vld [vmem:[%s4531_s21 + $0x8] sm:$0xff]  }
  0x18   : > { %596 = vst [vmem:[#allocation2 + $0xe0] sm:$0xff] %v4359_v2  ;;  %599 = vst [vmem:[#allocation2 + $0xf8] sm:$0xff] %v4359_v2  ;;  %v3733_v11 = vld [vmem:[%s4531_s21 + $0x10] sm:$0xff]   ;;  %v4546_v15 = vunpack.c.l.bf16 %v3605_v9  ;;  %v4548_v16 = vunpack.c.h.bf16 %v3605_v9  ;;  %v4550_v17 = vunpack.c.l.bf16 %v3732_v10  ;;  %v4552_v18 = vunpack.c.h.bf16 %v3732_v10  ;;  %v3734_v19 = vld [vmem:[%s4531_s21 + $0x18] sm:$0xff]  }
  0x19   : > { %600 = vst [vmem:[#allocation2 + $0x100] sm:$0xff] %v4359_v2  ;;  %603 = vst [vmem:[#allocation2 + $0x118] sm:$0xff] %v4359_v2  ;;  %v3735_v20 = vld [vmem:[%s4531_s21 + $0x20] sm:$0xff]   ;;  %v3736_v21 = vld [vmem:[%s4531_s21 + $0x28] sm:$0xff]   ;;  %3850 = vmatpush3.bf16.msra.mxu0 %v4053_v5  ;;  %v4557_v22 = vunpack.c.l.bf16 %v3733_v11  ;;  %v4559_v23 = vunpack.c.h.bf16 %v3733_v11  ;;  %v4561_v24 = vunpack.c.l.bf16 %v3734_v19  ;;  %v4563_v25 = vunpack.c.h.bf16 %v3734_v19 }
  0x1a   : > { %604 = vst [vmem:[#allocation2 + $0x120] sm:$0xff] %v4359_v2  ;;  %607 = vst [vmem:[#allocation2 + $0x138] sm:$0xff] %v4359_v2  ;;  %v3737_v26 = vld [vmem:[%s4531_s21 + $0x30] sm:$0xff]   ;;  %v3738_v27 = vld [vmem:[%s4531_s21 + $0x38] sm:$0xff]   ;;  %3851 = vmatprep.subr.bf16.mxu0 %v4359_v2  ;;  %v4571_v29 = vunpack.c.l.bf16 %v3735_v20  ;;  %v4573_v30 = vunpack.c.h.bf16 %v3735_v20  ;;  %v4575_v31 = vunpack.c.l.bf16 %v3736_v21  ;;  %v4577_v32 = vunpack.c.h.bf16 %v3736_v21 }
  0x1b   : > { %608 = vst [vmem:[#allocation2 + $0x140] sm:$0xff] %v4359_v2  ;;  %611 = vst [vmem:[#allocation2 + $0x158] sm:$0xff] %v4359_v2  ;;  %v4568_v28 = vld [vmem:[%s4531_s21 + $0x40] sm:$0xff]   ;;  %v3740_v33 = vld [vmem:[%s4531_s21 + $0x48] sm:$0xff]   ;;  %v4586_v36 = vunpack.c.l.bf16 %v3737_v26  ;;  %v4588_v37 = vunpack.c.h.bf16 %v3737_v26  ;;  %v4590_v38 = vunpack.c.l.bf16 %v3738_v27  ;;  %v4592_v39 = vunpack.c.h.bf16 %v3738_v27 }
  0x1c   : > { %612 = vst [vmem:[#allocation2 + $0x160] sm:$0xff] %v4359_v2  ;;  %615 = vst [vmem:[#allocation2 + $0x178] sm:$0xff] %v4359_v2  ;;  %v3741_v34 = vld [vmem:[%s4531_s21 + $0x50] sm:$0xff]   ;;  %v3742_v35 = vld [vmem:[%s4531_s21 + $0x58] sm:$0xff]   ;;  %v6336_v42 = vunpack.c.l.bf16 %v4568_v28  ;;  %v6335_v43 = vunpack.c.h.bf16 %v4568_v28  ;;  %v3642_v44 = vunpack.c.l.bf16 %v3740_v33  ;;  %v3643_v45 = vunpack.c.h.bf16 %v3740_v33 }
  0x1d   : > { %616 = vst [vmem:[#allocation2 + $0x180] sm:$0xff] %v4359_v2  ;;  %619 = vst [vmem:[#allocation2 + $0x198] sm:$0xff] %v4359_v2  ;;  %v3743_v40 = vld [vmem:[%s4531_s21 + $0x60] sm:$0xff]   ;;  %v3744_v41 = vld [vmem:[%s4531_s21 + $0x68] sm:$0xff]   ;;  %3852 = vmatpush3.bf16.msra.mxu0 %v4054_v8  ;;  %v3646_v49 = vunpack.c.l.bf16 %v3741_v34  ;;  %v3647_v50 = vunpack.c.h.bf16 %v3741_v34  ;;  %v3650_v51 = vunpack.c.l.bf16 %v3742_v35  ;;  %v3651_v52 = vunpack.c.h.bf16 %v3742_v35 }
  0x1e   : > { %620 = vst [vmem:[#allocation2 + $0x1a0] sm:$0xff] %v4359_v2  ;;  %623 = vst [vmem:[#allocation2 + $0x1b8] sm:$0xff] %v4359_v2  ;;  %v3745_v46 = vld [vmem:[%s4531_s21 + $0x70] sm:$0xff]   ;;  %v3746_v47 = vld [vmem:[%s4531_s21 + $0x78] sm:$0xff]   ;;  %3853 = vmatprep.subr.bf16.mxu0 %v4359_v2  ;;  %v3654_v54 = vunpack.c.l.bf16 %v3743_v40  ;;  %v3655_v55 = vunpack.c.h.bf16 %v3743_v40  ;;  %v3658_v56 = vunpack.c.l.bf16 %v3744_v41  ;;  %v3659_v57 = vunpack.c.h.bf16 %v3744_v41  ;;  %s3494_s21 = sshll.u32 %s6452_s25, 3 }
  0x1f   : > { %624 = vst [vmem:[#allocation2 + $0x1c0] sm:$0xff] %v4359_v2  ;;  %627 = vst [vmem:[#allocation2 + $0x1d8] sm:$0xff] %v4359_v2  ;;  %v741_v58 = vld [vmem:[#allocation2 + $0x7] sm:$0xff]  ;;  %v742_v59 = vld [vmem:[#allocation2 + $0xf] sm:$0xff]  ;;  %v3662_v61 = vunpack.c.l.bf16 %v3745_v46  ;;  %v3663_v62 = vunpack.c.h.bf16 %v3745_v46  ;;  %v3666_v63 = vunpack.c.l.bf16 %v3746_v47  ;;  %v3667_v0 = vunpack.c.h.bf16 %v3746_v47  ;;  %s566_s23 = scalar_lea.vmem %s6334_s17, %s3494_s21 }
  0x20   : > { %628 = vst [vmem:[#allocation2 + $0x1e0] sm:$0xff] %v4359_v2  ;;  %631 = vst [vmem:[#allocation2 + $0x1f8] sm:$0xff] %v4359_v2  ;;  %v797_v5 = vld [vmem:[#allocation2 + $0x9] sm:$0xff]  ;;  %v4640_v8 = vrot.slane %v4618_v53, %v807_v12  ;;  %v4656_v12 = vrot.slane %v4618_v53, %v863_v14  ;;  %v753_v13 = vmul.f32 %v4630_v1, %v741_v58  ;;  %v781_v46 = vmul.f32 0.0, %v4635_v3 }
  0x21   : > { %632 = vst [vmem:[#allocation2 + $0x200] sm:$0xff] %v4359_v2  ;;  %635 = vst [vmem:[#allocation2 + $0x218] sm:$0xff] %v4359_v2  ;;  %3854 = vmatpush3.bf16.msra.mxu0 %v4055_v48  ;;  %v754_v33 = vmul.f32 %v4630_v1, %v742_v59  ;;  %v783_v47 = vmul.f32 %v4546_v15, %v4635_v3  ;;  %v784_v48 = vmul.f32 %v4548_v16, %v4635_v3 }
  0x22   : > { %636 = vst [vmem:[#allocation2 + $0x220] sm:$0xff] %v4359_v2  ;;  %637 = vst [vmem:[#allocation2 + $0x228] sm:$0xff] %v4359_v2  ;;  %3855 = vmatprep.subr.bf16.mxu0 %v4359_v2  ;;  %v809_v58 = vmul.f32 %v4640_v8, %v797_v5  ;;  %v789_v59 = vadd.f32 %v781_v46, %v753_v13 }
  0x23   : > { %638 = vst [vmem:[#allocation2 + $0x230] sm:$0xff] %v4359_v2  ;;  %639 = vst [vmem:[#allocation2 + $0x238] sm:$0xff] %v4359_v2 }
  0x24   : > { %6370 = vst [vmem:[#allocation4_spill] sm:$0xff] %v4534_v6  ;;  %6371 = vst [vmem:[#allocation5_spill] sm:$0xff] %v4568_v28 }
  0x25   : > { %705 = vst [vmem:[#allocation2 + $0x28] sm:$0xff] %v4546_v15  ;;  %706 = vst [vmem:[#allocation2 + $0x30] sm:$0xff] %v4548_v16  ;;  %3856 = vmatpush3.bf16.msra.mxu0 %v4056_v60  ;;  %v790_v60 = vadd.f32 %v781_v46, %v754_v33 }
  0x26   : > { %707 = vst [vmem:[#allocation2 + $0x48] sm:$0xff] %v4550_v17  ;;  %708 = vst [vmem:[#allocation2 + $0x50] sm:$0xff] %v4552_v18  ;;  %3857 = vmatprep.subr.bf16.mxu0 %v4359_v2 }
  0x27   : > { %6372 = vst [vmem:[#allocation6_spill] sm:$0xff] %v4592_v39  ;;  %709 = vst [vmem:[#allocation2 + $0x68] sm:$0xff] %v4557_v22 }
  0x28   : > { %710 = vst [vmem:[#allocation2 + $0x70] sm:$0xff] %v4559_v23  ;;  %711 = vst [vmem:[#allocation2 + $0x88] sm:$0xff] %v4561_v24 }
  0x29   : > { %712 = vst [vmem:[#allocation2 + $0x90] sm:$0xff] %v4563_v25  ;;  %713 = vst [vmem:[#allocation2 + $0xa8] sm:$0xff] %v4571_v29 }
  0x2a   : > { %714 = vst [vmem:[#allocation2 + $0xb0] sm:$0xff] %v4573_v30  ;;  %715 = vst [vmem:[#allocation2 + $0xc8] sm:$0xff] %v4575_v31 }
  0x2b   : > { %716 = vst [vmem:[#allocation2 + $0xd0] sm:$0xff] %v4577_v32  ;;  %717 = vst [vmem:[#allocation2 + $0xe8] sm:$0xff] %v4586_v36 }
  0x2c   : > { %718 = vst [vmem:[#allocation2 + $0xf0] sm:$0xff] %v4588_v37  ;;  %719 = vst [vmem:[#allocation2 + $0x108] sm:$0xff] %v4590_v38  ;;  %v4642_v9 = vld [vmem:[#allocation2 + $0x27] sm:$0xff]  ;;  %v4644_v10 = vld [vmem:[#allocation2 + $0x2f] sm:$0xff] }
  0x2d   : > { %720 = vst [vmem:[#allocation2 + $0x110] sm:$0xff] %v4592_v39  ;;  %721 = vst [vmem:[#allocation2 + $0x128] sm:$0xff] %v6336_v42  ;;  %v4646_v11 = vld [vmem:[#allocation2 + $0x47] sm:$0xff]  ;;  %v4661_v21 = vld [vmem:[#allocation2 + $0x4f] sm:$0xff]  ;;  %v755_v14 = vmul.f32 %v4630_v1, %v4642_v9  ;;  %v756_v34 = vmul.f32 %v4630_v1, %v4644_v10  ;;  %v838_v39 = vmul.f32 %v4651_v7, %v4644_v10 }
  0x2e   : > { %722 = vst [vmem:[#allocation2 + $0x130] sm:$0xff] %v6335_v43  ;;  %723 = vst [vmem:[#allocation2 + $0x148] sm:$0xff] %v3642_v44  ;;  %v4663_v26 = vld [vmem:[#allocation2 + $0x67] sm:$0xff]  ;;  %v757_v35 = vmul.f32 %v4630_v1, %v4646_v11  ;;  %v758_v40 = vmul.f32 %v4630_v1, %v4661_v21 }
  0x2f   : > { %724 = vst [vmem:[#allocation2 + $0x150] sm:$0xff] %v3643_v45  ;;  %725 = vst [vmem:[#allocation2 + $0x168] sm:$0xff] %v3646_v49  ;;  %v4665_v27 = vld [vmem:[#allocation2 + $0x6f] sm:$0xff]  ;;  %v759_v41 = vmul.f32 %v4630_v1, %v4663_v26  ;;  %v785_v49 = vmul.f32 %v4550_v17, %v4635_v3 }
  0x30   : > { %726 = vst [vmem:[#allocation2 + $0x170] sm:$0xff] %v3647_v50  ;;  %727 = vst [vmem:[#allocation2 + $0x188] sm:$0xff] %v3650_v51  ;;  %v760_v44 = vmul.f32 %v4630_v1, %v4665_v27  ;;  %v4057_v45 = vld [vmem:[%s6322_s5 + $0x30] sm:$0xff]   ;;  %v786_v51 = vmul.f32 %v4552_v18, %v4635_v3 }
  0x31   : > { %728 = vst [vmem:[#allocation2 + $0x190] sm:$0xff] %v3651_v52  ;;  %729 = vst [vmem:[#allocation2 + $0x1a8] sm:$0xff] %v3654_v54  ;;  %v798_v50 = vld [vmem:[#allocation2 + $0x11] sm:$0xff]  ;;  %v787_v52 = vmul.f32 %v4557_v22, %v4635_v3  ;;  %v788_v54 = vmul.f32 %v4559_v23, %v4635_v3  ;;  %v793_v42 = vadd.f32 %v785_v49, %v757_v35  ;;  %3858 = vmatpush3.bf16.msra.mxu0 %v4057_v45 }
  0x32   : > { %730 = vst [vmem:[#allocation2 + $0x1b0] sm:$0xff] %v3655_v55  ;;  %731 = vst [vmem:[#allocation2 + $0x1c8] sm:$0xff] %v3658_v56  ;;  %v4697_v55 = vld [vmem:[#allocation2 + $0x29] sm:$0xff]  ;;  %v4699_v56 = vld [vmem:[#allocation2 + $0x31] sm:$0xff]  ;;  %v794_v20 = vadd.f32 %v786_v51, %v758_v40  ;;  %v810_v28 = vmul.f32 %v4640_v8, %v798_v50  ;;  %3859 = vmatprep.subr.bf16.mxu0 %v4359_v2  ;;  %v837_v51 = vmul.f32 %v4651_v7, %v4642_v9 }
  0x33   : > { %732 = vst [vmem:[#allocation2 + $0x1d0] sm:$0xff] %v3659_v57  ;;  %733 = vst [vmem:[#allocation2 + $0x1e8] sm:$0xff] %v3662_v61  ;;  %v4701_v57 = vld [vmem:[#allocation2 + $0x49] sm:$0xff]  ;;  %v791_v61 = vadd.f32 %v783_v47, %v755_v14  ;;  %v4709_v43 = vld [vmem:[#allocation2 + $0x71] sm:$0xff]  ;;  %v795_v19 = vadd.f32 %v787_v52, %v759_v41  ;;  %v796_v6 = vadd.f32 %v788_v54, %v760_v44 }
  0x34   : > { %734 = vst [vmem:[#allocation2 + $0x1f0] sm:$0xff] %v3663_v62  ;;  %735 = vst [vmem:[#allocation2 + $0x208] sm:$0xff] %v3666_v63  ;;  %v792_v62 = vadd.f32 %v784_v48, %v756_v34  ;;  %v4705_v63 = vld [vmem:[#allocation2 + $0x51] sm:$0xff]  ;;  %v811_v5 = vmul.f32 %v4640_v8, %v4697_v55  ;;  %v812_v13 = vmul.f32 %v4640_v8, %v4699_v56  ;;  %v4730_v52 = vld [vmem:[#allocation2 + $0x87] sm:$0xff] }
  0x35   : > { %736 = vst [vmem:[#allocation2 + $0x210] sm:$0xff] %v3667_v0  ;;  %v4707_v0 = vld [vmem:[#allocation2 + $0x69] sm:$0xff]  ;;  %v813_v33 = vmul.f32 %v4640_v8, %v4701_v57  ;;  %v4058_v14 = vld [vmem:[%s6322_s5 + $0x38] sm:$0xff]   ;;  %v814_v34 = vmul.f32 %v4640_v8, %v4705_v63  ;;  %v816_v40 = vmul.f32 %v4640_v8, %v4709_v43  ;;  %v817_v41 = vadd.f32 %v809_v58, %v789_v59 }
  0x36   : > { %v815_v35 = vmul.f32 %v4640_v8, %v4707_v0  ;;  %v818_v44 = vadd.f32 %v810_v28, %v790_v60  ;;  %v819_v46 = vadd.f32 %v811_v5, %v791_v61  ;;  %v820_v47 = vadd.f32 %v812_v13, %v792_v62  ;;  %v4732_v54 = vld [vmem:[#allocation2 + $0x8f] sm:$0xff]  ;;  %3860 = vmatpush3.bf16.msra.mxu0 %v4058_v14 }
  0x37   : > { %v821_v45 = vadd.f32 %v813_v33, %v793_v42  ;;  %v822_v48 = vadd.f32 %v814_v34, %v794_v20  ;;  %v824_v50 = vadd.f32 %v816_v40, %v796_v6  ;;  %v839_v2 = vmul.f32 %v4651_v7, %v4646_v11 }
  0x38   : > { %v823_v49 = vadd.f32 %v815_v35, %v795_v19  ;;  %v840_v28 = vmul.f32 %v4651_v7, %v4661_v21  ;;  %v841_v42 = vmul.f32 %v4651_v7, %v4663_v26  ;;  %v842_v6 = vmul.f32 %v4651_v7, %v4665_v27 }
  0x39   : > { %v843_v9 = vmul.f32 %v4651_v7, %v4730_v52  ;;  %v844_v19 = vmul.f32 %v4651_v7, %v4732_v54  ;;  %v845_v10 = vadd.f32 %v837_v51, %v817_v41  ;;  %v846_v20 = vadd.f32 %v838_v39, %v818_v44 }
  0x3a   : > { %v847_v58 = vadd.f32 %v839_v2, %v819_v46  ;;  %v848_v59 = vadd.f32 %v840_v28, %v820_v47  ;;  %v849_v60 = vadd.f32 %v841_v42, %v821_v45  ;;  %v850_v61 = vadd.f32 %v842_v6, %v822_v48 }
  0x3b   : > { %v851_v62 = vadd.f32 %v843_v9, %v823_v49  ;;  %v852_v5 = vadd.f32 %v844_v19, %v824_v50  ;;  %v865_v13 = vmul.f32 %v4546_v15, %v4656_v12  ;;  %v866_v33 = vmul.f32 %v4548_v16, %v4656_v12 }
  0x3c   : > { %v867_v14 = vmul.f32 %v4550_v17, %v4656_v12  ;;  %v868_v34 = vmul.f32 %v4552_v18, %v4656_v12  ;;  %v869_v39 = vmul.f32 %v4557_v22, %v4656_v12  ;;  %v870_v35 = vmul.f32 %v4559_v23, %v4656_v12 }
  0x3d   : > { %v871_v40 = vmul.f32 %v4561_v24, %v4656_v12  ;;  %v872_v15 = vmul.f32 %v4563_v25, %v4656_v12  ;;  %v873_v41 = vadd.f32 %v865_v13, %v845_v10  ;;  %v874_v16 = vadd.f32 %v866_v33, %v846_v20  ;;  %v4795_v13 = vld [vmem:[#allocation2 + $0x89] sm:$0xff] }
  0x3e   : > { %v875_v44 = vadd.f32 %v867_v14, %v847_v58  ;;  %v876_v46 = vadd.f32 %v868_v34, %v848_v59  ;;  %v877_v47 = vadd.f32 %v869_v39, %v849_v60  ;;  %v878_v45 = vadd.f32 %v870_v35, %v850_v61 }
  0x3f   : > { %v879_v48 = vadd.f32 %v871_v40, %v851_v62  ;;  %v880_v49 = vadd.f32 %v872_v15, %v852_v5  ;;  %v6373_v50 = vsub.s32 5, %v4513_v4  ;;  %v6374_v2 = vsub.s32 6, %v4513_v4  ;;  %v4813_v15 = vld [vmem:[#allocation2 + $0x91] sm:$0xff] }
  0x40   : > { %v948_v42 = vsub.s32 7, %v4513_v4  ;;  %v4790_v4 = vld [vmem:[%s6319_s2 + $0x8] ss:$0 sm:$0xff] }
  0x41   : > { %v4767_v51 = vrot.slane %v4618_v53, %v6373_v50  ;;  %v4772_v28 = vrot.slane %v4618_v53, %v6374_v2  ;;  %v4821_v50 = vld [vmem:[#allocation2 + $0xaf] sm:$0xff] }
  0x42   : > { %v4793_v5 = vrot.slane %v4618_v53, %v948_v42 }
  0x43   : > { %v893_v6 = vmul.f32 %v4767_v51, %v4697_v55  ;;  %v894_v9 = vmul.f32 %v4767_v51, %v4699_v56  ;;  %v895_v19 = vmul.f32 %v4767_v51, %v4701_v57  ;;  %v896_v10 = vmul.f32 %v4767_v51, %v4705_v63 }
  0x44   : > { %v897_v20 = vmul.f32 %v4767_v51, %v4707_v0  ;;  %v898_v58 = vmul.f32 %v4767_v51, %v4709_v43  ;;  %v922_v33 = vmul.f32 %v4772_v28, %v4646_v11  ;;  %v923_v14 = vmul.f32 %v4772_v28, %v4661_v21  ;;  %v4815_v21 = vld [vmem:[#allocation2 + $0xa7] sm:$0xff] }
  0x45   : > { %v901_v55 = vadd.f32 %v893_v6, %v873_v41  ;;  %v902_v59 = vadd.f32 %v894_v9, %v874_v16  ;;  %v903_v56 = vadd.f32 %v895_v19, %v875_v44  ;;  %v904_v60 = vadd.f32 %v896_v10, %v876_v46 }
  0x46   : > { %v905_v61 = vadd.f32 %v897_v20, %v877_v47  ;;  %v906_v62 = vadd.f32 %v898_v58, %v878_v45  ;;  %v924_v34 = vmul.f32 %v4772_v28, %v4663_v26  ;;  %v925_v39 = vmul.f32 %v4772_v28, %v4665_v27 }
  0x47   : > { %v899_v35 = vmul.f32 %v4767_v51, %v4795_v13  ;;  %v926_v53 = vmul.f32 %v4772_v28, %v4730_v52  ;;  %v927_v40 = vmul.f32 %v4772_v28, %v4732_v54  ;;  %v978_v11 = vmul.f32 %v4790_v4, %v4701_v57 }
  0x48   : > { %v930_v26 = vadd.f32 %v922_v33, %v901_v55  ;;  %v931_v41 = vadd.f32 %v923_v14, %v902_v59  ;;  %v932_v16 = vadd.f32 %v924_v34, %v903_v56  ;;  %v933_v27 = vadd.f32 %v925_v39, %v904_v60  ;;  %v4849_v60 = vld [vmem:[%s6321_s4] ss:$0 sm:$0xff] }
  0x49   : > { %v900_v44 = vmul.f32 %v4767_v51, %v4813_v15  ;;  %v934_v46 = vadd.f32 %v926_v53, %v905_v61  ;;  %v935_v47 = vadd.f32 %v927_v40, %v906_v62  ;;  %v979_v45 = vmul.f32 %v4790_v4, %v4705_v63 }
  0x4a   : > { %v950_v57 = vmul.f32 %v4550_v17, %v4793_v5  ;;  %v951_v2 = vmul.f32 %v4552_v18, %v4793_v5  ;;  %v952_v42 = vmul.f32 %v4557_v22, %v4793_v5  ;;  %v953_v6 = vmul.f32 %v4559_v23, %v4793_v5  ;;  %v4840_v17 = vld [vmem:[%s6320_s3] ss:$0 sm:$0xff] }
  0x4b   : > { %v907_v9 = vadd.f32 %v899_v35, %v879_v48  ;;  %v928_v19 = vmul.f32 %v4772_v28, %v4815_v21  ;;  %v954_v63 = vmul.f32 %v4561_v24, %v4793_v5  ;;  %v955_v10 = vmul.f32 %v4563_v25, %v4793_v5 }
  0x4c   : > { %v958_v18 = vadd.f32 %v950_v57, %v930_v26  ;;  %v959_v22 = vadd.f32 %v951_v2, %v931_v41  ;;  %v960_v20 = vadd.f32 %v952_v42, %v932_v16  ;;  %v961_v58 = vadd.f32 %v953_v6, %v933_v27 }
  0x4d   : > { %v908_v23 = vadd.f32 %v900_v44, %v880_v49  ;;  %v929_v48 = vmul.f32 %v4772_v28, %v4821_v50  ;;  %v962_v55 = vadd.f32 %v954_v63, %v934_v46  ;;  %v963_v59 = vadd.f32 %v955_v10, %v935_v47  ;;  %v4867_v46 = vld [vmem:[#allocation2 + $0xa9] sm:$0xff]  ;;  %v4869_v47 = vld [vmem:[#allocation2 + $0xb1] sm:$0xff] }
  0x4e   : > { %v980_v56 = vmul.f32 %v4790_v4, %v4707_v0  ;;  %v981_v61 = vmul.f32 %v4790_v4, %v4709_v43  ;;  %v982_v62 = vmul.f32 %v4790_v4, %v4795_v13  ;;  %v986_v49 = vadd.f32 %v978_v11, %v958_v18 }
  0x4f   : > { %v987_v33 = vadd.f32 %v979_v45, %v959_v22  ;;  %v936_v14 = vadd.f32 %v928_v19, %v907_v9  ;;  %v937_v39 = vadd.f32 %v929_v48, %v908_v23  ;;  %v956_v35 = vmul.f32 %v4571_v29, %v4793_v5 }
  0x50   : > { %v988_v34 = vadd.f32 %v980_v56, %v960_v20  ;;  %v957_v0 = vmul.f32 %v4573_v30, %v4793_v5  ;;  %v1000_v53 = vmul.f32 %v4840_v17, %v986_v49  ;;  %v983_v40 = vmul.f32 %v4790_v4, %v4813_v15  ;;  %v4903_v49 = vld [vmem:[#allocation2 + $0xcf] sm:$0xff] }
  0x51   : > { %v1001_v43 = vmul.f32 %v4840_v17, %v987_v33  ;;  %v989_v26 = vadd.f32 %v981_v61, %v961_v58  ;;  %v990_v41 = vadd.f32 %v982_v62, %v962_v55  ;;  %v964_v27 = vadd.f32 %v956_v35, %v936_v14  ;;  %v4901_v62 = vld [vmem:[#allocation2 + $0xc7] sm:$0xff] }
  0x52   : > { %v1002_v11 = vmul.f32 %v4840_v17, %v988_v34  ;;  %v4865_v16 = vadd.f32 %v4849_v60, %v1000_v53  ;;  %v965_v44 = vadd.f32 %v957_v0, %v937_v39  ;;  %v984_v45 = vmul.f32 %v4790_v4, %v4867_v46 }
  0x53   : > { %v985_v57 = vmul.f32 %v4790_v4, %v4869_v47  ;;  %v991_v2 = vadd.f32 %v983_v40, %v963_v59  ;;  %v4876_v42 = vadd.f32 %v4849_v60, %v1001_v43  ;;  %v1003_v6 = vmul.f32 %v4840_v17, %v989_v26 }
  0x54   : > { %6375 = vst [vmem:[#allocation7_spill] sm:$0xff] %v4865_v16  ;;  %v1004_v9 = vmul.f32 %v4840_v17, %v990_v41  ;;  %v4881_v19 = vadd.f32 %v4849_v60, %v1002_v11  ;;  %v3498_v63 = vmul.f32 -1.442695, %v4865_v16  ;;  %v992_v10 = vadd.f32 %v984_v45, %v964_v27  ;;  %v4930_v41 = vld [vmem:[#allocation2 + $0xef] sm:$0xff]  ;;  %v5304_v16 = vld [vmem:[#allocation2 + $0x1a7] sm:$0xff] }
  0x55   : > { %6376 = vst [vmem:[#allocation8_spill] sm:$0xff] %v4876_v42  ;;  %v993_v18 = vadd.f32 %v985_v57, %v965_v44  ;;  %v1005_v22 = vmul.f32 %v4840_v17, %v991_v2  ;;  %v3499_v20 = vmul.f32 -1.442695, %v4876_v42  ;;  %v4887_v58 = vadd.f32 %v4849_v60, %v1003_v6  ;;  %v4932_v57 = vld [vmem:[#allocation2 + $0xc9] sm:$0xff]  ;;  %v4934_v2 = vld [vmem:[#allocation2 + $0xd1] sm:$0xff] }
  0x56   : > { %6377 = vst [vmem:[#allocation9_spill] sm:$0xff] %v4881_v19  ;;  %v4890_v23 = vadd.f32 %v4849_v60, %v1004_v9  ;;  %v3500_v48 = vmul.f32 -1.442695, %v4881_v19  ;;  %v1103_v55 = vmul.f32 %v4730_v52, %v4630_v1  ;;  %4083 = vpow2.f32 %v3498_v63 }
  0x57   : > { %6378 = vst [vmem:[#allocation10_spill] sm:$0xff] %v4887_v58  ;;  %v1104_v59 = vmul.f32 %v4732_v54, %v4630_v1  ;;  %v1105_v56 = vmul.f32 %v4815_v21, %v4630_v1  ;;  %v1106_v61 = vmul.f32 %v4821_v50, %v4630_v1  ;;  %v1127_v33 = vmul.f32 %v4561_v24, %v4635_v3 }
  0x58   : > { %6379 = vst [vmem:[#allocation11_spill] sm:$0xff] %v4890_v23  ;;  %v1128_v52 = vmul.f32 %v4563_v25, %v4635_v3  ;;  %v1129_v14 = vmul.f32 %v4571_v29, %v4635_v3  ;;  %v1130_v54 = vmul.f32 %v4573_v30, %v4635_v3  ;;  %v1006_v34 = vmul.f32 %v4840_v17, %v992_v10  ;;  %v4920_v25 = vld [vmem:[#allocation2 + $0xe7] sm:$0xff] }
  0x59   : > { %v1007_v39 = vmul.f32 %v4840_v17, %v993_v18  ;;  %4085 = vpow2.f32 %v3499_v20  ;;  %v4916_v35 = vadd.f32 %v4849_v60, %v1005_v22  ;;  %v3501_v24 = vmul.f32 -1.442695, %v4887_v58 }
  0x5a   : > { %4087 = vpow2.f32 %v3500_v48  ;;  %v3502_v0 = vmul.f32 -1.442695, %v4890_v23  ;;  %v1107_v53 = vmul.f32 %v4901_v62, %v4630_v1  ;;  %v1108_v40 = vmul.f32 %v4903_v49, %v4630_v1 }
  0x5b   : > { %6380 = vst [vmem:[#allocation12_spill] sm:$0xff] %v4916_v35  ;;  %v1131_v43 = vmul.f32 %v4575_v31, %v4635_v3  ;;  %v1132_v26 = vmul.f32 %v4577_v32, %v4635_v3  ;;  %v1135_v11 = vadd.f32 %v1127_v33, %v1103_v55  ;;  %v1136_v27 = vadd.f32 %v1128_v52, %v1104_v59  ;;  %v4960_v52 = vld [vmem:[#allocation2 + $0xe9] sm:$0xff] }
  0x5c   : > { %v1137_v44 = vadd.f32 %v1129_v14, %v1105_v56  ;;  %v1138_v45 = vadd.f32 %v1130_v54, %v1106_v61  ;;  %v1151_v6 = vmul.f32 %v4795_v13, %v4640_v8  ;;  %v1152_v9 = vmul.f32 %v4813_v15, %v4640_v8  ;;  %v4962_v14 = vld [vmem:[#allocation2 + $0xf1] sm:$0xff] }
  0x5d   : > { %v1153_v63 = vmul.f32 %v4867_v46, %v4640_v8  ;;  %v1154_v10 = vmul.f32 %v4869_v47, %v4640_v8  ;;  %v4945_v18 = vadd.f32 %v4849_v60, %v1006_v34  ;;  %4089 = vpow2.f32 %v3501_v24 }
  0x5e   : > { %v3503_v22 = vmul.f32 -1.442695, %v4916_v35  ;;  %v1109_v20 = vmul.f32 %v4920_v25, %v4630_v1  ;;  %4091 = vpow2.f32 %v3502_v0  ;;  %v1110_v13 = vmul.f32 %v4930_v41, %v4630_v1 }
  0x5f   : > { %6381 = vst [vmem:[#allocation13_spill] sm:$0xff] %v4945_v18  ;;  %v1133_v15 = vmul.f32 %v4586_v36, %v4635_v3  ;;  %v1134_v48 = vmul.f32 %v4588_v37, %v4635_v3  ;;  %v1139_v55 = vadd.f32 %v1131_v43, %v1107_v53  ;;  %v1140_v59 = vadd.f32 %v1132_v26, %v1108_v40 }
  0x60   : > { %v1155_v56 = vmul.f32 %v4932_v57, %v4640_v8  ;;  %v1156_v61 = vmul.f32 %v4934_v2, %v4640_v8  ;;  %v4084_v33 = vpop.eup %4083  ;;  %v1159_v54 = vadd.f32 %v1151_v6, %v1135_v11  ;;  %v1160_v34 = vadd.f32 %v1152_v9, %v1136_v27 }
  0x61   : > { %v1161_v24 = vadd.f32 %v1153_v63, %v1137_v44  ;;  %v1162_v0 = vadd.f32 %v1154_v10, %v1138_v45  ;;  %v1176_v35 = vmul.f32 %v4815_v21, %v4651_v7  ;;  %v1177_v53 = vmul.f32 %v4821_v50, %v4651_v7 }
  0x62   : > { %v1178_v40 = vmul.f32 %v4901_v62, %v4651_v7  ;;  %v1179_v43 = vmul.f32 %v4903_v49, %v4651_v7  ;;  %v4973_v23 = vadd.f32 %v4849_v60, %v1007_v39  ;;  %4093 = vpow2.f32 %v3503_v22 }
  0x63   : > { %v4086_v26 = vpop.eup %4085  ;;  %v3504_v11 = vmul.f32 -1.442695, %v4945_v18  ;;  %v1141_v44 = vadd.f32 %v1133_v15, %v1109_v20  ;;  %v1142_v45 = vadd.f32 %v1134_v48, %v1110_v13  ;;  %v1157_v21 = vmul.f32 %v4960_v52, %v4640_v8 }
  0x64   : > { %6382 = vst [vmem:[#allocation14_spill] sm:$0xff] %v4973_v23  ;;  %v4088_v27 = vpop.eup %4087  ;;  %v1158_v50 = vmul.f32 %v4962_v14, %v4640_v8  ;;  %v1163_v6 = vadd.f32 %v1155_v56, %v1139_v55  ;;  %v1164_v9 = vadd.f32 %v1156_v61, %v1140_v59  ;;  %v1180_v63 = vmul.f32 %v4920_v25, %v4651_v7 }
  0x65   : > { %v1181_v39 = vmul.f32 %v4930_v41, %v4651_v7  ;;  %v1184_v10 = vadd.f32 %v1176_v35, %v1159_v54  ;;  %v1185_v22 = vadd.f32 %v1177_v53, %v1160_v34  ;;  %v1186_v18 = vadd.f32 %v1178_v40, %v1161_v24  ;;  %v4993_v34 = vld [vmem:[#allocation2 + $0x107] sm:$0xff] }
  0x66   : > { %v1187_v58 = vadd.f32 %v1179_v43, %v1162_v0  ;;  %v1200_v20 = vmul.f32 %v4571_v29, %v4656_v12  ;;  %v1201_v13 = vmul.f32 %v4573_v30, %v4656_v12  ;;  %v1202_v15 = vmul.f32 %v4575_v31, %v4656_v12  ;;  %v4995_v29 = vld [vmem:[#allocation2 + $0x10f] sm:$0xff] }
  0x67   : > { %v1203_v48 = vmul.f32 %v4577_v32, %v4656_v12  ;;  %v4090_v55 = vpop.eup %4089  ;;  %4095 = vpow2.f32 %v3504_v11  ;;  %v3505_v59 = vmul.f32 -1.442695, %v4973_v23  ;;  %v1046_v35 = vadd.f32 1.0, %v4084_v33 }
  0x68   : > { %v4092_v56 = vpop.eup %4091  ;;  %v1165_v61 = vadd.f32 %v1157_v21, %v1141_v44  ;;  %v1166_v54 = vadd.f32 %v1158_v50, %v1142_v45  ;;  %v1188_v24 = vadd.f32 %v1180_v63, %v1163_v6  ;;  %v1204_v30 = vmul.f32 %v4586_v36, %v4656_v12 }
  0x69   : > { %v1182_v0 = vmul.f32 %v4993_v34, %v4651_v7  ;;  %v1183_v53 = vmul.f32 %v4995_v29, %v4651_v7  ;;  %v1189_v40 = vadd.f32 %v1181_v39, %v1164_v9  ;;  %v1205_v33 = vmul.f32 %v4588_v37, %v4656_v12 }
  0x6a   : > { %v1208_v43 = vadd.f32 %v1200_v20, %v1184_v10  ;;  %v1209_v11 = vadd.f32 %v1201_v13, %v1185_v22  ;;  %v1210_v44 = vadd.f32 %v1202_v15, %v1186_v18  ;;  %v1211_v45 = vadd.f32 %v1203_v48, %v1187_v58  ;;  %v6383_v13 = vld [vmem:[#allocation6_spill] sm:$0xff] }
  0x6b   : > { %v1224_v21 = vmul.f32 %v4867_v46, %v4767_v51  ;;  %v1225_v50 = vmul.f32 %v4869_v47, %v4767_v51  ;;  %v1226_v6 = vmul.f32 %v4932_v57, %v4767_v51  ;;  %v1227_v63 = vmul.f32 %v4934_v2, %v4767_v51 }
  0x6c   : > { %v5013_v9 = vpop.eup %4093  ;;  %4097 = vpow2.f32 %v3505_v59  ;;  %v1047_v39 = vadd.f32 1.0, %v4086_v26  ;;  %v1212_v10 = vadd.f32 %v1204_v30, %v1188_v24  ;;  %v1228_v58 = vmul.f32 %v4960_v52, %v4767_v51 }
  0x6d   : > { %v1048_v18 = vadd.f32 1.0, %v4088_v27  ;;  %v5017_v22 = vadd.f32 1.0, %v4090_v55  ;;  %4099 = vrcp.f32 %v1046_v35  ;;  %v1190_v46 = vadd.f32 %v1182_v0, %v1165_v61  ;;  %v5033_v0 = vld [vmem:[#allocation2 + $0x111] sm:$0xff] }
  0x6e   : > { %v1191_v47 = vadd.f32 %v1183_v53, %v1166_v54  ;;  %v1206_v20 = vmul.f32 %v4590_v38, %v4656_v12  ;;  %v1207_v15 = vmul.f32 %v6383_v13, %v4656_v12  ;;  %v1213_v48 = vadd.f32 %v1205_v33, %v1189_v40  ;;  %v5031_v54 = vld [vmem:[#allocation2 + $0x109] sm:$0xff] }
  0x6f   : > { %v1232_v23 = vadd.f32 %v1224_v21, %v1208_v43  ;;  %v1233_v59 = vadd.f32 %v1225_v50, %v1209_v11  ;;  %v1234_v26 = vadd.f32 %v1226_v6, %v1210_v44  ;;  %v1235_v24 = vadd.f32 %v1227_v63, %v1211_v45 }
  0x70   : > { %v1229_v30 = vmul.f32 %v4962_v14, %v4767_v51  ;;  %v1236_v27 = vadd.f32 %v1228_v58, %v1212_v10  ;;  %v1249_v55 = vmul.f32 %v4901_v62, %v4772_v28  ;;  %v1250_v35 = vmul.f32 %v4903_v49, %v4772_v28 }
  0x71   : > { %v5029_v61 = vpop.eup %4095  ;;  %4101 = vrcp.f32 %v1047_v39  ;;  %v1251_v53 = vmul.f32 %v4920_v25, %v4772_v28  ;;  %v1252_v40 = vmul.f32 %v4930_v41, %v4772_v28  ;;  %v1253_v33 = vmul.f32 %v4993_v34, %v4772_v28  ;;  %v5047_v39 = vld [vmem:[#allocation2 + $0x127] sm:$0xff] }
  0x72   : > { %v1214_v62 = vadd.f32 %v1206_v20, %v1190_v46  ;;  %v1215_v43 = vadd.f32 %v1207_v15, %v1191_v47  ;;  %v1230_v49 = vmul.f32 %v5031_v54, %v4767_v51  ;;  %v1231_v11 = vmul.f32 %v5033_v0, %v4767_v51 }
  0x73   : > { %v1257_v44 = vadd.f32 %v1249_v55, %v1232_v23  ;;  %v1258_v45 = vadd.f32 %v1250_v35, %v1233_v59  ;;  %v1259_v21 = vadd.f32 %v1251_v53, %v1234_v26  ;;  %v1260_v50 = vadd.f32 %v1252_v40, %v1235_v24 }
  0x74   : > { %v1050_v6 = vadd.f32 1.0, %v4092_v56  ;;  %v1237_v25 = vadd.f32 %v1229_v30, %v1213_v48  ;;  %v1254_v41 = vmul.f32 %v4995_v29, %v4772_v28  ;;  %v1261_v63 = vadd.f32 %v1253_v33, %v1236_v27 }
  0x75   : > { %v1273_v10 = vmul.f32 %v4575_v31, %v4793_v5  ;;  %v1274_v58 = vmul.f32 %v4577_v32, %v4793_v5  ;;  %v1275_v23 = vmul.f32 %v4586_v36, %v4793_v5  ;;  %v1276_v46 = vmul.f32 %v4588_v37, %v4793_v5  ;;  %v5063_v31 = vld [vmem:[#allocation2 + $0x12f] sm:$0xff] }
  0x76   : > { %v4098_v56 = vpop.eup %4097  ;;  %v1238_v47 = vadd.f32 %v1230_v49, %v1214_v62  ;;  %v1239_v20 = vadd.f32 %v1231_v11, %v1215_v43  ;;  %v1255_v15 = vmul.f32 %v5047_v39, %v4772_v28  ;;  %v1277_v48 = vmul.f32 %v4590_v38, %v4793_v5  ;;  %v6385_v62 = vld [vmem:[#allocation5_spill] sm:$0xff] }
  0x77   : > { %v5061_v59 = vpop.eup %4099  ;;  %v1281_v32 = vadd.f32 %v1273_v10, %v1257_v44  ;;  %v1282_v26 = vadd.f32 %v1274_v58, %v1258_v45  ;;  %v1283_v24 = vadd.f32 %v1275_v23, %v1259_v21  ;;  %v1284_v36 = vadd.f32 %v1276_v46, %v1260_v50 }
  0x78   : > { %6384 = vst [vmem:[#allocation6_spill] sm:$0xff] %v5061_v59  ;;  %v1256_v37 = vmul.f32 %v5063_v31, %v4772_v28  ;;  %v1262_v30 = vadd.f32 %v1254_v41, %v1237_v25  ;;  %v1278_v27 = vmul.f32 %v6383_v13, %v4793_v5  ;;  %v1285_v55 = vadd.f32 %v1277_v48, %v1261_v63  ;;  %v5089_v25 = vld [vmem:[#allocation2 + $0x129] sm:$0xff] }
  0x79   : > { %v1297_v35 = vmul.f32 %v4790_v4, %v4932_v57  ;;  %v1298_v38 = vmul.f32 %v4790_v4, %v4934_v2  ;;  %v1299_v53 = vmul.f32 %v4790_v4, %v4960_v52  ;;  %v1300_v40 = vmul.f32 %v4790_v4, %v4962_v14 }
  0x7a   : > { %4103 = vrcp.f32 %v1048_v18  ;;  %v1263_v33 = vadd.f32 %v1255_v15, %v1238_v47  ;;  %v6386_v43 = vunpack.c.l.bf16 %v6385_v62  ;;  %v1301_v13 = vmul.f32 %v4790_v4, %v5031_v54 }
  0x7b   : > { %v5082_v11 = vpop.eup %4101  ;;  %v1305_v57 = vadd.f32 %v1297_v35, %v1281_v32  ;;  %v1306_v44 = vadd.f32 %v1298_v38, %v1282_v26  ;;  %v1307_v2 = vadd.f32 %v1299_v53, %v1283_v24  ;;  %v1308_v45 = vadd.f32 %v1300_v40, %v1284_v36 }
  0x7c   : > { %v1279_v49 = vmul.f32 %v6386_v43, %v4793_v5  ;;  %6387 = vst [vmem:[#allocation5_spill] sm:$0xff] %v5082_v11  ;;  %v1264_v21 = vadd.f32 %v1256_v37, %v1239_v20  ;;  %v6388_v52 = vunpack.c.h.bf16 %v6385_v62  ;;  %v1286_v18 = vadd.f32 %v1278_v27, %v1262_v30  ;;  %v5126_v62 = vld [vmem:[#allocation2 + $0x128] sm:$0xff]  ;;  %v5128_v43 = vld [vmem:[#allocation2 + $0x130] sm:$0xff] }
  0x7d   : > { %v1302_v50 = vmul.f32 %v4790_v4, %v5033_v0  ;;  %v1309_v41 = vadd.f32 %v1301_v13, %v1285_v55  ;;  %v1313_v63 = vmul.f32 %v4840_v17, %v1305_v57  ;;  %v1314_v10 = vmul.f32 %v4840_v17, %v1306_v44  ;;  %v5132_v57 = vld [vmem:[#allocation2 + $0x147] sm:$0xff]  ;;  %v5134_v44 = vld [vmem:[#allocation2 + $0x14f] sm:$0xff] }
  0x7e   : > { %v1280_v14 = vmul.f32 %v6388_v52, %v4793_v5  ;;  %v1315_v58 = vmul.f32 %v4840_v17, %v1307_v2  ;;  %v1051_v23 = vadd.f32 1.0, %v5013_v9  ;;  %v1287_v46 = vadd.f32 %v1279_v49, %v1263_v33  ;;  %v5106_v9 = vld [vmem:[#allocation2 + $0x131] sm:$0xff] }
  0x7f   : > { %v1303_v47 = vmul.f32 %v4790_v4, %v5089_v25  ;;  %v1316_v20 = vmul.f32 %v4840_v17, %v1308_v45  ;;  %v1052_v15 = vadd.f32 1.0, %v5029_v61  ;;  %4105 = vrcp.f32 %v5017_v22  ;;  %v1427_v33 = vld [vmem:[#allocation2 + $0x110] sm:$0xff]  ;;  %v5138_v45 = vld [vmem:[#allocation2 + $0x167] sm:$0xff] }
  0x80   : > { %v5101_v48 = vadd.f32 %v4849_v60, %v1313_v63  ;;  %v5104_v32 = vadd.f32 %v4849_v60, %v1314_v10  ;;  %v1053_v26 = vadd.f32 1.0, %v4098_v56  ;;  %4107 = vrcp.f32 %v1050_v6  ;;  %v5152_v63 = vld [vmem:[#allocation2 + $0x168] sm:$0xff] }
  0x81   : > { %v1288_v24 = vadd.f32 %v1280_v14, %v1264_v21  ;;  %v1304_v36 = vmul.f32 %v4790_v4, %v5106_v9  ;;  %v1310_v37 = vadd.f32 %v1302_v50, %v1286_v18  ;;  %v1317_v30 = vmul.f32 %v4840_v17, %v1309_v41  ;;  %v1426_v4 = vld [vmem:[#allocation2 + $0x108] sm:$0xff]  ;;  %v5150_v41 = vld [vmem:[#allocation2 + $0x150] sm:$0xff] }
  0x82   : > { %6389 = vst [vmem:[#allocation15_spill] sm:$0xff] %v5101_v48  ;;  %6390 = vst [vmem:[#allocation16_spill] sm:$0xff] %v5104_v32  ;;  %v5112_v61 = vadd.f32 %v4849_v60, %v1315_v58  ;;  %4109 = vrcp.f32 %v1051_v23  ;;  %v1311_v22 = vadd.f32 %v1303_v47, %v1287_v46  ;;  %v5115_v27 = vadd.f32 %v4849_v60, %v1316_v20  ;;  %v5140_v21 = vld [vmem:[#allocation2 + $0x16f] sm:$0xff] }
  0x83   : > { %v3506_v56 = vmul.f32 -1.442695, %v5101_v48  ;;  %4111 = vrcp.f32 %v1052_v15  ;;  %v3507_v6 = vmul.f32 -1.442695, %v5104_v32  ;;  %v1312_v35 = vadd.f32 %v1304_v36, %v1288_v24  ;;  %v5148_v50 = vld [vmem:[#allocation2 + $0x148] sm:$0xff]  ;;  %v5192_v32 = vld [vmem:[#allocation2 + $0x151] sm:$0xff] }
  0x84   : > { %6391 = vst [vmem:[#allocation17_spill] sm:$0xff] %v5112_v61  ;;  %6392 = vst [vmem:[#allocation18_spill] sm:$0xff] %v5115_v27  ;;  %v5119_v55 = vpop.eup %4103  ;;  %4113 = vrcp.f32 %v1053_v26  ;;  %v1318_v38 = vmul.f32 %v4840_v17, %v1310_v37  ;;  %v5123_v53 = vadd.f32 %v4849_v60, %v1317_v30  ;;  %v3508_v40 = vmul.f32 -1.442695, %v5112_v61  ;;  %v5194_v61 = vld [vmem:[#allocation2 + $0x169] sm:$0xff]  ;;  %v5196_v48 = vld [vmem:[#allocation2 + $0x171] sm:$0xff] }
  0x85   : > { %6393 = vst [vmem:[#allocation19_spill] sm:$0xff] %v5119_v55  ;;  %v1319_v49 = vmul.f32 %v4840_v17, %v1311_v22  ;;  %4115 = vpow2.f32 %v3506_v56  ;;  %v3509_v13 = vmul.f32 -1.442695, %v5115_v27  ;;  %v1410_v2 = vmul.f32 %v4993_v34, %v4630_v1  ;;  %v5154_v34 = vld [vmem:[#allocation2 + $0x170] sm:$0xff] }
  0x86   : > { %6394 = vst [vmem:[#allocation20_spill] sm:$0xff] %v5123_v53  ;;  %4117 = vpow2.f32 %v3507_v6  ;;  %v1411_v52 = vmul.f32 %v4995_v29, %v4630_v1  ;;  %v1412_v14 = vmul.f32 %v5047_v39, %v4630_v1  ;;  %v1413_v18 = vmul.f32 %v5063_v31, %v4630_v1 }
  0x87   : > { %v1434_v10 = vmul.f32 %v1426_v4, %v4635_v3  ;;  %v1435_v58 = vmul.f32 %v1427_v33, %v4635_v3  ;;  %v1436_v29 = vmul.f32 %v5126_v62, %v4635_v3  ;;  %v1437_v23 = vmul.f32 %v5128_v43, %v4635_v3 }
  0x88   : > { %v5165_v47 = vadd.f32 %v4849_v60, %v1318_v38  ;;  %4119 = vpow2.f32 %v3508_v40  ;;  %v3510_v20 = vmul.f32 -1.442695, %v5123_v53  ;;  %v1414_v15 = vmul.f32 %v5132_v57, %v4630_v1  ;;  %v5188_v53 = vld [vmem:[#allocation2 + $0x149] sm:$0xff] }
  0x89   : > { %v5162_v46 = vpop.eup %4105  ;;  %4121 = vpow2.f32 %v3509_v13  ;;  %v1415_v24 = vmul.f32 %v5134_v44, %v4630_v1  ;;  %v1416_v36 = vmul.f32 %v5138_v45, %v4630_v1  ;;  %v1417_v37 = vmul.f32 %v5140_v21, %v4630_v1 }
  0x8a   : > { %6395 = vst [vmem:[#allocation21_spill] sm:$0xff] %v5162_v46  ;;  %6396 = vst [vmem:[#allocation22_spill] sm:$0xff] %v5165_v47  ;;  %v5170_v26 = vpop.eup %4107  ;;  %v1438_v30 = vmul.f32 %v5148_v50, %v4635_v3  ;;  %v1439_v22 = vmul.f32 %v5150_v41, %v4635_v3  ;;  %v1440_v56 = vmul.f32 %v5152_v63, %v4635_v3  ;;  %4123 = vpow2.f32 %v3510_v20 }
  0x8b   : > { %6397 = vst [vmem:[#allocation23_spill] sm:$0xff] %v5170_v26  ;;  %v1441_v6 = vmul.f32 %v5154_v34, %v4635_v3  ;;  %v1442_v38 = vadd.f32 %v1434_v10, %v1410_v2  ;;  %v1443_v40 = vadd.f32 %v1435_v58, %v1411_v52  ;;  %v1444_v33 = vadd.f32 %v1436_v29, %v1412_v14 }
  0x8c   : > { %v5186_v4 = vpop.eup %4109  ;;  %v1445_v13 = vadd.f32 %v1437_v23, %v1413_v18  ;;  %v1458_v26 = vmul.f32 %v5031_v54, %v4640_v8  ;;  %v1460_v2 = vmul.f32 %v5089_v25, %v4640_v8  ;;  %v1461_v52 = vmul.f32 %v5106_v9, %v4640_v8 }
  0x8d   : > { %6398 = vst [vmem:[#allocation24_spill] sm:$0xff] %v5186_v4  ;;  %v5190_v27 = vpop.eup %4111  ;;  %v1459_v4 = vmul.f32 %v5033_v0, %v4640_v8  ;;  %v1320_v18 = vmul.f32 %v4840_v17, %v1312_v35  ;;  %v5210_v10 = vadd.f32 %v4849_v60, %v1319_v49  ;;  %v3511_v58 = vmul.f32 -1.442695, %v5165_v47 }
  0x8e   : > { %6399 = vst [vmem:[#allocation25_spill] sm:$0xff] %v5190_v27  ;;  %v5206_v14 = vpop.eup %4113  ;;  %v1446_v54 = vadd.f32 %v1438_v30, %v1414_v15  ;;  %v1447_v29 = vadd.f32 %v1439_v22, %v1415_v24  ;;  %v1448_v23 = vadd.f32 %v1440_v56, %v1416_v36  ;;  %v1449_v0 = vadd.f32 %v1441_v6, %v1417_v37 }
  0x8f   : > { %6400 = vst [vmem:[#allocation26_spill] sm:$0xff] %v5206_v14  ;;  %6401 = vst [vmem:[#allocation27_spill] sm:$0xff] %v5210_v10  ;;  %v5213_v27 = vpop.eup %4115  ;;  %v1462_v46 = vmul.f32 %v5188_v53, %v4640_v8  ;;  %v1463_v14 = vmul.f32 %v5192_v32, %v4640_v8  ;;  %v1464_v35 = vmul.f32 %v5194_v61, %v4640_v8  ;;  %4125 = vpow2.f32 %v3511_v58 }
  0x90   : > { %v1465_v49 = vmul.f32 %v5196_v48, %v4640_v8  ;;  %v5223_v20 = vpop.eup %4117  ;;  %v1466_v15 = vadd.f32 %v1458_v26, %v1442_v38  ;;  %v1467_v24 = vadd.f32 %v1459_v4, %v1443_v40  ;;  %v1468_v36 = vadd.f32 %v1460_v2, %v1444_v33 }
  0x91   : > { %v1469_v37 = vadd.f32 %v1461_v52, %v1445_v13  ;;  %v1483_v30 = vmul.f32 %v5047_v39, %v4651_v7  ;;  %v1484_v22 = vmul.f32 %v5063_v31, %v4651_v7  ;;  %v1485_v56 = vmul.f32 %v5132_v57, %v4651_v7  ;;  %v5239_v31 = vld [vmem:[#allocation2 + $0x187] sm:$0xff]  ;;  %v5241_v13 = vld [vmem:[#allocation2 + $0x18f] sm:$0xff] }
  0x92   : > { %v1486_v6 = vmul.f32 %v5134_v44, %v4651_v7  ;;  %v4120_v47 = vpop.eup %4119  ;;  %v5234_v11 = vadd.f32 %v4849_v60, %v1320_v18  ;;  %v3512_v26 = vmul.f32 -1.442695, %v5210_v10  ;;  %v1470_v38 = vadd.f32 %v1462_v46, %v1446_v54 }
  0x93   : > { %v5237_v4 = vpop.eup %4121  ;;  %v1471_v39 = vadd.f32 %v1463_v14, %v1447_v29  ;;  %v1472_v40 = vadd.f32 %v1464_v35, %v1448_v23  ;;  %v1473_v33 = vadd.f32 %v1465_v49, %v1449_v0  ;;  %v1487_v2 = vmul.f32 %v5138_v45, %v4651_v7 }
  0x94   : > { %6402 = vst [vmem:[#allocation28_spill] sm:$0xff] %v5234_v11  ;;  %v1488_v52 = vmul.f32 %v5140_v21, %v4651_v7  ;;  %v1489_v18 = vmul.f32 %v5239_v31, %v4651_v7  ;;  %v1490_v58 = vmul.f32 %v5241_v13, %v4651_v7  ;;  %v1491_v46 = vadd.f32 %v1483_v30, %v1466_v15  ;;  %v4124_v10 = vpop.eup %4123 }
  0x95   : > { %v1492_v14 = vadd.f32 %v1484_v22, %v1467_v24  ;;  %v1493_v54 = vadd.f32 %v1485_v56, %v1468_v36  ;;  %v1494_v29 = vadd.f32 %v1486_v6, %v1469_v37  ;;  %v1507_v23 = vmul.f32 %v5126_v62, %v4656_v12  ;;  %v5260_v36 = vld [vmem:[#allocation2 + $0x188] sm:$0xff]  ;;  %v5262_v37 = vld [vmem:[#allocation2 + $0x190] sm:$0xff] }
  0x96   : > { %v1508_v0 = vmul.f32 %v5128_v43, %v4656_v12  ;;  %v1509_v35 = vmul.f32 %v5148_v50, %v4656_v12  ;;  %v1510_v49 = vmul.f32 %v5150_v41, %v4656_v12  ;;  %4127 = vpow2.f32 %v3512_v26 }
  0x97   : > { %v3513_v42 = vmul.f32 -1.442695, %v5234_v11  ;;  %v1495_v15 = vadd.f32 %v1487_v2, %v1470_v38  ;;  %v1496_v24 = vadd.f32 %v1488_v52, %v1471_v39  ;;  %v1511_v62 = vmul.f32 %v5152_v63, %v4656_v12 }
  0x98   : > { %v1512_v43 = vmul.f32 %v5154_v34, %v4656_v12  ;;  %v1497_v30 = vadd.f32 %v1489_v18, %v1472_v40  ;;  %v1498_v22 = vadd.f32 %v1490_v58, %v1473_v33  ;;  %v1513_v56 = vmul.f32 %v5260_v36, %v4656_v12 }
  0x99   : > { %v1514_v6 = vmul.f32 %v5262_v37, %v4656_v12  ;;  %v1515_v26 = vadd.f32 %v1507_v23, %v1491_v46  ;;  %v1516_v38 = vadd.f32 %v1508_v0, %v1492_v14  ;;  %v1517_v39 = vadd.f32 %v1509_v35, %v1493_v54  ;;  %v5280_v18 = vpop.eup %4125  ;;  %v5282_v46 = vld [vmem:[#allocation2 + $0x189] sm:$0xff]  ;;  %v5284_v14 = vld [vmem:[#allocation2 + $0x191] sm:$0xff] }
  0x9a   : > { %v1518_v2 = vadd.f32 %v1510_v49, %v1494_v29  ;;  %v1531_v52 = vmul.f32 %v5089_v25, %v4767_v51  ;;  %v1532_v11 = vmul.f32 %v5106_v9, %v4767_v51  ;;  %v1533_v40 = vmul.f32 %v5188_v53, %v4767_v51 }
  0x9b   : > { %v1534_v33 = vmul.f32 %v5192_v32, %v4767_v51  ;;  %v1519_v58 = vadd.f32 %v1511_v62, %v1495_v15  ;;  %v1520_v55 = vadd.f32 %v1512_v43, %v1496_v24  ;;  %v1535_v25 = vmul.f32 %v5194_v61, %v4767_v51 }
  0x9c   : > { %v1536_v9 = vmul.f32 %v5196_v48, %v4767_v51  ;;  %v1521_v54 = vadd.f32 %v1513_v56, %v1497_v30  ;;  %v1522_v29 = vadd.f32 %v1514_v6, %v1498_v22  ;;  %v1537_v23 = vmul.f32 %v5282_v46, %v4767_v51 }
  0x9d   : > { %v1538_v0 = vmul.f32 %v5284_v14, %v4767_v51  ;;  %4129 = vpow2.f32 %v3513_v42  ;;  %v1353_v35 = vadd.f32 1.0, %v5213_v27  ;;  %v1354_v49 = vadd.f32 1.0, %v5223_v20 }
  0x9e   : > { %v5296_v15 = vadd.f32 1.0, %v4120_v47  ;;  %v1539_v24 = vadd.f32 %v1531_v52, %v1515_v26  ;;  %v1540_v62 = vadd.f32 %v1532_v11, %v1516_v38  ;;  %v1541_v43 = vadd.f32 %v1533_v40, %v1517_v39 }
  0x9f   : > { %v1542_v19 = vadd.f32 %v1534_v33, %v1518_v2  ;;  %v1543_v59 = vadd.f32 %v1535_v25, %v1519_v58  ;;  %v1544_v30 = vadd.f32 %v1536_v9, %v1520_v55  ;;  %v1556_v22 = vmul.f32 %v5132_v57, %v4772_v28  ;;  %v5310_v55 = vld [vmem:[#allocation2 + $0x1af] sm:$0xff] }
  0xa0   : > { %v1557_v56 = vmul.f32 %v5134_v44, %v4772_v28  ;;  %v5302_v6 = vpop.eup %4127  ;;  %v1545_v42 = vadd.f32 %v1537_v23, %v1521_v54  ;;  %v1546_v27 = vadd.f32 %v1538_v0, %v1522_v29  ;;  %v1558_v47 = vmul.f32 %v5138_v45, %v4772_v28  ;;  %v5323_v9 = vld [vmem:[#allocation2 + $0x1a8] sm:$0xff]  ;;  %v5325_v54 = vld [vmem:[#allocation2 + $0x1b0] sm:$0xff] }
  0xa1   : > { %v1559_v11 = vmul.f32 %v5140_v21, %v4772_v28  ;;  %4131 = vrcp.f32 %v1353_v35  ;;  %v1560_v57 = vmul.f32 %v5239_v31, %v4772_v28  ;;  %v1561_v44 = vmul.f32 %v5241_v13, %v4772_v28 }
  0xa2   : > { %v1562_v20 = vmul.f32 %v5304_v16, %v4772_v28  ;;  %v1356_v26 = vadd.f32 1.0, %v5237_v4  ;;  %v5319_v38 = vadd.f32 1.0, %v4124_v10  ;;  %4133 = vrcp.f32 %v1354_v49 }
  0xa3   : > { %v1563_v45 = vmul.f32 %v5310_v55, %v4772_v28  ;;  %v1564_v21 = vadd.f32 %v1556_v22, %v1539_v24  ;;  %v1565_v39 = vadd.f32 %v1557_v56, %v1540_v62  ;;  %v1566_v2 = vadd.f32 %v1558_v47, %v1541_v43  ;;  %v5343_v22 = vld [vmem:[#allocation2 + $0x1a9] sm:$0xff]  ;;  %v5345_v56 = vld [vmem:[#allocation2 + $0x1b1] sm:$0xff] }
  0xa4   : > { %v1567_v52 = vadd.f32 %v1559_v11, %v1542_v19  ;;  %v1568_v40 = vadd.f32 %v1560_v57, %v1543_v59  ;;  %v1569_v33 = vadd.f32 %v1561_v44, %v1544_v30  ;;  %v1570_v58 = vadd.f32 %v1562_v20, %v1545_v42  ;;  %v5350_v42 = vld [vmem:[%s6319_s2 + $0x8] ss:$0 sm:$0xff] }
  0xa5   : > { %v1571_v25 = vadd.f32 %v1563_v45, %v1546_v27  ;;  %v1580_v10 = vmul.f32 %v5148_v50, %v4793_v5  ;;  %v1581_v4 = vmul.f32 %v5150_v41, %v4793_v5  ;;  %v1582_v29 = vmul.f32 %v5152_v63, %v4793_v5 }
  0xa6   : > { %v1583_v19 = vmul.f32 %v5154_v34, %v4793_v5  ;;  %v1584_v59 = vmul.f32 %v5260_v36, %v4793_v5  ;;  %v1585_v23 = vmul.f32 %v5262_v37, %v4793_v5  ;;  %v1586_v0 = vmul.f32 %v5323_v9, %v4793_v5 }
  0xa7   : > { %v1587_v50 = vmul.f32 %v5325_v54, %v4793_v5  ;;  %v4130_v35 = vpop.eup %4129  ;;  %v1588_v41 = vadd.f32 %v1580_v10, %v1564_v21  ;;  %v1589_v49 = vadd.f32 %v1581_v4, %v1565_v39  ;;  %v1590_v24 = vadd.f32 %v1582_v29, %v1566_v2 }
  0xa8   : > { %v1591_v63 = vadd.f32 %v1583_v19, %v1567_v52  ;;  %v1592_v62 = vadd.f32 %v1584_v59, %v1568_v40  ;;  %v1593_v43 = vadd.f32 %v1585_v23, %v1569_v33  ;;  %v1594_v34 = vadd.f32 %v1586_v0, %v1570_v58 }
  0xa9   : > { %v1595_v30 = vadd.f32 %v1587_v50, %v1571_v25  ;;  %v1604_v27 = vmul.f32 %v5350_v42, %v5188_v53  ;;  %v1605_v47 = vmul.f32 %v5350_v42, %v5192_v32  ;;  %v1606_v11 = vmul.f32 %v5350_v42, %v5194_v61 }
  0xaa   : > { %v1607_v57 = vmul.f32 %v5350_v42, %v5196_v48  ;;  %v1608_v44 = vmul.f32 %v5350_v42, %v5282_v46  ;;  %v1609_v20 = vmul.f32 %v5350_v42, %v5284_v14  ;;  %v1610_v45 = vmul.f32 %v5350_v42, %v5343_v22 }
  0xab   : > { %v1611_v53 = vmul.f32 %v5350_v42, %v5345_v56  ;;  %v5368_v21 = vpop.eup %4131  ;;  %v1612_v32 = vadd.f32 %v1604_v27, %v1588_v41  ;;  %v1613_v39 = vadd.f32 %v1605_v47, %v1589_v49  ;;  %v1614_v61 = vadd.f32 %v1606_v11, %v1590_v24  ;;  %v5414_v47 = vld [vmem:[#allocation2 + $0x1c7] sm:$0xff]  ;;  %v5416_v11 = vld [vmem:[#allocation2 + $0x1cf] sm:$0xff] }
  0xac   : > { %v1615_v2 = vadd.f32 %v1607_v57, %v1591_v63  ;;  %v5370_v52 = vpop.eup %4133  ;;  %v1616_v48 = vadd.f32 %v1608_v44, %v1592_v62  ;;  %v1617_v40 = vadd.f32 %v1609_v20, %v1593_v43  ;;  %v1618_v33 = vadd.f32 %v1610_v45, %v1594_v34  ;;  %v5420_v44 = vld [vmem:[#allocation2 + $0x1e7] sm:$0xff]  ;;  %v5422_v20 = vld [vmem:[#allocation2 + $0x1ef] sm:$0xff] }
  0xad   : > { %v1619_v58 = vadd.f32 %v1611_v53, %v1595_v30  ;;  %v1620_v25 = vmul.f32 %v4840_v17, %v1612_v32  ;;  %v1621_v10 = vmul.f32 %v4840_v17, %v1613_v39  ;;  %v1622_v4 = vmul.f32 %v4840_v17, %v1614_v61  ;;  %v5430_v32 = vld [vmem:[#allocation2 + $0x1c8] sm:$0xff]  ;;  %v5434_v61 = vld [vmem:[#allocation2 + $0x1d0] sm:$0xff] }
  0xae   : > { %v1623_v29 = vmul.f32 %v4840_v17, %v1615_v2  ;;  %v1358_v19 = vadd.f32 1.0, %v5280_v18  ;;  %4135 = vrcp.f32 %v5296_v15  ;;  %v1624_v59 = vmul.f32 %v4840_v17, %v1616_v48  ;;  %v5438_v2 = vld [vmem:[#allocation2 + $0x1f0] sm:$0xff] }
  0xaf   : > { %v1625_v23 = vmul.f32 %v4840_v17, %v1617_v40  ;;  %4137 = vrcp.f32 %v1356_v26  ;;  %v5381_v0 = vadd.f32 %v4849_v60, %v1620_v25  ;;  %v5384_v50 = vadd.f32 %v4849_v60, %v1621_v10 }
  0xb0   : > { %v5387_v41 = vadd.f32 %v4849_v60, %v1622_v4  ;;  %v1359_v49 = vadd.f32 1.0, %v5302_v6  ;;  %v1360_v24 = vadd.f32 1.0, %v4130_v35  ;;  %4139 = vrcp.f32 %v5319_v38 }
  0xb1   : > { %6403 = vst [vmem:[#allocation29_spill] sm:$0xff] %v5381_v0  ;;  %6404 = vst [vmem:[#allocation30_spill] sm:$0xff] %v5384_v50  ;;  %v1626_v18 = vmul.f32 %v4840_v17, %v1618_v33  ;;  %v1627_v15 = vmul.f32 %v4840_v17, %v1619_v58  ;;  %v5394_v26 = vadd.f32 %v4849_v60, %v1623_v29  ;;  %v3514_v63 = vmul.f32 -1.442695, %v5381_v0 }
  0xb2   : > { %6405 = vst [vmem:[#allocation31_spill] sm:$0xff] %v5387_v41  ;;  %4141 = vrcp.f32 %v1358_v19  ;;  %v5398_v62 = vadd.f32 %v4849_v60, %v1624_v59  ;;  %v5401_v43 = vadd.f32 %v4849_v60, %v1625_v23  ;;  %v3515_v6 = vmul.f32 -1.442695, %v5384_v50 }
  0xb3   : > { %6406 = vst [vmem:[#allocation32_spill] sm:$0xff] %v5394_v26  ;;  %4143 = vpow2.f32 %v3514_v63  ;;  %v3516_v38 = vmul.f32 -1.442695, %v5387_v41  ;;  %v5406_v17 = vadd.f32 %v4849_v60, %v1626_v18  ;;  %v5409_v35 = vadd.f32 %v4849_v60, %v1627_v15 }
  0xb4   : > { %6407 = vst [vmem:[#allocation33_spill] sm:$0xff] %v5398_v62  ;;  %6408 = vst [vmem:[#allocation34_spill] sm:$0xff] %v5401_v43  ;;  %4145 = vrcp.f32 %v1359_v49  ;;  %v3517_v34 = vmul.f32 -1.442695, %v5394_v26  ;;  %v3518_v30 = vmul.f32 -1.442695, %v5398_v62  ;;  %v1717_v57 = vmul.f32 %v5239_v31, %v4630_v1 }
  0xb5   : > { %4147 = vrcp.f32 %v1360_v24  ;;  %6409 = vst [vmem:[#allocation35_spill] sm:$0xff] %v5406_v17  ;;  %6410 = vst [vmem:[#allocation36_spill] sm:$0xff] %v5409_v35  ;;  %v3519_v27 = vmul.f32 -1.442695, %v5401_v43  ;;  %v1718_v60 = vmul.f32 %v5241_v13, %v4630_v1  ;;  %v1719_v45 = vmul.f32 %v5304_v16, %v4630_v1  ;;  %v5436_v31 = vld [vmem:[#allocation2 + $0x1e8] sm:$0xff] }
  0xb6   : > { %4149 = vpow2.f32 %v3515_v6  ;;  %v1720_v53 = vmul.f32 %v5310_v55, %v4630_v1  ;;  %v1741_v48 = vmul.f32 %v5260_v36, %v4635_v3  ;;  %v1742_v13 = vmul.f32 %v5262_v37, %v4635_v3 }
  0xb7   : > { %4151 = vpow2.f32 %v3516_v38  ;;  %v1743_v40 = vmul.f32 %v5323_v9, %v4635_v3  ;;  %v1744_v33 = vmul.f32 %v5325_v54, %v4635_v3  ;;  %v3520_v25 = vmul.f32 -1.442695, %v5406_v17  ;;  %v5473_v38 = vld [vmem:[#allocation2 + $0x1d1] sm:$0xff] }
  0xb8   : > { %v5432_v39 = vpop.eup %4135  ;;  %4153 = vpow2.f32 %v3517_v34  ;;  %v1721_v10 = vmul.f32 %v5414_v47, %v4630_v1  ;;  %v1722_v36 = vmul.f32 %v5416_v11, %v4630_v1  ;;  %v1723_v37 = vmul.f32 %v5420_v44, %v4630_v1 }
  0xb9   : > { %v5448_v58 = vpop.eup %4137  ;;  %4155 = vpow2.f32 %v3518_v30  ;;  %v1724_v29 = vmul.f32 %v5422_v20, %v4630_v1  ;;  %v1745_v19 = vmul.f32 %v5430_v32, %v4635_v3  ;;  %v1746_v59 = vmul.f32 %v5434_v61, %v4635_v3  ;;  %v5471_v1 = vld [vmem:[#allocation2 + $0x1c9] sm:$0xff] }
  0xba   : > { %v5455_v4 = vpop.eup %4139  ;;  %4157 = vpow2.f32 %v3519_v27  ;;  %v1747_v23 = vmul.f32 %v5436_v31, %v4635_v3  ;;  %v1748_v49 = vmul.f32 %v5438_v2, %v4635_v3  ;;  %v1749_v18 = vadd.f32 %v1741_v48, %v1717_v57  ;;  %v5475_v30 = vld [vmem:[#allocation2 + $0x1e9] sm:$0xff]  ;;  %v5477_v27 = vld [vmem:[#allocation2 + $0x1f1] sm:$0xff] }
  0xbb   : > { %v1750_v15 = vadd.f32 %v1742_v13, %v1718_v60  ;;  %v1751_v63 = vadd.f32 %v1743_v40, %v1719_v45  ;;  %v1752_v6 = vadd.f32 %v1744_v33, %v1720_v53  ;;  %v1765_v17 = vmul.f32 %v5282_v46, %v4640_v8 }
  0xbc   : > { %v5469_v24 = vpop.eup %4141  ;;  %v1766_v3 = vmul.f32 %v5284_v14, %v4640_v8  ;;  %v1767_v57 = vmul.f32 %v5343_v22, %v4640_v8  ;;  %v1768_v60 = vmul.f32 %v5345_v56, %v4640_v8  ;;  %4159 = vpow2.f32 %v3520_v25 }
  0xbd   : > { %6411 = vst [vmem:[#allocation37_spill] sm:$0xff] %v5469_v24  ;;  %v4144_v34 = vpop.eup %4143  ;;  %v3521_v53 = vmul.f32 -1.442695, %v5409_v35  ;;  %v1753_v48 = vadd.f32 %v1745_v19, %v1721_v10  ;;  %v1754_v40 = vadd.f32 %v1746_v59, %v1722_v36  ;;  %v1755_v33 = vadd.f32 %v1747_v23, %v1723_v37  ;;  %v5500_v59 = vld [vmem:[#allocation2 + $0x207] sm:$0xff]  ;;  %v5502_v23 = vld [vmem:[#allocation2 + $0x20f] sm:$0xff] }
  0xbe   : > { %v5487_v45 = vpop.eup %4145  ;;  %v1769_v46 = vmul.f32 %v5471_v1, %v4640_v8  ;;  %v1770_v14 = vmul.f32 %v5473_v38, %v4640_v8  ;;  %v1660_v62 = vadd.f32 1.0, %v4144_v34  ;;  %v1756_v26 = vadd.f32 %v1748_v49, %v1724_v29  ;;  %v1862_v24 = vld [vmem:[#allocation2 + $0x22f] sm:$0xff] }
  0xbf   : > { %6412 = vst [vmem:[#allocation38_spill] sm:$0xff] %v5487_v45  ;;  %v5490_v13 = vpop.eup %4147  ;;  %v1771_v45 = vmul.f32 %v5475_v30, %v4640_v8  ;;  %v1772_v25 = vmul.f32 %v5477_v27, %v4640_v8  ;;  %v1773_v19 = vadd.f32 %v1765_v17, %v1749_v18  ;;  %v1774_v35 = vadd.f32 %v1766_v3, %v1750_v15 }
  0xc0   : > { %6413 = vst [vmem:[#allocation39_spill] sm:$0xff] %v5490_v13  ;;  %v4150_v43 = vpop.eup %4149  ;;  %v1775_v36 = vadd.f32 %v1767_v57, %v1751_v63  ;;  %v1776_v37 = vadd.f32 %v1768_v60, %v1752_v6  ;;  %v1790_v13 = vmul.f32 %v5304_v16, %v4651_v7  ;;  %v1791_v29 = vmul.f32 %v5310_v55, %v4651_v7 }
  0xc1   : > { %v4152_v10 = vpop.eup %4151  ;;  %v1792_v49 = vmul.f32 %v5414_v47, %v4651_v7  ;;  %v1793_v8 = vmul.f32 %v5416_v11, %v4651_v7  ;;  %4161 = vpow2.f32 %v3521_v53  ;;  %v1777_v18 = vadd.f32 %v1769_v46, %v1753_v48 }
  0xc2   : > { %v4154_v17 = vpop.eup %4153  ;;  %v1778_v15 = vadd.f32 %v1770_v14, %v1754_v40  ;;  %v1661_v6 = vadd.f32 1.0, %v4150_v43  ;;  %4163 = vrcp.f32 %v1660_v62  ;;  %v1779_v34 = vadd.f32 %v1771_v45, %v1755_v33  ;;  %v5522_v45 = vld [vmem:[#allocation2 + $0x208] sm:$0xff] }
  0xc3   : > { %v4156_v63 = vpop.eup %4155  ;;  %v1780_v3 = vadd.f32 %v1772_v25, %v1756_v26  ;;  %v1794_v16 = vmul.f32 %v5420_v44, %v4651_v7  ;;  %v1795_v55 = vmul.f32 %v5422_v20, %v4651_v7  ;;  %v1796_v60 = vmul.f32 %v5500_v59, %v4651_v7  ;;  %v5524_v26 = vld [vmem:[#allocation2 + $0x210] sm:$0xff] }
  0xc4   : > { %v5512_v57 = vpop.eup %4157  ;;  %v1797_v53 = vmul.f32 %v5502_v23, %v4651_v7  ;;  %v1798_v48 = vadd.f32 %v1790_v13, %v1773_v19  ;;  %v1799_v40 = vadd.f32 %v1791_v29, %v1774_v35  ;;  %v1800_v43 = vadd.f32 %v1792_v49, %v1775_v36 }
  0xc5   : > { %v1801_v62 = vadd.f32 %v1793_v8, %v1776_v37  ;;  %v1814_v33 = vmul.f32 %v5323_v9, %v4656_v12  ;;  %v1815_v46 = vmul.f32 %v5325_v54, %v4656_v12  ;;  %v1816_v14 = vmul.f32 %v5430_v32, %v4656_v12 }
  0xc6   : > { %v1817_v7 = vmul.f32 %v5434_v61, %v4656_v12  ;;  %v5534_v13 = vpop.eup %4159  ;;  %v1662_v35 = vadd.f32 1.0, %v4152_v10  ;;  %4165 = vrcp.f32 %v1661_v6  ;;  %v1802_v25 = vadd.f32 %v1794_v16, %v1777_v18  ;;  %v5544_v18 = vld [vmem:[#allocation2 + $0x209] sm:$0xff] }
  0xc7   : > { %v1803_v19 = vadd.f32 %v1795_v55, %v1778_v15  ;;  %v1818_v36 = vmul.f32 %v5436_v31, %v4656_v12  ;;  %v1819_v9 = vmul.f32 %v5438_v2, %v4656_v12  ;;  %v1804_v37 = vadd.f32 %v1796_v60, %v1779_v34  ;;  %v5546_v15 = vld [vmem:[#allocation2 + $0x211] sm:$0xff] }
  0xc8   : > { %v1805_v54 = vadd.f32 %v1797_v53, %v1780_v3  ;;  %v1820_v29 = vmul.f32 %v5522_v45, %v4656_v12  ;;  %v1821_v49 = vmul.f32 %v5524_v26, %v4656_v12  ;;  %v1822_v8 = vadd.f32 %v1814_v33, %v1798_v48 }
  0xc9   : > { %v1823_v50 = vadd.f32 %v1815_v46, %v1799_v40  ;;  %v1824_v10 = vadd.f32 %v1816_v14, %v1800_v43  ;;  %v1825_v6 = vadd.f32 %v1817_v7, %v1801_v62  ;;  %v1838_v16 = vmul.f32 %v5343_v22, %v4767_v51 }
  0xca   : > { %v1839_v34 = vmul.f32 %v5345_v56, %v4767_v51  ;;  %v1840_v3 = vmul.f32 %v5471_v1, %v4767_v51  ;;  %v1841_v12 = vmul.f32 %v5473_v38, %v4767_v51  ;;  %v1826_v60 = vadd.f32 %v1818_v36, %v1802_v25 }
  0xcb   : > { %v5556_v55 = vpop.eup %4161  ;;  %v1827_v53 = vadd.f32 %v1819_v9, %v1803_v19  ;;  %v1842_v48 = vmul.f32 %v5475_v30, %v4767_v51  ;;  %v1843_v40 = vmul.f32 %v5477_v27, %v4767_v51  ;;  %v1828_v43 = vadd.f32 %v1820_v29, %v1804_v37  ;;  %v1861_v9 = vld [vmem:[#allocation2 + $0x227] sm:$0xff] }
  0xcc   : > { %v5562_v22 = vpop.eup %4163  ;;  %v1829_v56 = vadd.f32 %v1821_v49, %v1805_v54  ;;  %v1844_v62 = vmul.f32 %v5544_v18, %v4767_v51  ;;  %v1845_v33 = vmul.f32 %v5546_v15, %v4767_v51  ;;  %v1663_v46 = vadd.f32 1.0, %v4154_v17 }
  0xcd   : > { %v1664_v14 = vadd.f32 1.0, %v4156_v63  ;;  %4167 = vrcp.f32 %v1662_v35  ;;  %v1846_v7 = vadd.f32 %v1838_v16, %v1822_v8  ;;  %v1847_v25 = vadd.f32 %v1839_v34, %v1823_v50 }
  0xce   : > { %v1848_v19 = vadd.f32 %v1840_v3, %v1824_v10  ;;  %v1849_v36 = vadd.f32 %v1841_v12, %v1825_v6  ;;  %v1850_v41 = vadd.f32 %v1842_v48, %v1826_v60  ;;  %v1851_v0 = vadd.f32 %v1843_v40, %v1827_v53  ;;  %v1909_v40 = vld [vmem:[#allocation2 + $0x229] sm:$0xff] }
  0xcf   : > { %v1863_v37 = vmul.f32 %v5414_v47, %v4772_v28  ;;  %v1864_v54 = vmul.f32 %v5416_v11, %v4772_v28  ;;  %v1852_v51 = vadd.f32 %v1844_v62, %v1828_v43  ;;  %v1853_v17 = vadd.f32 %v1845_v33, %v1829_v56  ;;  %v1910_v43 = vld [vmem:[#allocation2 + $0x231] sm:$0xff] }
  0xd0   : > { %v5572_v29 = vpop.eup %4165  ;;  %v1865_v63 = vmul.f32 %v5420_v44, %v4772_v28  ;;  %v1866_v50 = vmul.f32 %v5422_v20, %v4772_v28  ;;  %4169 = vrcp.f32 %v1663_v46  ;;  %v1867_v35 = vmul.f32 %v5500_v59, %v4772_v28 }
  0xd1   : > { %v1868_v47 = vmul.f32 %v5502_v23, %v4772_v28  ;;  %v1869_v49 = vmul.f32 %v1861_v9, %v4772_v28  ;;  %v5584_v11 = vadd.f32 1.0, %v5512_v57  ;;  %4171 = vrcp.f32 %v1664_v14 }
  0xd2   : > { %v1870_v8 = vmul.f32 %v1862_v24, %v4772_v28  ;;  %v1871_v10 = vadd.f32 %v1863_v37, %v1846_v7  ;;  %v1872_v44 = vadd.f32 %v1864_v54, %v1847_v25  ;;  %v1873_v6 = vadd.f32 %v1865_v63, %v1848_v19 }
  0xd3   : > { %v1874_v16 = vadd.f32 %v1866_v50, %v1849_v36  ;;  %v1875_v20 = vadd.f32 %v1867_v35, %v1850_v41  ;;  %v1876_v34 = vadd.f32 %v1868_v47, %v1851_v0  ;;  %v1877_v3 = vadd.f32 %v1869_v49, %v1852_v51  ;;  %v5599_v41 = vld [vmem:[#allocation2] sm:$0xff] }
  0xd4   : > { %v1878_v12 = vadd.f32 %v1870_v8, %v1853_v17  ;;  %v1887_v59 = vmul.f32 %v5430_v32, %v4793_v5  ;;  %v1888_v23 = vmul.f32 %v5434_v61, %v4793_v5  ;;  %v1889_v57 = vmul.f32 %v5436_v31, %v4793_v5 }
  0xd5   : > { %v1890_v28 = vmul.f32 %v5438_v2, %v4793_v5  ;;  %v1891_v24 = vmul.f32 %v5522_v45, %v4793_v5  ;;  %v1892_v0 = vmul.f32 %v5524_v26, %v4793_v5  ;;  %v1893_v32 = vmul.f32 %v5599_v41, %v4793_v5 }
  0xd6   : > { %v1911_v61 = vmul.f32 %v5350_v42, %v5471_v1  ;;  %v1895_v31 = vadd.f32 %v1887_v59, %v1871_v10  ;;  %v1896_v53 = vadd.f32 %v1888_v23, %v1872_v44  ;;  %v1897_v48 = vadd.f32 %v1889_v57, %v1873_v6  ;;  %v4350_v10 = vld [vmem:[%s6321_s4] ss:$0 sm:$0xff] }
  0xd7   : > { %v5605_v60 = vpop.eup %4167  ;;  %v1898_v2 = vadd.f32 %v1890_v28, %v1874_v16  ;;  %v1899_v45 = vadd.f32 %v1891_v24, %v1875_v20  ;;  %v1900_v56 = vadd.f32 %v1892_v0, %v1876_v34  ;;  %v1901_v62 = vadd.f32 %v1893_v32, %v1877_v3 }
  0xd8   : > { %v1902_v26 = vadd.f32 %v1893_v32, %v1878_v12  ;;  %v1912_v33 = vmul.f32 %v5350_v42, %v5473_v38  ;;  %v1913_v5 = vmul.f32 %v5350_v42, %v5475_v30  ;;  %v1914_v1 = vmul.f32 %v5350_v42, %v5477_v27 }
  0xd9   : > { %v1915_v46 = vmul.f32 %v5350_v42, %v5544_v18  ;;  %v1916_v14 = vmul.f32 %v5350_v42, %v5546_v15  ;;  %v1917_v7 = vmul.f32 %v5350_v42, %v1909_v40  ;;  %v1918_v25 = vmul.f32 %v5350_v42, %v1910_v43  ;;  %v4349_v18 = vld [vmem:[%s6320_s3] ss:$0 sm:$0xff] }
  0xda   : > { %v1919_v19 = vadd.f32 %v1911_v61, %v1895_v31  ;;  %v5619_v36 = vpop.eup %4169  ;;  %v1920_v38 = vadd.f32 %v1912_v33, %v1896_v53  ;;  %v1921_v9 = vadd.f32 %v1913_v5, %v1897_v48  ;;  %v1922_v37 = vadd.f32 %v1914_v1, %v1898_v2  ;;  %v6414_v61 = vld [vmem:[#allocation7_spill] sm:$0xff]  ;;  %v6415_v31 = vld [vmem:[#allocation6_spill] sm:$0xff]  ;;  %v6416_v48 = vld [vmem:[#allocation9_spill] sm:$0xff] }
  0xdb   : > { %v1923_v30 = vadd.f32 %v1915_v46, %v1899_v45  ;;  %v5621_v54 = vpop.eup %4171  ;;  %v1924_v27 = vadd.f32 %v1916_v14, %v1900_v56  ;;  %v1925_v51 = vadd.f32 %v1917_v7, %v1901_v62  ;;  %v1926_v17 = vadd.f32 %v1918_v25, %v1902_v26  ;;  %v6417_v2 = vld [vmem:[#allocation19_spill] sm:$0xff]  ;;  %v6418_v56 = vld [vmem:[#allocation8_spill] sm:$0xff]  ;;  %v6419_v62 = vld [vmem:[#allocation5_spill] sm:$0xff] }
  0xdc   : > { %v1927_v15 = vmul.f32 %v4349_v18, %v1919_v19  ;;  %v1928_v63 = vmul.f32 %v4349_v18, %v1920_v38  ;;  %v1929_v50 = vmul.f32 %v4349_v18, %v1921_v9  ;;  %v1930_v42 = vmul.f32 %v4349_v18, %v1922_v37  ;;  %v6420_v5 = vld [vmem:[#allocation10_spill] sm:$0xff]  ;;  %v6421_v1 = vld [vmem:[#allocation21_spill] sm:$0xff]  ;;  %v6422_v14 = vld [vmem:[#allocation11_spill] sm:$0xff] }
  0xdd   : > { %v1931_v35 = vmul.f32 %v4349_v18, %v1923_v30  ;;  %v1932_v47 = vmul.f32 %v4349_v18, %v1924_v27  ;;  %v1933_v49 = vmul.f32 %v4349_v18, %v1925_v51  ;;  %v1934_v8 = vmul.f32 %v4349_v18, %v1926_v17  ;;  %v6423_v7 = vld [vmem:[#allocation23_spill] sm:$0xff]  ;;  %v6425_v37 = vld [vmem:[#allocation17_spill] sm:$0xff]  ;;  %v6426_v30 = vld [vmem:[#allocation16_spill] sm:$0xff] }
  0xde   : > { %v5629_v44 = vadd.f32 %v4350_v10, %v1927_v15  ;;  %v5631_v6 = vadd.f32 %v4350_v10, %v1928_v63  ;;  %v5633_v16 = vadd.f32 %v4350_v10, %v1929_v50  ;;  %v5635_v20 = vadd.f32 %v4350_v10, %v1930_v42  ;;  %v6424_v38 = vld [vmem:[#allocation15_spill] sm:$0xff]  ;;  %v6427_v51 = vld [vmem:[#allocation18_spill] sm:$0xff]  ;;  %v6428_v15 = vld [vmem:[#allocation12_spill] sm:$0xff] }
  0xdf   : > { %v5637_v34 = vadd.f32 %v4350_v10, %v1931_v35  ;;  %4173 = vrcp.f32 %v5584_v11  ;;  %v5640_v3 = vadd.f32 %v4350_v10, %v1932_v47  ;;  %v5642_v12 = vadd.f32 %v4350_v10, %v1933_v49  ;;  %v6429_v63 = vld [vmem:[#allocation24_spill] sm:$0xff]  ;;  %v6430_v42 = vld [vmem:[#allocation13_spill] sm:$0xff] }
  0xe0   : > { %v3522_v59 = vmul.f32 -1.442695, %v5629_v44  ;;  %v5645_v23 = vadd.f32 %v4350_v10, %v1934_v8  ;;  %v3523_v57 = vmul.f32 -1.442695, %v5631_v6  ;;  %v3524_v28 = vmul.f32 -1.442695, %v5633_v16 }
  0xe1   : > { %v3525_v24 = vmul.f32 -1.442695, %v5635_v20  ;;  %v3526_v0 = vmul.f32 -1.442695, %v5637_v34  ;;  %v3527_v11 = vmul.f32 -1.442695, %v5640_v3  ;;  %v5655_v53 = vmul.f32 %v6415_v31, %v6414_v61 }
  0xe2   : > { %4175 = vpow2.f32 %v3522_v59  ;;  %v3528_v32 = vmul.f32 -1.442695, %v5642_v12  ;;  %v5659_v40 = vmul.f32 %v6417_v2, %v6416_v48  ;;  %v3529_v43 = vmul.f32 -1.442695, %v5645_v23  ;;  %v6431_v35 = vld [vmem:[#allocation25_spill] sm:$0xff]  ;;  %v6432_v8 = vld [vmem:[#allocation14_spill] sm:$0xff] }
  0xe3   : > { %4177 = vpow2.f32 %v3523_v57  ;;  %v1666_v45 = vadd.f32 1.0, %v5534_v13  ;;  %v5665_v26 = vmul.f32 %v6419_v62, %v6418_v56  ;;  %v1667_v33 = vadd.f32 1.0, %v5556_v55  ;;  %v6433_v10 = vld [vmem:[#allocation26_spill] sm:$0xff]  ;;  %v6434_v57 = vld [vmem:[#allocation20_spill] sm:$0xff]  ;;  %v6436_v61 = vld [vmem:[#allocation37_spill] sm:$0xff] }
  0xe4   : > { %4179 = vpow2.f32 %v3524_v28  ;;  %v5670_v46 = vmul.f32 %v6421_v1, %v6420_v5  ;;  %v5674_v25 = vmul.f32 %v6423_v7, %v6422_v14  ;;  %v1078_v19 = vadd.f32 %v5659_v40, %v5655_v53  ;;  %v6439_v1 = vld [vmem:[#allocation30_spill] sm:$0xff]  ;;  %v6440_v7 = vld [vmem:[#allocation32_spill] sm:$0xff] }
  0xe5   : > { %4181 = vpow2.f32 %v3525_v24  ;;  %v5680_v9 = vmul.f32 %v5368_v21, %v6424_v38  ;;  %v5684_v55 = vmul.f32 %v5432_v39, %v6425_v37  ;;  %v5688_v27 = vmul.f32 %v5370_v52, %v6426_v30  ;;  %v6441_v30 = vld [vmem:[#allocation27_spill] sm:$0xff] }
  0xe6   : > { %4183 = vpow2.f32 %v3526_v0  ;;  %v5692_v17 = vmul.f32 %v5448_v58, %v6427_v51  ;;  %v5696_v50 = vmul.f32 %v6429_v63, %v6428_v15  ;;  %v5700_v39 = vmul.f32 %v6431_v35, %v6430_v42  ;;  %v6442_v51 = vld [vmem:[#allocation38_spill] sm:$0xff]  ;;  %v6443_v63 = vld [vmem:[#allocation28_spill] sm:$0xff]  ;;  %v6445_v35 = vld [vmem:[#allocation33_spill] sm:$0xff] }
  0xe7   : > { %4185 = vpow2.f32 %v3527_v11  ;;  %v1079_v47 = vadd.f32 %v1078_v19, %v5674_v25  ;;  %v1081_v52 = vadd.f32 %v5670_v46, %v5665_v26  ;;  %v5707_v59 = vmul.f32 %v6433_v10, %v6432_v8 }
  0xe8   : > { %4187 = vpow2.f32 %v3528_v32  ;;  %v5711_v28 = vmul.f32 %v5455_v4, %v6434_v57  ;;  %v1385_v24 = vadd.f32 %v5684_v55, %v5680_v9  ;;  %v6435_v32 = vld [vmem:[#allocation22_spill] sm:$0xff]  ;;  %v1388_v48 = vadd.f32 %v5692_v17, %v5688_v27  ;;  %v6438_v4 = vld [vmem:[#allocation31_spill] sm:$0xff] }
  0xe9   : > { %4189 = vpow2.f32 %v3529_v43  ;;  %v4174_v13 = vpop.eup %4173  ;;  %v5717_v31 = vmul.f32 %v6436_v61, %v6435_v32  ;;  %v5727_v62 = vmul.f32 %v5605_v60, %v6438_v4  ;;  %v5731_v14 = vmul.f32 %v5572_v29, %v6439_v1  ;;  %v6446_v57 = vld [vmem:[#allocation34_spill] sm:$0xff]  ;;  %v6447_v61 = vld [vmem:[#allocation35_spill] sm:$0xff]  ;;  %v6448_v4 = vld [vmem:[#allocation36_spill] sm:$0xff] }
  0xea   : > { %4191 = vrcp.f32 %v1666_v45  ;;  %v6437_v45 = vld [vmem:[#allocation29_spill] sm:$0xff]  ;;  %v5735_v19 = vmul.f32 %v5619_v36, %v6440_v7  ;;  %v5740_v60 = vmul.f32 %v6442_v51, %v6441_v30  ;;  %v1386_v42 = vadd.f32 %v1385_v24, %v5711_v28 }
  0xeb   : > { %4193 = vrcp.f32 %v1667_v33  ;;  %v5723_v56 = vmul.f32 %v5562_v22, %v6437_v45  ;;  %v1082_v22 = vadd.f32 %v1081_v52, %v5696_v50  ;;  %v1389_v10 = vadd.f32 %v1388_v48, %v5717_v31 }
  0xec   : > { %v4176_v18 = vpop.eup %4175  ;;  %v1695_v24 = vadd.f32 %v5735_v19, %v5731_v14  ;;  %v1387_v32 = vadd.f32 %v1386_v42, %v5740_v60 }
  0xed   : > { %v4178_v21 = vpop.eup %4177  ;;  %v1967_v49 = vadd.f32 1.0, %v4176_v18  ;;  %v1692_v52 = vadd.f32 %v5727_v62, %v5723_v56  ;;  %v1083_v48 = vadd.f32 %v1082_v22, %v5707_v59 }
  0xee   : > { %v4180_v58 = vpop.eup %4179  ;;  %v1968_v0 = vadd.f32 1.0, %v4178_v21  ;;  %v6444_v21 = vld [vmem:[#allocation39_spill] sm:$0xff] }
  0xef   : > { %v4182_v11 = vpop.eup %4181  ;;  %v1969_v2 = vadd.f32 1.0, %v4180_v58  ;;  %4195 = vrcp.f32 %v1967_v49  ;;  %v5744_v29 = vmul.f32 %v6444_v21, %v6443_v63  ;;  %v5749_v49 = vmul.f32 %v5621_v54, %v6445_v35 }
  0xf0   : > { %v4184_v43 = vpop.eup %4183  ;;  %v1970_v33 = vadd.f32 1.0, %v4182_v11  ;;  %4197 = vrcp.f32 %v1968_v0  ;;  %v5755_v0 = vmul.f32 %v4174_v13, %v6446_v57  ;;  %v1080_v54 = vadd.f32 %v1079_v47, %v5700_v39 }
  0xf1   : > { %v4186_v5 = vpop.eup %4185  ;;  %v1971_v38 = vadd.f32 1.0, %v4184_v43  ;;  %4199 = vrcp.f32 %v1969_v2  ;;  %v1693_v43 = vadd.f32 %v1692_v52, %v5749_v49  ;;  %v1390_v13 = vadd.f32 %v1389_v10, %v5744_v29 }
  0xf2   : > { %v4188_v37 = vpop.eup %4187  ;;  %v1972_v18 = vadd.f32 1.0, %v4186_v5  ;;  %4201 = vrcp.f32 %v1970_v33  ;;  %v1696_v5 = vadd.f32 %v1695_v24, %v5755_v0  ;;  %v1391_v30 = vadd.f32 %v1387_v32, %v1080_v54 }
  0xf3   : > { %v4190_v15 = vpop.eup %4189  ;;  %v1973_v36 = vadd.f32 1.0, %v4188_v37  ;;  %4203 = vrcp.f32 %v1971_v38 }
  0xf4   : > { %v1974_v58 = vadd.f32 1.0, %v4190_v15  ;;  %4205 = vrcp.f32 %v1972_v18  ;;  %v4192_v8 = vpop.eup %4191  ;;  %v1392_v15 = vadd.f32 %v1390_v13, %v1083_v48 }
  0xf5   : > { %4207 = vrcp.f32 %v1973_v36  ;;  %v4194_v11 = vpop.eup %4193  ;;  %v5762_v2 = vmul.f32 %v4192_v8, %v6447_v61 }
  0xf6   : > { %4209 = vrcp.f32 %v1974_v58  ;;  %v5768_v33 = vmul.f32 %v4194_v11, %v6448_v4 }
  0xf7   : > { %v1694_v51 = vadd.f32 %v1693_v43, %v5762_v2 }
  0xf8   : > { %v1697_v63 = vadd.f32 %v1696_v5, %v5768_v33 }
  0xf9   : > { %v4196_v45 = vpop.eup %4195  ;;  %v1698_v58 = vadd.f32 %v1694_v51, %v1391_v30  ;;  %v4063_v30 = vld [vmem:[%s6324_s7 + $0x20] sm:$0xff]   ;;  %v4064_v51 = vld [vmem:[%s6324_s7 + $0x28] sm:$0xff]  }
  0xfa   : > { %v4198_v1 = vpop.eup %4197  ;;  %v5772_v47 = vmul.f32 %v4196_v45, %v5629_v44  ;;  %v1699_v10 = vadd.f32 %v1697_v63, %v1392_v15  ;;  %v4066_v15 = vld [vmem:[%s6324_s7 + $0x38] sm:$0xff]   ;;  %v2040_v63 = vld [vmem:[%s6323_s6] sm:$0x1] }
  0xfb   : > { %v4200_v7 = vpop.eup %4199  ;;  %v5775_v38 = vmul.f32 %v4198_v1, %v5631_v6  ;;  %v4060_v1 = vld [vmem:[%s6324_s7 + $0x8] sm:$0xff]  }
  0xfc   : > { %v4202_v37 = vpop.eup %4201  ;;  %v5779_v22 = vmul.f32 %v4200_v7, %v5633_v16  ;;  %v4061_v7 = vld [vmem:[%s6324_s7 + $0x10] sm:$0xff]  }
  0xfd   : > { %v4204_v18 = vpop.eup %4203  ;;  %v5783_v21 = vmul.f32 %v4202_v37, %v5635_v20  ;;  %v4062_v37 = vld [vmem:[%s6324_s7 + $0x18] sm:$0xff]  }
  0xfe   : > { %v4206_v44 = vpop.eup %4205  ;;  %v5786_v42 = vmul.f32 %v4204_v18, %v5637_v34  ;;  %v1999_v6 = vadd.f32 %v5779_v22, %v5772_v47  ;;  %v4065_v18 = vld [vmem:[%s6324_s7 + $0x30] sm:$0xff]  }
  0xff   : > { %v4208_v36 = vpop.eup %4207  ;;  %v5791_v35 = vmul.f32 %v4206_v44, %v5640_v3  ;;  %v2002_v16 = vadd.f32 %v5783_v21, %v5775_v38 }
 0x100   : > { %v4210_v52 = vpop.eup %4209  ;;  %v5796_v8 = vmul.f32 %v4208_v36, %v5642_v12  ;;  %v2000_v20 = vadd.f32 %v1999_v6, %v5786_v42 }
 0x101   : > { %v5800_v34 = vmul.f32 %v4210_v52, %v5645_v23  ;;  %v2003_v57 = vadd.f32 %v2002_v16, %v5791_v35  ;;  %v4059_v23 = vld [vmem:[%s6324_s7] sm:$0xff]  }
 0x102   : > { %v2001_v24 = vadd.f32 %v2000_v20, %v5796_v8  ;;  %3866 = vmatpush3.bf16.msra.mxu1 %v4059_v23  ;;  %v4078_v23 = vld [vmem:[%s6329_s12 + $0x18] sm:$0xff]  }
 0x103   : > { %v2004_v3 = vadd.f32 %v2003_v57, %v5800_v34  ;;  %3867 = vmatprep.subr.bf16.mxu1 %v5599_v41 }
 0x104   : > { %v2005_v11 = vadd.f32 %v2001_v24, %v1698_v58 }
 0x105   : > { %v2006_v54 = vadd.f32 %v2004_v3, %v1699_v10 }
 0x106   : > { %3868 = vmatpush3.bf16.msra.mxu1 %v4060_v1  ;;  %v4079_v1 = vld [vmem:[%s6329_s12 + $0x20] sm:$0xff]  }
 0x107   : > { %v2015_v32 = vadd.f32 %v2006_v54, %v2005_v11  ;;  %3869 = vmatprep.subr.bf16.mxu1 %v5599_v41  ;;  %v4067_v11 = vld [vmem:[%s6326_s9] sm:$0xff]   ;;  %v4068_v54 = vld [vmem:[%s6326_s9 + $0x8] sm:$0xff]  }
 0x108   : > { %3885 = vmatprep.subr.bf16.mxu0 %v4067_v11 }
 0x109   : > { %v2016_v61 = vrot.slane %v2015_v32, 4 }
 0x10a   : > { %3870 = vmatpush3.bf16.msra.mxu1 %v4061_v7  ;;  %v2153_v7 = vld [vmem:[%s6325_s8] sm:$0x1] }
 0x10b   : > { %v2017_v43 = vadd.f32 %v2016_v61, %v2015_v32  ;;  %3871 = vmatprep.subr.bf16.mxu1 %v5599_v41  ;;  %v4069_v32 = vld [vmem:[%s6326_s9 + $0x10] sm:$0xff]   ;;  %v4070_v61 = vld [vmem:[%s6326_s9 + $0x18] sm:$0xff]  }
 0x10d   : > { %v2018_v45 = vrot.slane %v2017_v43, 2 }
 0x10e   : > { %3872 = vmatpush3.bf16.msra.mxu1 %v4062_v37 }
 0x10f   : > { %v2019_v12 = vadd.f32 %v2018_v45, %v2017_v43  ;;  %3873 = vmatprep.subr.bf16.mxu1 %v5599_v41  ;;  %v4071_v43 = vld [vmem:[%s6326_s9 + $0x20] sm:$0xff]   ;;  %v4072_v45 = vld [vmem:[%s6326_s9 + $0x28] sm:$0xff]  }
 0x111   : > { %v2020_v48 = vrot.slane %v2019_v12, 1 }
 0x112   : > { %3874 = vmatpush3.bf16.msra.mxu1 %v4063_v30 }
 0x113   : > { %v2021_v13 = vadd.f32 %v2020_v48, %v2019_v12  ;;  %3875 = vmatprep.subr.bf16.mxu1 %v5599_v41  ;;  %v4073_v12 = vld [vmem:[%s6326_s9 + $0x30] sm:$0xff]   ;;  %v4074_v48 = vld [vmem:[%s6326_s9 + $0x38] sm:$0xff]  }
 0x115   : > { %v2022_v4 = vmul.f32 0.00390625, %v2021_v13  ;;  %v4075_v13 = vld [vmem:[%s6329_s12] sm:$0xff]  }
 0x116   : > { %3876 = vmatpush3.bf16.msra.mxu1 %v4064_v51 }
 0x117   : > { %v2023_v5 = vpack.c.bf16 %v2022_v4, %v2022_v4  ;;  %3877 = vmatprep.subr.bf16.mxu1 %v5599_v41  ;;  %v4076_v4 = vld [vmem:[%s6329_s12 + $0x8] sm:$0xff]  }
 0x119   : > { %3862 = vmatmul.mubr.bf16.vlgmr.msra.gmra.mrb[0].mxu0 %v2023_v5  ;;  %v4077_v5 = vld [vmem:[%s6329_s12 + $0x10] sm:$0xff]  }
 0x11a   : > { %3878 = vmatpush3.bf16.msra.mxu1 %v4065_v18  ;;  %3886 = vmatpush3.bf16.msra.mxu0 %v4067_v11 }
 0x11b   : > { %3879 = vmatprep.subr.bf16.mxu1 %v5599_v41  ;;  %3887 = vmatprep.subr.bf16.mxu0 %v4068_v54 }
 0x11e   : > { %3880 = vmatpush3.bf16.msra.mxu1 %v4066_v15  ;;  %3888 = vmatpush3.bf16.msra.mxu0 %v4068_v54  ;;  %v6449_v54 = vld [vmem:[#allocation4_spill] sm:$0xff] }
 0x11f   : > { %3889 = vmatprep.subr.bf16.mxu0 %v4069_v32  ;;  %3933 = vmatprep.subr.bf16.mxu1 %v4075_v13 }
 0x122   : > { %3890 = vmatpush3.bf16.msra.mxu0 %v4069_v32 }
 0x123   : > { %3891 = vmatprep.subr.bf16.mxu0 %v4070_v61 }
 0x126   : > { %3892 = vmatpush3.bf16.msra.mxu0 %v4070_v61  ;;  %v1089_v61 = vpack.c.bf16 %v5707_v59, %v5700_v39 }
 0x127   : > { %3893 = vmatprep.subr.bf16.mxu0 %v4071_v43 }
 0x12a   : > { %3894 = vmatpush3.bf16.msra.mxu0 %v4071_v43 }
 0x12b   : > { %3895 = vmatprep.subr.bf16.mxu0 %v4072_v45 }
 0x12e   : > { %3896 = vmatpush3.bf16.msra.mxu0 %v4072_v45 }
 0x12f   : > { %3897 = vmatprep.subr.bf16.mxu0 %v4073_v12 }
 0x132   : > { %3898 = vmatpush3.bf16.msra.mxu0 %v4073_v12 }
 0x133   : > { %3899 = vmatprep.subr.bf16.mxu0 %v4074_v48 }
 0x136   : > { %3900 = vmatpush3.bf16.msra.mxu0 %v4074_v48  ;;  %v2270_v48 = vunpack.c.l.bf16 %v1089_v61 }
 0x1ec   : > { %v2123_v44 = vpop.f32.mrb[0].mxu0 }
 0x1ed   : > { %v2124_v6 = vadd.f32 %v2123_v44, %v2040_v63  ;;  %v3863_v36 = vpop.f32.mrb[1].mxu0 }
 0x1ee   : > { %v2126_v16 = vpop.f32.mrb[2].mxu0  ;;  %v1086_v36 = vpack.c.bf16 %v5665_v26, %v5655_v53  ;;  %v1393_v53 = vpack.c.bf16 %v5688_v27, %v5680_v9 }
 0x1ef   : > { %v3538_v52 = vmul.f32 -1.442695, %v2124_v6  ;;  %v3864_v58 = vpop.f32.mrb[3].mxu0  ;;  %v1087_v16 = vpack.c.bf16 %v5670_v46, %v5659_v40 }
 0x1f0   : > { %v2264_v58 = vunpack.c.l.bf16 %v1086_v36  ;;  %v2272_v59 = vunpack.c.l.bf16 %v1393_v53  ;;  %v2273_v9 = vunpack.c.h.bf16 %v1393_v53 }
 0x1f1   : > { %4211 = vpow2.f32 %v3538_v52  ;;  %v1088_v52 = vpack.c.bf16 %v5696_v50, %v5674_v25 }
 0x1f3   : > { %v2269_v11 = vunpack.c.h.bf16 %v1088_v52 }
 0x1fb   : > { %v4212_v20 = vpop.eup %4211 }
 0x1fc   : > { %v2132_v10 = vadd.f32 1.0, %v4212_v20  ;;  %v2265_v20 = vunpack.c.h.bf16 %v1086_v36 }
 0x1fe   : > { %4213 = vrcp.f32 %v2132_v10  ;;  %v2266_v10 = vunpack.c.l.bf16 %v1087_v16 }
 0x208   : > { %v4214_v57 = vpop.eup %4213 }
 0x209   : > { %v2135_v24 = vmul.f32 %v4214_v57, %v2124_v6  ;;  %v2267_v57 = vunpack.c.h.bf16 %v1087_v16 }
 0x20b   : > { %v2136_v3 = vpack.c.bf16 %v2135_v24, %v2135_v24 }
 0x20d   : > { %3882 = vmatmul.mubr.bf16.vlgmr.msra.gmra.mrb[0].mxu1 %v2136_v3  ;;  %v2268_v3 = vunpack.c.l.bf16 %v1088_v52 }
 0x20e   : > { %3934 = vmatpush3.bf16.msra.mxu1 %v4075_v13  ;;  %v2271_v13 = vunpack.c.h.bf16 %v1089_v61 }
 0x20f   : > { %3935 = vmatprep.subr.bf16.mxu1 %v4076_v4 }
 0x212   : > { %3936 = vmatpush3.bf16.msra.mxu1 %v4076_v4 }
 0x213   : > { %3937 = vmatprep.subr.bf16.mxu1 %v4077_v5 }
 0x216   : > { %3938 = vmatpush3.bf16.msra.mxu1 %v4077_v5  ;;  %v1394_v5 = vpack.c.bf16 %v5692_v17, %v5684_v55  ;;  %v1396_v55 = vpack.c.bf16 %v5744_v29, %v5740_v60  ;;  %v1701_v60 = vpack.c.bf16 %v5735_v19, %v5727_v62  ;;  %v1703_v62 = vpack.c.bf16 %v5768_v33, %v5762_v2 }
 0x217   : > { %3939 = vmatprep.subr.bf16.mxu1 %v4078_v23  ;;  %v2008_v2 = vpack.c.bf16 %v5783_v21, %v5779_v22  ;;  %v2010_v22 = vpack.c.bf16 %v5800_v34, %v5796_v8  ;;  %v4080_v8 = vld [vmem:[%s6329_s12 + $0x28] sm:$0xff]   ;;  %v4081_v34 = vld [vmem:[%s6329_s12 + $0x30] sm:$0xff]  }
 0x218   : > { %v2278_v16 = vunpack.c.l.bf16 %v1396_v55  ;;  %v2279_v52 = vunpack.c.h.bf16 %v1396_v55  ;;  %v2283_v61 = vunpack.c.h.bf16 %v1701_v60  ;;  %v5974_v55 = vld [vmem:[%s6328_s11] ss:$0 sm:$0xff] }
 0x21a   : > { %3940 = vmatpush3.bf16.msra.mxu1 %v4078_v23 }
 0x21b   : > { %3941 = vmatprep.subr.bf16.mxu1 %v4079_v1 }
 0x21e   : > { %3942 = vmatpush3.bf16.msra.mxu1 %v4079_v1 }
 0x21f   : > { %3943 = vmatprep.subr.bf16.mxu1 %v4080_v8 }
 0x222   : > { %3944 = vmatpush3.bf16.msra.mxu1 %v4080_v8 }
 0x223   : > { %3945 = vmatprep.subr.bf16.mxu1 %v4081_v34 }
 0x226   : > { %3946 = vmatpush3.bf16.msra.mxu1 %v4081_v34 }
 0x2e0   : > { %v2236_v37 = vpop.f32.mrb[0].mxu1 }
 0x2e1   : > { %v2237_v30 = vadd.f32 %v2236_v37, %v2153_v7  ;;  %v3883_v51 = vpop.f32.mrb[1].mxu1  ;;  %v1395_v7 = vpack.c.bf16 %v5717_v31, %v5711_v28  ;;  %v1700_v28 = vpack.c.bf16 %v5731_v14, %v5723_v56  ;;  %v1702_v56 = vpack.c.bf16 %v5755_v0, %v5749_v49 }
 0x2e2   : > { %v2239_v18 = vpop.f32.mrb[2].mxu1  ;;  %v2275_v51 = vunpack.c.h.bf16 %v1394_v5  ;;  %v2007_v49 = vpack.c.bf16 %v5775_v38, %v5772_v47  ;;  %v2009_v47 = vpack.c.bf16 %v5791_v35, %v5786_v42  ;;  %v2294_v35 = vunpack.c.l.bf16 %v2010_v22 }
 0x2e3   : > { %v3547_v15 = vmul.f32 -1.442695, %v2237_v30  ;;  %v3884_v63 = vpop.f32.mrb[3].mxu1  ;;  %v2274_v30 = vunpack.c.l.bf16 %v1394_v5 }
 0x2e4   : > { %v2277_v63 = vunpack.c.h.bf16 %v1395_v7 }
 0x2e5   : > { %4215 = vpow2.f32 %v3547_v15  ;;  %v2276_v15 = vunpack.c.l.bf16 %v1395_v7 }
 0x2ef   : > { %v4216_v44 = vpop.eup %4215 }
 0x2f0   : > { %v2245_v6 = vadd.f32 1.0, %v4216_v44 }
 0x2f2   : > { %4217 = vrcp.f32 %v2245_v6 }
 0x2fc   : > { %v4218_v24 = vpop.eup %4217 }
 0x2fd   : > { %v5888_v32 = vrot.slane %v4218_v24, %v6449_v54 }
 0x2ff   : > { %v2300_v40 = vmul.f32 %v5888_v32, %v2264_v58  ;;  %v2301_v26 = vmul.f32 %v5888_v32, %v2265_v20  ;;  %v2302_v46 = vmul.f32 %v5888_v32, %v2266_v10  ;;  %v2303_v25 = vmul.f32 %v5888_v32, %v2267_v57 }
 0x300   : > { %v2304_v50 = vmul.f32 %v5888_v32, %v2268_v3  ;;  %v2305_v43 = vmul.f32 %v5888_v32, %v2269_v11  ;;  %v2306_v27 = vmul.f32 %v5888_v32, %v2270_v48  ;;  %v2307_v4 = vmul.f32 %v5888_v32, %v2271_v13 }
 0x301   : > { %v2332_v45 = vpack.c.bf16 %v2301_v26, %v2300_v40  ;;  %v2333_v12 = vpack.c.bf16 %v2303_v25, %v2302_v46  ;;  %v2308_v23 = vmul.f32 %v5888_v32, %v2272_v59  ;;  %v2309_v1 = vmul.f32 %v5888_v32, %v2273_v9 }
 0x302   : > { %v2334_v39 = vpack.c.bf16 %v2305_v43, %v2304_v50  ;;  %v2335_v37 = vpack.c.bf16 %v2307_v4, %v2306_v27  ;;  %v2310_v44 = vmul.f32 %v5888_v32, %v2274_v30  ;;  %v2311_v6 = vmul.f32 %v5888_v32, %v2275_v51 }
 0x303   : > { %3901 = vmatprep.mubr.bf16.mxu0 %v2332_v45  ;;  %v2336_v18 = vpack.c.bf16 %v2309_v1, %v2308_v23  ;;  %v2312_v17 = vmul.f32 %v5888_v32, %v2276_v15  ;;  %v2313_v36 = vmul.f32 %v5888_v32, %v2277_v63  ;;  %v2280_v20 = vunpack.c.l.bf16 %v1700_v28 }
 0x304   : > { %3902 = vmatmul.mubr.bf16.vlgmr.msra.gmra.mrb[4].mxu0 %v2333_v12  ;;  %v2337_v31 = vpack.c.bf16 %v2311_v6, %v2310_v44  ;;  %v2281_v10 = vunpack.c.h.bf16 %v1700_v28  ;;  %v2314_v57 = vmul.f32 %v5888_v32, %v2278_v16  ;;  %v2315_v24 = vmul.f32 %v5888_v32, %v2279_v52 }
 0x305   : > { %3905 = vmatprep.mubr.bf16.mxu0 %v2334_v39  ;;  %v2338_v58 = vpack.c.bf16 %v2313_v36, %v2312_v17  ;;  %v2316_v29 = vmul.f32 %v5888_v32, %v2280_v20  ;;  %v2282_v11 = vunpack.c.l.bf16 %v1701_v60  ;;  %v2284_v40 = vunpack.c.l.bf16 %v1702_v56  ;;  %v3747_v17 = vld [vmem:[%s5964_s30 + $0x8] sm:$0xff]  }
 0x306   : > { %v2317_v3 = vmul.f32 %v5888_v32, %v2281_v10  ;;  %v2339_v14 = vpack.c.bf16 %v2315_v24, %v2314_v57  ;;  %v2285_v26 = vunpack.c.h.bf16 %v1702_v56  ;;  %v2319_v25 = vmul.f32 %v5888_v32, %v2283_v61 }
 0x307   : > { %v2318_v46 = vmul.f32 %v5888_v32, %v2282_v11  ;;  %v2320_v19 = vmul.f32 %v5888_v32, %v2284_v40  ;;  %v2286_v43 = vunpack.c.l.bf16 %v1703_v62  ;;  %v2287_v45 = vunpack.c.h.bf16 %v1703_v62 }
 0x308   : > { %v2340_v53 = vpack.c.bf16 %v2317_v3, %v2316_v29  ;;  %v2321_v50 = vmul.f32 %v5888_v32, %v2285_v26  ;;  %v2288_v48 = vunpack.c.l.bf16 %v2007_v49  ;;  %v2289_v13 = vunpack.c.h.bf16 %v2007_v49  ;;  %v3748_v49 = vld [vmem:[%s5964_s30 + $0x10] sm:$0xff]  }
 0x309   : > { %v2341_v0 = vpack.c.bf16 %v2319_v25, %v2318_v46  ;;  %v2322_v39 = vmul.f32 %v5888_v32, %v2286_v43  ;;  %v2323_v59 = vmul.f32 %v5888_v32, %v2287_v45  ;;  %v2290_v27 = vunpack.c.l.bf16 %v2008_v2  ;;  %v3749_v25 = vld [vmem:[%s5964_s30 + $0x18] sm:$0xff]  }
 0x30a   : > { %v2342_v12 = vpack.c.bf16 %v2321_v50, %v2320_v19  ;;  %v2324_v33 = vmul.f32 %v5888_v32, %v2288_v48  ;;  %v2325_v9 = vmul.f32 %v5888_v32, %v2289_v13  ;;  %v2291_v4 = vunpack.c.h.bf16 %v2008_v2 }
 0x30b   : > { %v2343_v38 = vpack.c.bf16 %v2323_v59, %v2322_v39  ;;  %v2292_v23 = vunpack.c.l.bf16 %v2009_v47  ;;  %v2293_v1 = vunpack.c.h.bf16 %v2009_v47  ;;  %v2326_v7 = vmul.f32 %v5888_v32, %v2290_v27 }
 0x30c   : > { %3906 = vmatmul.mubr.bf16.gmra.mrb[8].mxu0 %v2335_v37  ;;  %v2344_v5 = vpack.c.bf16 %v2325_v9, %v2324_v33  ;;  %v2327_v37 = vmul.f32 %v5888_v32, %v2291_v4  ;;  %v2295_v51 = vunpack.c.h.bf16 %v2010_v22  ;;  %v2330_v15 = vmul.f32 %v5888_v32, %v2294_v35 }
 0x30d   : > { %3909 = vmatprep.mubr.bf16.mxu0 %v2336_v18  ;;  %v2328_v21 = vmul.f32 %v5888_v32, %v2292_v23  ;;  %v2329_v30 = vmul.f32 %v5888_v32, %v2293_v1  ;;  %v3674_v20 = vunpack.c.l.bf16 %v3747_v17  ;;  %v3675_v57 = vunpack.c.h.bf16 %v3747_v17 }
 0x30e   : > { %v2345_v42 = vpack.c.bf16 %v2327_v37, %v2326_v7  ;;  %v2331_v63 = vmul.f32 %v5888_v32, %v2295_v51  ;;  %v4082_v32 = vld [vmem:[%s6329_s12 + $0x38] sm:$0xff]   ;;  %v3682_v48 = vunpack.c.l.bf16 %v3749_v25  ;;  %v3683_v39 = vunpack.c.h.bf16 %v3749_v25  ;;  %v3751_v37 = vld [vmem:[%s5964_s30 + $0x28] sm:$0xff]  }
 0x30f   : > { %v2346_v18 = vpack.c.bf16 %v2329_v30, %v2328_v21  ;;  %3947 = vmatprep.subr.bf16.mxu1 %v4082_v32  ;;  %v3678_v33 = vunpack.c.l.bf16 %v3748_v49  ;;  %v3679_v47 = vunpack.c.h.bf16 %v3748_v49  ;;  %v3750_v30 = vld [vmem:[%s5964_s30 + $0x20] sm:$0xff]   ;;  %v3691_v8 = vunpack.c.h.bf16 %v3751_v37 }
 0x310   : > { %v2347_v44 = vpack.c.bf16 %v2331_v63, %v2330_v15  ;;  %3948 = vmatpush3.bf16.msra.mxu1 %v4082_v32  ;;  %v3690_v63 = vunpack.c.l.bf16 %v3751_v37 }
 0x314   : > { %3910 = vmatmul.mubr.bf16.gmra.mrb[12].mxu0 %v2337_v31  ;;  %v3669_v31 = vld [vmem:[%s5964_s30] sm:$0xff]  }
 0x315   : > { %3913 = vmatprep.mubr.bf16.mxu0 %v2338_v58  ;;  %v3670_v29 = vunpack.c.l.bf16 %v3669_v31  ;;  %v3671_v56 = vunpack.c.h.bf16 %v3669_v31 }
 0x31c   : > { %3914 = vmatmul.mubr.bf16.gmra.mrb[16].mxu0 %v2339_v14 }
 0x31d   : > { %3917 = vmatprep.mubr.bf16.mxu0 %v2340_v53 }
 0x324   : > { %3918 = vmatmul.mubr.bf16.gmra.mrb[20].mxu0 %v2341_v0 }
 0x325   : > { %3921 = vmatprep.mubr.bf16.mxu0 %v2342_v12 }
 0x32c   : > { %3922 = vmatmul.mubr.bf16.gmra.mrb[24].mxu0 %v2343_v38 }
 0x32d   : > { %3925 = vmatprep.mubr.bf16.mxu0 %v2344_v5 }
 0x334   : > { %3926 = vmatmul.mubr.bf16.gmra.mrb[28].mxu0 %v2345_v42 }
 0x335   : > { %3929 = vmatprep.mubr.bf16.mxu0 %v2346_v18 }
 0x33c   : > { %3930 = vmatmul.mubr.bf16.gmra.mrb[32].mxu0 %v2347_v44 }
 0x33d   : > { %4013 = vmatprep.mubr.msk.f32.mxu0 %vm4360_vm0, %v5599_v41  ;;  %v5969_v41 = vld [vmem:[%s6327_s10] ss:$0 sm:$0xff] }
 0x3d7   : > { %v3903_v6 = vpop.f32.mrb[4].mxu0 }
 0x3d8   : > { %v2582_v36 = vmul.f32 %v3903_v6, %v5969_v41  ;;  %v2446_v28 = vpop.f32.mrb[5].mxu0  ;;  %v3686_v6 = vunpack.c.l.bf16 %v3750_v30 }
 0x3d9   : > { %v2580_v16 = vmul.f32 %v5969_v41, %v2446_v28  ;;  %v3904_v52 = vpop.f32.mrb[6].mxu0 }
 0x3da   : > { %v2621_v58 = vadd.f32 %v5974_v55, %v2582_v36  ;;  %v2583_v10 = vmul.f32 %v3904_v52, %v5969_v41  ;;  %v2449_v24 = vpop.f32.mrb[7].mxu0  ;;  %v3687_v36 = vunpack.c.h.bf16 %v3750_v30 }
 0x3db   : > { %v2619_v60 = vadd.f32 %v5974_v55, %v2580_v16  ;;  %v2581_v3 = vmul.f32 %v5969_v41, %v2449_v24 }
 0x3dc   : > { %v2622_v14 = vadd.f32 %v5974_v55, %v2583_v10  ;;  %v2717_v61 = vadd.f32 %v3674_v20, %v2621_v58 }
 0x3dd   : > { %v2620_v11 = vadd.f32 %v5974_v55, %v2581_v3  ;;  %v2715_v40 = vadd.f32 %v3670_v29, %v2619_v60  ;;  %v3752_v29 = vld [vmem:[%s5964_s30 + $0x30] sm:$0xff]  }
 0x3de   : > { %v2718_v53 = vadd.f32 %v3675_v57, %v2622_v14  ;;  %v3753_v57 = vld [vmem:[%s5964_s30 + $0x38] sm:$0xff]  }
 0x3df   : > { %v2716_v26 = vadd.f32 %v3671_v56, %v2620_v11  ;;  %v3907_v46 = vpop.f32.mrb[8].mxu0 }
 0x3e0   : > { %v2748_v62 = vpack.c.bf16 %v2718_v53, %v2717_v61  ;;  %v2586_v19 = vmul.f32 %v3907_v46, %v5969_v41  ;;  %v2462_v50 = vpop.f32.mrb[9].mxu0  ;;  %v3698_v53 = vunpack.c.l.bf16 %v3753_v57 }
 0x3e1   : > { %v2584_v0 = vmul.f32 %v5969_v41, %v2462_v50  ;;  %v3908_v43 = vpop.f32.mrb[10].mxu0  ;;  %v2747_v45 = vpack.c.bf16 %v2716_v26, %v2715_v40  ;;  %v3699_v26 = vunpack.c.h.bf16 %v3753_v57  ;;  %v3695_v50 = vunpack.c.h.bf16 %v3752_v29 }
 0x3e2   : > { %v2625_v12 = vadd.f32 %v5974_v55, %v2586_v19  ;;  %v2587_v13 = vmul.f32 %v3908_v43, %v5969_v41  ;;  %v2465_v59 = vpop.f32.mrb[11].mxu0 }
 0x3e3   : > { %v2623_v2 = vadd.f32 %v5974_v55, %v2584_v0  ;;  %v2585_v9 = vmul.f32 %v5969_v41, %v2465_v59  ;;  %3949 = vmatprep.mubr.bf16.mxu1 %v2747_v45 }
 0x3e4   : > { %v2626_v38 = vadd.f32 %v5974_v55, %v2587_v13  ;;  %3950 = vmatmul.mubr.bf16.vlgmr.msra.gmra.mrb[4].mxu1 %v2748_v62  ;;  %v2721_v4 = vadd.f32 %v3682_v48, %v2625_v12  ;;  %v3694_v62 = vunpack.c.l.bf16 %v3752_v29 }
 0x3e5   : > { %v2624_v27 = vadd.f32 %v5974_v55, %v2585_v9  ;;  %v2719_v23 = vadd.f32 %v3678_v33, %v2623_v2  ;;  %v3754_v33 = vld [vmem:[%s5964_s30 + $0x40] sm:$0xff]  }
 0x3e6   : > { %v2722_v5 = vadd.f32 %v3683_v39, %v2626_v38  ;;  %v3755_v39 = vld [vmem:[%s5964_s30 + $0x48] sm:$0xff]   ;;  %v3703_v30 = vunpack.c.h.bf16 %v3754_v33 }
 0x3e7   : > { %v2720_v1 = vadd.f32 %v3679_v47, %v2624_v27  ;;  %v3911_v7 = vpop.f32.mrb[12].mxu0 }
 0x3e8   : > { %v2590_v22 = vmul.f32 %v3911_v7, %v5969_v41  ;;  %v2478_v21 = vpop.f32.mrb[13].mxu0  ;;  %v2750_v42 = vpack.c.bf16 %v2722_v5, %v2721_v4  ;;  %v3706_v5 = vunpack.c.l.bf16 %v3755_v39 }
 0x3e9   : > { %v2588_v35 = vmul.f32 %v5969_v41, %v2478_v21  ;;  %v3912_v51 = vpop.f32.mrb[14].mxu0  ;;  %v2749_v18 = vpack.c.bf16 %v2720_v1, %v2719_v23  ;;  %v3707_v1 = vunpack.c.h.bf16 %v3755_v39 }
 0x3ea   : > { %v2629_v15 = vadd.f32 %v5974_v55, %v2590_v22  ;;  %v2591_v44 = vmul.f32 %v3912_v51, %v5969_v41  ;;  %v2481_v34 = vpop.f32.mrb[15].mxu0  ;;  %v3702_v22 = vunpack.c.l.bf16 %v3754_v33 }
 0x3eb   : > { %v2627_v32 = vadd.f32 %v5974_v55, %v2588_v35  ;;  %v2589_v17 = vmul.f32 %v5969_v41, %v2481_v34  ;;  %3953 = vmatprep.mubr.bf16.mxu1 %v2749_v18 }
 0x3ec   : > { %v2630_v28 = vadd.f32 %v5974_v55, %v2591_v44  ;;  %3954 = vmatmul.mubr.bf16.gmra.mrb[8].mxu1 %v2750_v42  ;;  %v2725_v16 = vadd.f32 %v3690_v63, %v2629_v15 }
 0x3ed   : > { %v2628_v31 = vadd.f32 %v5974_v55, %v2589_v17  ;;  %v2723_v58 = vadd.f32 %v3686_v6, %v2627_v32  ;;  %v3756_v6 = vld [vmem:[%s5964_s30 + $0x50] sm:$0xff]  }
 0x3ee   : > { %v2726_v52 = vadd.f32 %v3691_v8, %v2630_v28  ;;  %v3757_v8 = vld [vmem:[%s5964_s30 + $0x58] sm:$0xff]   ;;  %v3711_v29 = vunpack.c.h.bf16 %v3756_v6 }
 0x3ef   : > { %v2724_v20 = vadd.f32 %v3687_v36, %v2628_v31  ;;  %v3915_v10 = vpop.f32.mrb[16].mxu0 }
 0x3f0   : > { %v2594_v24 = vmul.f32 %v3915_v10, %v5969_v41  ;;  %v2494_v60 = vpop.f32.mrb[17].mxu0  ;;  %v2752_v3 = vpack.c.bf16 %v2726_v52, %v2725_v16  ;;  %v3714_v52 = vunpack.c.l.bf16 %v3757_v8 }
 0x3f1   : > { %v2592_v56 = vmul.f32 %v5969_v41, %v2494_v60  ;;  %v3916_v14 = vpop.f32.mrb[18].mxu0  ;;  %v2751_v11 = vpack.c.bf16 %v2724_v20, %v2723_v58  ;;  %v3715_v20 = vunpack.c.h.bf16 %v3757_v8 }
 0x3f2   : > { %v2633_v61 = vadd.f32 %v5974_v55, %v2594_v24  ;;  %v2595_v40 = vmul.f32 %v3916_v14, %v5969_v41  ;;  %v2497_v46 = vpop.f32.mrb[19].mxu0  ;;  %v3710_v24 = vunpack.c.l.bf16 %v3756_v6 }
 0x3f3   : > { %v2631_v25 = vadd.f32 %v5974_v55, %v2592_v56  ;;  %v2593_v19 = vmul.f32 %v5969_v41, %v2497_v46  ;;  %3957 = vmatprep.mubr.bf16.mxu1 %v2751_v11 }
 0x3f4   : > { %v2634_v49 = vadd.f32 %v5974_v55, %v2595_v40  ;;  %3958 = vmatmul.mubr.bf16.gmra.mrb[12].mxu1 %v2752_v3  ;;  %v2729_v43 = vadd.f32 %v3698_v53, %v2633_v61 }
 0x3f5   : > { %v2632_v0 = vadd.f32 %v5974_v55, %v2593_v19  ;;  %v2727_v12 = vadd.f32 %v3694_v62, %v2631_v25  ;;  %v3758_v62 = vld [vmem:[%s5964_s30 + $0x60] sm:$0xff]  }
 0x3f6   : > { %v2730_v45 = vadd.f32 %v3699_v26, %v2634_v49  ;;  %v3759_v26 = vld [vmem:[%s5964_s30 + $0x68] sm:$0xff]   ;;  %v3719_v33 = vunpack.c.h.bf16 %v3758_v62 }
 0x3f7   : > { %v2728_v48 = vadd.f32 %v3695_v50, %v2632_v0  ;;  %v3919_v13 = vpop.f32.mrb[20].mxu0 }
 0x3f8   : > { %v2598_v59 = vmul.f32 %v3919_v13, %v5969_v41  ;;  %v2510_v2 = vpop.f32.mrb[21].mxu0  ;;  %v2754_v9 = vpack.c.bf16 %v2730_v45, %v2729_v43  ;;  %v3722_v45 = vunpack.c.l.bf16 %v3759_v26 }
 0x3f9   : > { %v2596_v47 = vmul.f32 %v5969_v41, %v2510_v2  ;;  %v3920_v38 = vpop.f32.mrb[22].mxu0  ;;  %v2753_v27 = vpack.c.bf16 %v2728_v48, %v2727_v12  ;;  %v3723_v48 = vunpack.c.h.bf16 %v3759_v26  ;;  %v3337_v26 = vld [vmem:[%s6332_s15 + $0x48] sm:$0xff] }
 0x3fa   : > { %v2637_v4 = vadd.f32 %v5974_v55, %v2598_v59  ;;  %v2599_v23 = vmul.f32 %v3920_v38, %v5969_v41  ;;  %v2513_v7 = vpop.f32.mrb[23].mxu0  ;;  %v3718_v59 = vunpack.c.l.bf16 %v3758_v62  ;;  %v3339_v62 = vld [vmem:[%s6332_s15 + $0x58] sm:$0xff] }
 0x3fb   : > { %v2635_v37 = vadd.f32 %v5974_v55, %v2596_v47  ;;  %v2597_v21 = vmul.f32 %v5969_v41, %v2513_v7  ;;  %3961 = vmatprep.mubr.bf16.mxu1 %v2753_v27 }
 0x3fc   : > { %v2638_v42 = vadd.f32 %v5974_v55, %v2599_v23  ;;  %3962 = vmatmul.mubr.bf16.gmra.mrb[16].mxu1 %v2754_v9  ;;  %v2733_v51 = vadd.f32 %v3706_v5, %v2637_v4 }
 0x3fd   : > { %v2636_v35 = vadd.f32 %v5974_v55, %v2597_v21  ;;  %v2731_v15 = vadd.f32 %v3702_v22, %v2635_v37  ;;  %v3760_v22 = vld [vmem:[%s5964_s30 + $0x70] sm:$0xff]  }
 0x3fe   : > { %v2734_v18 = vadd.f32 %v3707_v1, %v2638_v42  ;;  %v3761_v1 = vld [vmem:[%s5964_s30 + $0x78] sm:$0xff]   ;;  %v3727_v6 = vunpack.c.h.bf16 %v3760_v22 }
 0x3ff   : > { %v2732_v63 = vadd.f32 %v3703_v30, %v2636_v35  ;;  %v3923_v44 = vpop.f32.mrb[24].mxu0 }
 0x400   : > { %v2602_v34 = vmul.f32 %v3923_v44, %v5969_v41  ;;  %v2526_v32 = vpop.f32.mrb[25].mxu0  ;;  %v2756_v17 = vpack.c.bf16 %v2734_v18, %v2733_v51  ;;  %v3730_v18 = vunpack.c.l.bf16 %v3761_v1 }
 0x401   : > { %v2600_v36 = vmul.f32 %v5969_v41, %v2526_v32  ;;  %v3924_v28 = vpop.f32.mrb[26].mxu0  ;;  %v2755_v31 = vpack.c.bf16 %v2732_v63, %v2731_v15  ;;  %v3731_v63 = vunpack.c.h.bf16 %v3761_v1 }
 0x402   : > { %v2641_v16 = vadd.f32 %v5974_v55, %v2602_v34  ;;  %v2603_v58 = vmul.f32 %v3924_v28, %v5969_v41  ;;  %v2529_v10 = vpop.f32.mrb[27].mxu0  ;;  %v3726_v34 = vunpack.c.l.bf16 %v3760_v22 }
 0x403   : > { %v2639_v57 = vadd.f32 %v5974_v55, %v2600_v36  ;;  %v2601_v60 = vmul.f32 %v5969_v41, %v2529_v10  ;;  %3965 = vmatprep.mubr.bf16.mxu1 %v2755_v31  ;;  %v4361_v10 = vmov 0.0|0.0  }
 0x404   : > { %v2642_v3 = vadd.f32 %v5974_v55, %v2603_v58  ;;  %3966 = vmatmul.mubr.bf16.gmra.mrb[20].mxu1 %v2756_v17  ;;  %v2737_v14 = vadd.f32 %v3714_v52, %v2641_v16  ;;  %4016 = vmatprep.subr.bf16.mxu0 %v4361_v10 }
 0x405   : > { %v2640_v56 = vadd.f32 %v5974_v55, %v2601_v60  ;;  %v2735_v61 = vadd.f32 %v3710_v24, %v2639_v57  ;;  %v3329_v57 = vld [vmem:[%s6332_s15 + $0x8] sm:$0xff]  ;;  %v3331_v60 = vld [vmem:[%s6332_s15 + $0x18] sm:$0xff] }
 0x406   : > { %v2738_v11 = vadd.f32 %v3715_v20, %v2642_v3  ;;  %v3332_v3 = vld [vmem:[%s6332_s15 + $0x20] sm:$0xff] }
 0x407   : > { %v2736_v53 = vadd.f32 %v3711_v29, %v2640_v56  ;;  %v3927_v40 = vpop.f32.mrb[28].mxu0  ;;  %v3333_v56 = vld [vmem:[%s6332_s15 + $0x28] sm:$0xff] }
 0x408   : > { %v2606_v46 = vmul.f32 %v3927_v40, %v5969_v41  ;;  %v2542_v25 = vpop.f32.mrb[29].mxu0  ;;  %v2758_v19 = vpack.c.bf16 %v2738_v11, %v2737_v14  ;;  %v4023_v14 = vpack.c.bf16 %v3333_v56, %v3332_v3  ;;  %v3334_v11 = vld [vmem:[%s6332_s15 + $0x30] sm:$0xff]  ;;  %v3336_v40 = vld [vmem:[%s6332_s15 + $0x40] sm:$0xff] }
 0x409   : > { %v2604_v50 = vmul.f32 %v5969_v41, %v2542_v25  ;;  %v3928_v49 = vpop.f32.mrb[30].mxu0  ;;  %v2757_v0 = vpack.c.bf16 %v2736_v53, %v2735_v61  ;;  %v3335_v61 = vld [vmem:[%s6332_s15 + $0x38] sm:$0xff]  ;;  %v4029_v25 = vpack.c.bf16 %v3337_v26, %v3336_v40 }
 0x40a   : > { %v2645_v43 = vadd.f32 %v5974_v55, %v2606_v46  ;;  %v2607_v12 = vmul.f32 %v3928_v49, %v5969_v41  ;;  %v2545_v13 = vpop.f32.mrb[31].mxu0  ;;  %v4026_v53 = vpack.c.bf16 %v3335_v61, %v3334_v11  ;;  %v3338_v46 = vld [vmem:[%s6332_s15 + $0x50] sm:$0xff]  ;;  %v3341_v49 = vld [vmem:[%s6332_s15 + $0x68] sm:$0xff] }
 0x40b   : > { %v2643_v39 = vadd.f32 %v5974_v55, %v2604_v50  ;;  %v2605_v2 = vmul.f32 %v5969_v41, %v2545_v13  ;;  %3969 = vmatprep.mubr.bf16.mxu1 %v2757_v0  ;;  %v3340_v50 = vld [vmem:[%s6332_s15 + $0x60] sm:$0xff] }
 0x40c   : > { %v2646_v9 = vadd.f32 %v5974_v55, %v2607_v12  ;;  %3970 = vmatmul.mubr.bf16.gmra.mrb[24].mxu1 %v2758_v19  ;;  %v2741_v38 = vadd.f32 %v3722_v45, %v2645_v43  ;;  %v4032_v19 = vpack.c.bf16 %v3339_v62, %v3338_v46  ;;  %v4035_v0 = vpack.c.bf16 %v3341_v49, %v3340_v50  ;;  %v3342_v43 = vld [vmem:[%s6332_s15 + $0x70] sm:$0xff]  ;;  %v3343_v45 = vld [vmem:[%s6332_s15 + $0x78] sm:$0xff] }
 0x40d   : > { %v2644_v47 = vadd.f32 %v5974_v55, %v2605_v2  ;;  %v2739_v4 = vadd.f32 %v3718_v59, %v2643_v39  ;;  %v4038_v12 = vpack.c.bf16 %v3343_v45, %v3342_v43  ;;  %v6112_v39 = vld [vmem:[%s6331_s14] ss:$0 sm:$0xff] }
 0x40e   : > { %v2742_v27 = vadd.f32 %v3723_v48, %v2646_v9  ;;  %v6107_v48 = vld [vmem:[%s6330_s13] ss:$0 sm:$0xff] }
 0x40f   : > { %v2740_v5 = vadd.f32 %v3719_v33, %v2644_v47  ;;  %v3931_v23 = vpop.f32.mrb[32].mxu0 }
 0x410   : > { %v2610_v7 = vmul.f32 %v3931_v23, %v5969_v41  ;;  %v2558_v37 = vpop.f32.mrb[33].mxu0  ;;  %v2760_v21 = vpack.c.bf16 %v2742_v27, %v2741_v38 }
 0x411   : > { %v2608_v30 = vmul.f32 %v5969_v41, %v2558_v37  ;;  %v3932_v42 = vpop.f32.mrb[34].mxu0  ;;  %v2759_v35 = vpack.c.bf16 %v2740_v5, %v2739_v4 }
 0x412   : > { %v2649_v51 = vadd.f32 %v5974_v55, %v2610_v7  ;;  %v2611_v15 = vmul.f32 %v3932_v42, %v5969_v41  ;;  %v2561_v44 = vpop.f32.mrb[35].mxu0 }
 0x413   : > { %v2647_v8 = vadd.f32 %v5974_v55, %v2608_v30  ;;  %v2609_v32 = vmul.f32 %v5969_v41, %v2561_v44  ;;  %3973 = vmatprep.mubr.bf16.mxu1 %v2759_v35  ;;  %v3328_v41 = vld [vmem:[%s6332_s15] sm:$0xff] }
 0x414   : > { %v2650_v17 = vadd.f32 %v5974_v55, %v2611_v15  ;;  %3974 = vmatmul.mubr.bf16.gmra.mrb[28].mxu1 %v2760_v21  ;;  %v2745_v28 = vadd.f32 %v3730_v18, %v2649_v51  ;;  %v4017_v24 = vpack.c.bf16 %v3329_v57, %v3328_v41 }
 0x415   : > { %v2648_v36 = vadd.f32 %v5974_v55, %v2609_v32  ;;  %v2743_v16 = vadd.f32 %v3726_v34, %v2647_v8  ;;  %v3330_v55 = vld [vmem:[%s6332_s15 + $0x10] sm:$0xff] }
 0x416   : > { %v2746_v31 = vadd.f32 %v3731_v63, %v2650_v17  ;;  %4018 = vmatpush3.bf16.msra.mxu0 %v4017_v24  ;;  %v4020_v29 = vpack.c.bf16 %v3331_v60, %v3330_v55 }
 0x417   : > { %v2744_v52 = vadd.f32 %v3727_v6, %v2648_v36  ;;  %4019 = vmatprep.subr.bf16.mxu0 %v4361_v10 }
 0x418   : > { %v2762_v58 = vpack.c.bf16 %v2746_v31, %v2745_v28 }
 0x419   : > { %v2761_v20 = vpack.c.bf16 %v2744_v52, %v2743_v16 }
 0x41a   : > { %4021 = vmatpush3.bf16.msra.mxu0 %v4020_v29 }
 0x41b   : > { %3977 = vmatprep.mubr.bf16.mxu1 %v2761_v20  ;;  %4022 = vmatprep.subr.bf16.mxu0 %v4361_v10 }
 0x41c   : > { %3978 = vmatmul.mubr.bf16.gmra.mrb[32].mxu1 %v2762_v58 }
 0x41e   : > { %4024 = vmatpush3.bf16.msra.mxu0 %v4023_v14 }
 0x41f   : > { %4025 = vmatprep.subr.bf16.mxu0 %v4361_v10 }
 0x422   : > { %4027 = vmatpush3.bf16.msra.mxu0 %v4026_v53 }
 0x423   : > { %4028 = vmatprep.subr.bf16.mxu0 %v4361_v10 }
 0x426   : > { %4030 = vmatpush3.bf16.msra.mxu0 %v4029_v25 }
 0x427   : > { %4031 = vmatprep.subr.bf16.mxu0 %v4361_v10 }
 0x42a   : > { %4033 = vmatpush3.bf16.msra.mxu0 %v4032_v19 }
 0x42b   : > { %4034 = vmatprep.subr.bf16.mxu0 %v4361_v10 }
 0x42e   : > { %4036 = vmatpush3.bf16.msra.mxu0 %v4035_v0 }
 0x42f   : > { %4037 = vmatprep.subr.bf16.mxu0 %v4361_v10 }
 0x432   : > { %4039 = vmatpush3.bf16.msra.mxu0 %v4038_v12 }
 0x4b7   : > { %v3951_v13 = vpop.f32.mrb[4].mxu1 }
 0x4b8   : > { %v2997_v59 = vmul.f32 %v3951_v13, %v6107_v48  ;;  %v2861_v2 = vpop.f32.mrb[5].mxu1 }
 0x4b9   : > { %v2995_v33 = vmul.f32 %v6107_v48, %v2861_v2  ;;  %v3952_v9 = vpop.f32.mrb[6].mxu1 }
 0x4ba   : > { %v6117_v47 = vadd.f32 %v6112_v39, %v2997_v59  ;;  %v2998_v38 = vmul.f32 %v3952_v9, %v6107_v48  ;;  %v2864_v27 = vpop.f32.mrb[7].mxu1 }
 0x4bb   : > { %v6121_v4 = vadd.f32 %v6112_v39, %v2995_v33  ;;  %v2996_v5 = vmul.f32 %v6107_v48, %v2864_v27 }
 0x4bc   : > { %v3570_v23 = vmul.f32 -1.442695, %v6117_v47  ;;  %v6126_v1 = vadd.f32 %v6112_v39, %v2998_v38 }
 0x4bd   : > { %v3568_v7 = vmul.f32 -1.442695, %v6121_v4  ;;  %v6130_v37 = vadd.f32 %v6112_v39, %v2996_v5 }
 0x4be   : > { %4219 = vpow2.f32 %v3570_v23  ;;  %v3571_v22 = vmul.f32 -1.442695, %v6126_v1 }
 0x4bf   : > { %4221 = vpow2.f32 %v3568_v7  ;;  %v3569_v21 = vmul.f32 -1.442695, %v6130_v37  ;;  %v3955_v30 = vpop.f32.mrb[8].mxu1 }
 0x4c0   : > { %4223 = vpow2.f32 %v3571_v22  ;;  %v3001_v42 = vmul.f32 %v3955_v30, %v6107_v48  ;;  %v2877_v35 = vpop.f32.mrb[9].mxu1 }
 0x4c1   : > { %4225 = vpow2.f32 %v3569_v21  ;;  %v2999_v51 = vmul.f32 %v6107_v48, %v2877_v35  ;;  %v3956_v18 = vpop.f32.mrb[10].mxu1 }
 0x4c2   : > { %v6137_v15 = vadd.f32 %v6112_v39, %v3001_v42  ;;  %v3002_v63 = vmul.f32 %v3956_v18, %v6107_v48  ;;  %v2880_v44 = vpop.f32.mrb[11].mxu1 }
 0x4c3   : > { %v6141_v8 = vadd.f32 %v6112_v39, %v2999_v51  ;;  %v3000_v34 = vmul.f32 %v6107_v48, %v2880_v44 }
 0x4c4   : > { %v3574_v32 = vmul.f32 -1.442695, %v6137_v15  ;;  %v6146_v6 = vadd.f32 %v6112_v39, %v3002_v63 }
 0x4c5   : > { %v3572_v17 = vmul.f32 -1.442695, %v6141_v8  ;;  %v6150_v36 = vadd.f32 %v6112_v39, %v3000_v34 }
 0x4c6   : > { %4227 = vpow2.f32 %v3574_v32  ;;  %v3575_v28 = vmul.f32 -1.442695, %v6146_v6 }
 0x4c7   : > { %4229 = vpow2.f32 %v3572_v17  ;;  %v3573_v31 = vmul.f32 -1.442695, %v6150_v36  ;;  %v3959_v16 = vpop.f32.mrb[12].mxu1 }
 0x4c8   : > { %v4220_v52 = vpop.eup %4219  ;;  %4231 = vpow2.f32 %v3575_v28  ;;  %v3005_v58 = vmul.f32 %v3959_v16, %v6107_v48  ;;  %v2893_v20 = vpop.f32.mrb[13].mxu1 }
 0x4c9   : > { %v4222_v10 = vpop.eup %4221  ;;  %v3164_v41 = vadd.f32 1.0, %v4220_v52  ;;  %4233 = vpow2.f32 %v3573_v31  ;;  %v3003_v57 = vmul.f32 %v6107_v48, %v2893_v20  ;;  %v3960_v24 = vpop.f32.mrb[14].mxu1 }
 0x4ca   : > { %v4224_v55 = vpop.eup %4223  ;;  %v3162_v60 = vadd.f32 1.0, %v4222_v10  ;;  %v6157_v29 = vadd.f32 %v6112_v39, %v3005_v58  ;;  %v3006_v3 = vmul.f32 %v3960_v24, %v6107_v48  ;;  %v2896_v56 = vpop.f32.mrb[15].mxu1 }
 0x4cb   : > { %v4226_v14 = vpop.eup %4225  ;;  %4235 = vrcp.f32 %v3164_v41  ;;  %v3165_v11 = vadd.f32 1.0, %v4224_v55  ;;  %v6161_v61 = vadd.f32 %v6112_v39, %v3003_v57  ;;  %v3004_v53 = vmul.f32 %v6107_v48, %v2896_v56 }
 0x4cc   : > { %4237 = vrcp.f32 %v3162_v60  ;;  %v3163_v40 = vadd.f32 1.0, %v4226_v14  ;;  %v3578_v26 = vmul.f32 -1.442695, %v6157_v29  ;;  %v6166_v46 = vadd.f32 %v6112_v39, %v3006_v3 }
 0x4cd   : > { %4239 = vrcp.f32 %v3165_v11  ;;  %v3576_v25 = vmul.f32 -1.442695, %v6161_v61  ;;  %v6170_v62 = vadd.f32 %v6112_v39, %v3004_v53 }
 0x4ce   : > { %4241 = vrcp.f32 %v3163_v40  ;;  %v3579_v19 = vmul.f32 -1.442695, %v6166_v46 }
 0x4cf   : > { %4243 = vpow2.f32 %v3578_v26  ;;  %v3577_v50 = vmul.f32 -1.442695, %v6170_v62  ;;  %v3963_v49 = vpop.f32.mrb[16].mxu1 }
 0x4d0   : > { %v4228_v0 = vpop.eup %4227  ;;  %4245 = vpow2.f32 %v3576_v25  ;;  %v3009_v43 = vmul.f32 %v3963_v49, %v6107_v48  ;;  %v2909_v45 = vpop.f32.mrb[17].mxu1 }
 0x4d1   : > { %v4230_v12 = vpop.eup %4229  ;;  %v3168_v13 = vadd.f32 1.0, %v4228_v0  ;;  %4247 = vpow2.f32 %v3579_v19  ;;  %v3007_v59 = vmul.f32 %v6107_v48, %v2909_v45  ;;  %v3964_v2 = vpop.f32.mrb[18].mxu1 }
 0x4d2   : > { %v4232_v33 = vpop.eup %4231  ;;  %v3166_v9 = vadd.f32 1.0, %v4230_v12  ;;  %4249 = vpow2.f32 %v3577_v50  ;;  %v6177_v38 = vadd.f32 %v6112_v39, %v3009_v43  ;;  %v3010_v27 = vmul.f32 %v3964_v2, %v6107_v48  ;;  %v2912_v5 = vpop.f32.mrb[19].mxu1 }
 0x4d3   : > { %v4234_v23 = vpop.eup %4233  ;;  %4251 = vrcp.f32 %v3168_v13  ;;  %v3169_v7 = vadd.f32 1.0, %v4232_v33  ;;  %v6181_v22 = vadd.f32 %v6112_v39, %v3007_v59  ;;  %v3008_v21 = vmul.f32 %v6107_v48, %v2912_v5 }
 0x4d4   : > { %4253 = vrcp.f32 %v3166_v9  ;;  %v3167_v30 = vadd.f32 1.0, %v4234_v23  ;;  %v3582_v42 = vmul.f32 -1.442695, %v6177_v38  ;;  %v6186_v35 = vadd.f32 %v6112_v39, %v3010_v27 }
 0x4d5   : > { %v4236_v51 = vpop.eup %4235  ;;  %4255 = vrcp.f32 %v3169_v7  ;;  %v3580_v18 = vmul.f32 -1.442695, %v6181_v22  ;;  %v6190_v63 = vadd.f32 %v6112_v39, %v3008_v21 }
 0x4d6   : > { %v4238_v44 = vpop.eup %4237  ;;  %4257 = vrcp.f32 %v3167_v30  ;;  %v3583_v34 = vmul.f32 -1.442695, %v6186_v35  ;;  %v3260_v16 = vmul.f32 %v4236_v51, %v6117_v47 }
 0x4d7   : > { %v4240_v32 = vpop.eup %4239  ;;  %4259 = vpow2.f32 %v3582_v42  ;;  %v3581_v17 = vmul.f32 -1.442695, %v6190_v63  ;;  %v3967_v28 = vpop.f32.mrb[20].mxu1  ;;  %v3258_v52 = vmul.f32 %v4238_v44, %v6121_v4 }
 0x4d8   : > { %v4242_v31 = vpop.eup %4241  ;;  %4261 = vpow2.f32 %v3580_v18  ;;  %v3013_v58 = vmul.f32 %v3967_v28, %v6107_v48  ;;  %v2925_v20 = vpop.f32.mrb[21].mxu1  ;;  %v3261_v41 = vmul.f32 %v4240_v32, %v6126_v1 }
 0x4d9   : > { %v4244_v10 = vpop.eup %4243  ;;  %v3259_v57 = vmul.f32 %v4242_v31, %v6130_v37  ;;  %4263 = vpow2.f32 %v3583_v34  ;;  %v3011_v24 = vmul.f32 %v6107_v48, %v2925_v20  ;;  %v3968_v55 = vpop.f32.mrb[22].mxu1 }
 0x4da   : > { %v4246_v60 = vpop.eup %4245  ;;  %v3172_v3 = vadd.f32 1.0, %v4244_v10  ;;  %4265 = vpow2.f32 %v3581_v17  ;;  %v6201_v47 = vadd.f32 %v6112_v39, %v3013_v58  ;;  %v3014_v4 = vmul.f32 %v3968_v55, %v6107_v48  ;;  %v2928_v56 = vpop.f32.mrb[23].mxu1 }
 0x4db   : > { %v4248_v14 = vpop.eup %4247  ;;  %v3290_v11 = vadd.f32 %v3259_v57, %v3258_v52  ;;  %v3170_v53 = vadd.f32 1.0, %v4246_v60  ;;  %v6205_v1 = vadd.f32 %v6112_v39, %v3011_v24  ;;  %v3012_v37 = vmul.f32 %v6107_v48, %v2928_v56 }
 0x4dc   : > { %v4250_v40 = vpop.eup %4249  ;;  %4267 = vrcp.f32 %v3172_v3  ;;  %v3173_v26 = vadd.f32 1.0, %v4248_v14  ;;  %v3586_v25 = vmul.f32 -1.442695, %v6201_v47  ;;  %v6210_v19 = vadd.f32 %v6112_v39, %v3014_v4 }
 0x4dd   : > { %v4252_v50 = vpop.eup %4251  ;;  %v3291_v49 = vadd.f32 %v3290_v11, %v3260_v16  ;;  %4269 = vrcp.f32 %v3170_v53  ;;  %v3171_v0 = vadd.f32 1.0, %v4250_v40  ;;  %v3584_v43 = vmul.f32 -1.442695, %v6205_v1 }
 0x4de   : > { %v4254_v45 = vpop.eup %4253  ;;  %4271 = vrcp.f32 %v3173_v26  ;;  %v3587_v12 = vmul.f32 -1.442695, %v6210_v19  ;;  %v6215_v13 = vadd.f32 %v6112_v39, %v3012_v37  ;;  %v3264_v2 = vmul.f32 %v4252_v50, %v6137_v15 }
 0x4df   : > { %v4256_v59 = vpop.eup %4255  ;;  %v3262_v33 = vmul.f32 %v4254_v45, %v6141_v8  ;;  %v3292_v9 = vadd.f32 %v3291_v49, %v3261_v41  ;;  %4273 = vrcp.f32 %v3171_v0  ;;  %v3971_v27 = vpop.f32.mrb[24].mxu1 }
 0x4e0   : > { %v4258_v5 = vpop.eup %4257  ;;  %v3265_v23 = vmul.f32 %v4256_v59, %v6146_v6  ;;  %4275 = vpow2.f32 %v3586_v25  ;;  %v3585_v7 = vmul.f32 -1.442695, %v6215_v13  ;;  %v3017_v21 = vmul.f32 %v3971_v27, %v6107_v48  ;;  %v2941_v30 = vpop.f32.mrb[25].mxu1 }
 0x4e1   : > { %v4260_v42 = vpop.eup %4259  ;;  %v3293_v51 = vadd.f32 %v3292_v9, %v3262_v33  ;;  %v3263_v18 = vmul.f32 %v4258_v5, %v6150_v36  ;;  %4277 = vpow2.f32 %v3584_v43  ;;  %v3015_v15 = vmul.f32 %v6107_v48, %v2941_v30  ;;  %v3972_v8 = vpop.f32.mrb[26].mxu1 }
 0x4e2   : > { %v4262_v44 = vpop.eup %4261  ;;  %v3176_v34 = vadd.f32 1.0, %v4260_v42  ;;  %4279 = vpow2.f32 %v3587_v12  ;;  %v6225_v32 = vadd.f32 %v6112_v39, %v3017_v21  ;;  %v3018_v6 = vmul.f32 %v3972_v8, %v6107_v48  ;;  %v2944_v17 = vpop.f32.mrb[27].mxu1 }
 0x4e3   : > { %v4264_v28 = vpop.eup %4263  ;;  %v3294_v31 = vadd.f32 %v3293_v51, %v3263_v18  ;;  %v3174_v16 = vadd.f32 1.0, %v4262_v44  ;;  %4281 = vpow2.f32 %v3585_v7  ;;  %v6229_v52 = vadd.f32 %v6112_v39, %v3015_v15 }
 0x4e4   : > { %v4266_v36 = vpop.eup %4265  ;;  %4283 = vrcp.f32 %v3176_v34  ;;  %v3177_v58 = vadd.f32 1.0, %v4264_v28  ;;  %v3590_v20 = vmul.f32 -1.442695, %v6225_v32  ;;  %v6233_v10 = vadd.f32 %v6112_v39, %v3018_v6 }
 0x4e5   : > { %v3295_v41 = vadd.f32 %v3294_v31, %v3264_v2  ;;  %4285 = vrcp.f32 %v3174_v16  ;;  %v3175_v57 = vadd.f32 1.0, %v4266_v36  ;;  %v3588_v24 = vmul.f32 -1.442695, %v6229_v52 }
 0x4e6   : > { %v4268_v55 = vpop.eup %4267  ;;  %4287 = vrcp.f32 %v3177_v58  ;;  %v3591_v60 = vmul.f32 -1.442695, %v6233_v10  ;;  %v3016_v3 = vmul.f32 %v6107_v48, %v2944_v17 }
 0x4e7   : > { %v4270_v4 = vpop.eup %4269  ;;  %v3296_v56 = vadd.f32 %v3295_v41, %v3265_v23  ;;  %4289 = vrcp.f32 %v3175_v57  ;;  %v3975_v14 = vpop.f32.mrb[28].mxu1  ;;  %v3268_v50 = vmul.f32 %v4268_v55, %v6157_v29 }
 0x4e8   : > { %v4272_v11 = vpop.eup %4271  ;;  %v3266_v53 = vmul.f32 %v4270_v4, %v6161_v61  ;;  %4291 = vpow2.f32 %v3590_v20  ;;  %v6240_v37 = vadd.f32 %v6112_v39, %v3016_v3  ;;  %v3021_v40 = vmul.f32 %v3975_v14, %v6107_v48  ;;  %v2957_v26 = vpop.f32.mrb[29].mxu1 }
 0x4e9   : > { %v4274_v25 = vpop.eup %4273  ;;  %v3269_v49 = vmul.f32 %v4272_v11, %v6166_v46  ;;  %4293 = vpow2.f32 %v3588_v24  ;;  %v3019_v0 = vmul.f32 %v6107_v48, %v2957_v26  ;;  %v3976_v43 = vpop.f32.mrb[30].mxu1 }
 0x4ea   : > { %v4276_v45 = vpop.eup %4275  ;;  %v3297_v12 = vadd.f32 %v3296_v56, %v3266_v53  ;;  %v3267_v61 = vmul.f32 %v4274_v25, %v6170_v62  ;;  %4295 = vpow2.f32 %v3591_v60  ;;  %v3589_v59 = vmul.f32 -1.442695, %v6240_v37  ;;  %v2960_v2 = vpop.f32.mrb[31].mxu1 }
 0x4eb   : > { %v4278_v33 = vpop.eup %4277  ;;  %v3180_v9 = vadd.f32 1.0, %v4276_v45  ;;  %v6249_v27 = vadd.f32 %v6112_v39, %v3021_v40  ;;  %v6252_v29 = vadd.f32 %v6112_v39, %v3019_v0  ;;  %v3022_v46 = vmul.f32 %v3976_v43, %v6107_v48 }
 0x4ec   : > { %v4280_v5 = vpop.eup %4279  ;;  %v3298_v23 = vadd.f32 %v3297_v12, %v3267_v61  ;;  %v3178_v7 = vadd.f32 1.0, %v4278_v33  ;;  %4297 = vpow2.f32 %v3589_v59  ;;  %v3020_v62 = vmul.f32 %v6107_v48, %v2960_v2 }
 0x4ed   : > { %v4282_v21 = vpop.eup %4281  ;;  %4299 = vrcp.f32 %v3180_v9  ;;  %v3181_v30 = vadd.f32 1.0, %v4280_v5  ;;  %v3594_v42 = vmul.f32 -1.442695, %v6249_v27  ;;  %v3592_v51 = vmul.f32 -1.442695, %v6252_v29 }
 0x4ee   : > { %v4284_v18 = vpop.eup %4283  ;;  %v3299_v15 = vadd.f32 %v3298_v23, %v3268_v50  ;;  %4301 = vrcp.f32 %v3178_v7  ;;  %v3179_v8 = vadd.f32 1.0, %v4282_v21  ;;  %v6259_v44 = vadd.f32 %v6112_v39, %v3022_v46 }
 0x4ef   : > { %v4286_v34 = vpop.eup %4285  ;;  %v3272_v6 = vmul.f32 %v4284_v18, %v6177_v38  ;;  %4303 = vrcp.f32 %v3181_v30  ;;  %v6263_v17 = vadd.f32 %v6112_v39, %v3020_v62  ;;  %v3979_v28 = vpop.f32.mrb[32].mxu1 }
 0x4f0   : > { %v4288_v31 = vpop.eup %4287  ;;  %v3270_v16 = vmul.f32 %v4286_v34, %v6181_v22  ;;  %v3300_v36 = vadd.f32 %v3299_v15, %v3269_v49  ;;  %4305 = vrcp.f32 %v3179_v8  ;;  %v3595_v58 = vmul.f32 -1.442695, %v6259_v44  ;;  %v2973_v20 = vpop.f32.mrb[33].mxu1 }
 0x4f1   : > { %v4290_v41 = vpop.eup %4289  ;;  %v3273_v57 = vmul.f32 %v4288_v31, %v6186_v35  ;;  %4307 = vpow2.f32 %v3594_v42  ;;  %v3593_v24 = vmul.f32 -1.442695, %v6263_v17  ;;  %v3025_v38 = vmul.f32 %v3979_v28, %v6107_v48  ;;  %v3980_v55 = vpop.f32.mrb[34].mxu1 }
 0x4f2   : > { %v4292_v60 = vpop.eup %4291  ;;  %v3301_v3 = vadd.f32 %v3300_v36, %v3270_v16  ;;  %v3271_v4 = vmul.f32 %v4290_v41, %v6190_v63  ;;  %4309 = vpow2.f32 %v3592_v51  ;;  %v3023_v22 = vmul.f32 %v6107_v48, %v2973_v20  ;;  %v2976_v56 = vpop.f32.mrb[35].mxu1 }
 0x4f3   : > { %v4294_v14 = vpop.eup %4293  ;;  %v3184_v11 = vadd.f32 1.0, %v4292_v60  ;;  %4311 = vpow2.f32 %v3595_v58  ;;  %v6273_v53 = vadd.f32 %v6112_v39, %v3025_v38  ;;  %v3026_v35 = vmul.f32 %v3980_v55, %v6107_v48 }
 0x4f4   : > { %v4296_v40 = vpop.eup %4295  ;;  %v3302_v26 = vadd.f32 %v3301_v3, %v3271_v4  ;;  %v3182_v25 = vadd.f32 1.0, %v4294_v14  ;;  %4313 = vpow2.f32 %v3593_v24  ;;  %v6277_v50 = vadd.f32 %v6112_v39, %v3023_v22 }
 0x4f5   : > { %4315 = vrcp.f32 %v3184_v11  ;;  %v3185_v63 = vadd.f32 1.0, %v4296_v40  ;;  %v3598_v49 = vmul.f32 -1.442695, %v6273_v53  ;;  %v6281_v0 = vadd.f32 %v6112_v39, %v3026_v35 }
 0x4f6   : > { %v4298_v43 = vpop.eup %4297  ;;  %v3303_v45 = vadd.f32 %v3302_v26, %v3272_v6  ;;  %4317 = vrcp.f32 %v3182_v25  ;;  %v3596_v12 = vmul.f32 -1.442695, %v6277_v50  ;;  %v3024_v61 = vmul.f32 %v6107_v48, %v2976_v56 }
 0x4f7   : > { %v4300_v59 = vpop.eup %4299  ;;  %4319 = vrcp.f32 %v3185_v63  ;;  %v3183_v2 = vadd.f32 1.0, %v4298_v43  ;;  %v3599_v33 = vmul.f32 -1.442695, %v6281_v0 }
 0x4f8   : > { %v4302_v9 = vpop.eup %4301  ;;  %v3304_v46 = vadd.f32 %v3303_v45, %v3273_v57  ;;  %4321 = vpow2.f32 %v3598_v49  ;;  %v6287_v5 = vadd.f32 %v6112_v39, %v3024_v61  ;;  %v3276_v39 = vmul.f32 %v4300_v59, %v6201_v47 }
 0x4f9   : > { %v4304_v23 = vpop.eup %4303  ;;  %v3274_v7 = vmul.f32 %v4302_v9, %v6205_v1  ;;  %4323 = vrcp.f32 %v3183_v2 }
 0x4fa   : > { %v4306_v62 = vpop.eup %4305  ;;  %4325 = vpow2.f32 %v3596_v12  ;;  %v3597_v21 = vmul.f32 -1.442695, %v6287_v5  ;;  %v3277_v1 = vmul.f32 %v4304_v23, %v6210_v19 }
 0x4fb   : > { %v4308_v48 = vpop.eup %4307  ;;  %v3305_v30 = vadd.f32 %v3304_v46, %v3274_v7  ;;  %v3275_v42 = vmul.f32 %v4306_v62, %v6215_v13  ;;  %4327 = vpow2.f32 %v3599_v33 }
 0x4fc   : > { %v4310_v51 = vpop.eup %4309  ;;  %v3188_v18 = vadd.f32 1.0, %v4308_v48  ;;  %4329 = vpow2.f32 %v3597_v21 }
 0x4fd   : > { %v4312_v15 = vpop.eup %4311  ;;  %v3306_v8 = vadd.f32 %v3305_v30, %v3275_v42  ;;  %v3186_v34 = vadd.f32 1.0, %v4310_v51 }
 0x4fe   : > { %v4314_v6 = vpop.eup %4313  ;;  %v3189_v16 = vadd.f32 1.0, %v4312_v15 }
 0x4ff   : > { %v4316_v28 = vpop.eup %4315  ;;  %v3307_v31 = vadd.f32 %v3306_v8, %v3276_v39  ;;  %4331 = vrcp.f32 %v3186_v34  ;;  %v3187_v36 = vadd.f32 1.0, %v4314_v6 }
 0x500   : > { %v4318_v58 = vpop.eup %4317  ;;  %4333 = vrcp.f32 %v3188_v18  ;;  %v3280_v22 = vmul.f32 %v4316_v28, %v6225_v32 }
 0x501   : > { %v4320_v13 = vpop.eup %4319  ;;  %v3278_v20 = vmul.f32 %v4318_v58, %v6229_v52  ;;  %v3308_v41 = vadd.f32 %v3307_v31, %v3277_v1  ;;  %4335 = vrcp.f32 %v3187_v36 }
 0x502   : > { %v4322_v57 = vpop.eup %4321  ;;  %4337 = vrcp.f32 %v3189_v16  ;;  %v3281_v52 = vmul.f32 %v4320_v13, %v6233_v10 }
 0x503   : > { %v4324_v24 = vpop.eup %4323  ;;  %v3309_v47 = vadd.f32 %v3308_v41, %v3278_v20  ;;  %v3192_v19 = vadd.f32 1.0, %v4322_v57 }
 0x504   : > { %v4326_v38 = vpop.eup %4325  ;;  %v3279_v55 = vmul.f32 %v4324_v24, %v6240_v37 }
 0x505   : > { %v4328_v60 = vpop.eup %4327  ;;  %v3190_v3 = vadd.f32 1.0, %v4326_v38 }
 0x506   : > { %v4330_v4 = vpop.eup %4329  ;;  %v3310_v56 = vadd.f32 %v3309_v47, %v3279_v55  ;;  %v3193_v14 = vadd.f32 1.0, %v4328_v60 }
 0x507   : > { %4339 = vrcp.f32 %v3190_v3  ;;  %v3191_v11 = vadd.f32 1.0, %v4330_v4 }
 0x508   : > { %v3311_v35 = vadd.f32 %v3310_v56, %v3280_v22  ;;  %4341 = vrcp.f32 %v3192_v19 }
 0x509   : > { %v4332_v40 = vpop.eup %4331  ;;  %4343 = vrcp.f32 %v3191_v11 }
 0x50a   : > { %v4334_v26 = vpop.eup %4333  ;;  %v3282_v25 = vmul.f32 %v4332_v40, %v6252_v29  ;;  %v3312_v37 = vadd.f32 %v3311_v35, %v3281_v52  ;;  %4345 = vrcp.f32 %v3193_v14 }
 0x50b   : > { %v4336_v63 = vpop.eup %4335  ;;  %v3284_v45 = vmul.f32 %v4334_v26, %v6249_v27 }
 0x50c   : > { %v3313_v49 = vadd.f32 %v3312_v37, %v3282_v25  ;;  %v3283_v43 = vmul.f32 %v4336_v63, %v6263_v17  ;;  %v4338_v32 = vpop.eup %4337 }
 0x50d   : > { %v3285_v61 = vmul.f32 %v4338_v32, %v6259_v44 }
 0x50e   : > { %v3314_v12 = vadd.f32 %v3313_v49, %v3283_v43 }
 0x510   : > { %v3315_v10 = vadd.f32 %v3314_v12, %v3284_v45 }
 0x511   : > { %v4340_v59 = vpop.eup %4339 }
 0x512   : > { %v4342_v2 = vpop.eup %4341  ;;  %v3286_v33 = vmul.f32 %v4340_v59, %v6277_v50  ;;  %v3316_v9 = vadd.f32 %v3315_v10, %v3285_v61 }
 0x513   : > { %v4344_v46 = vpop.eup %4343  ;;  %v3288_v17 = vmul.f32 %v4342_v2, %v6273_v53 }
 0x514   : > { %v3317_v29 = vadd.f32 %v3316_v9, %v3286_v33  ;;  %v3287_v23 = vmul.f32 %v4344_v46, %v6287_v5  ;;  %v4346_v7 = vpop.eup %4345  ;;  %v3344_v5 = vld [vmem:[%s6333_s16] sm:$0x1] }
 0x515   : > { %v3289_v27 = vmul.f32 %v4346_v7, %v6281_v0 }
 0x516   : > { %v3318_v62 = vadd.f32 %v3317_v29, %v3287_v23 }
 0x518   : > { %v3319_v21 = vadd.f32 %v3318_v62, %v3288_v17 }
 0x51a   : > { %v3320_v48 = vadd.f32 %v3319_v21, %v3289_v27 }
 0x51c   : > { %v3321_v44 = vrot.slane %v3320_v48, 4 }
 0x51e   : > { %v3322_v30 = vadd.f32 %v3321_v44, %v3320_v48 }
 0x520   : > { %v3323_v42 = vrot.slane %v3322_v30, 2 }
 0x522   : > { %v3324_v51 = vadd.f32 %v3323_v42, %v3322_v30 }
 0x524   : > { %v3325_v18 = vrot.slane %v3324_v51, 1 }
 0x526   : > { %v3326_v50 = vadd.f32 %v3325_v18, %v3324_v51 }
 0x528   : > { %v3327_v15 = vmul.f32 0.00390625, %v3326_v50 }
 0x52a   : > { %4014 = vmatmul.mubr.f32.vlgmr.msra.gmra.mrb[36].mxu0 %v3327_v15 }
 0x5fd   : > { %v3411_v39 = vpop.f32.mrb[36].mxu0 }
 0x5fe   : > { %v3412_v53 = vadd.f32 %v3411_v39, %v3344_v5  ;;  %v4015_v8 = vpop.f32.mrb[37].mxu0 }
 0x600   : > { %v3418_v0 = vrot.slane %v3412_v53, %v6449_v54 }
 0x602   : > { %3419 = vst [vmem:[%s566_s23] sm:$0xff] %v3418_v0 }
 0x603 PF: > { %s27_s24 = sadd.s32 1, %s4357_s24  }
 0x604   : > { %p24_p4 = scmp.ge.s32.totalorder %s27_s24, 4  }
 0x606   :  { %26 = sbr.rel (!%p24_p4) target bundleno = 3 (0x3), region = 132 }

</bundles_post_ra>
